<compile_context>
chip_gen: v7x
topology: tpu7x:2x2x1
jax: 0.10.0
libtpu: 0.0.40
codegen_flags: <defaults>
</compile_context>

<pallas_src>
import jax
import jax.numpy as jnp
from jax.experimental import pallas as pl
from jax.experimental.pallas import tpu as pltpu


def _round_up(x, m):
    return (x + m - 1) // m * m


# ---------------------------------------------------------------------------
# Fused Pallas kernel: one grid step == one full image through the network.
# ---------------------------------------------------------------------------
def _cdcl_fused_kernel(x_ref, w1_ref, b1_ref, w2_ref, b2_ref,
                       cw_ref, cb_ref, pool_ref,
                       pw1_ref, pb1_ref, pw2_ref, pb2_ref,
                       z_ref, proj_ref, h1pad_ref):
    H = x_ref.shape[0] - 2
    W = x_ref.shape[1] - 2
    Cin = x_ref.shape[2]
    C1 = w1_ref.shape[2]
    C2 = w2_ref.shape[2]
    md = w1_ref.dtype  # MXU operand dtype (f32 or bf16); accumulation is f32

    def d32(a, b):
        return jnp.dot(a, b, preferred_element_type=jnp.float32)

    # --- encoder conv1 (3x3, Cin->C1, +ReLU): 9 shifted matmuls, no im2col ---
    acc = jnp.zeros((H * W, C1), jnp.float32)
    for t in range(9):
        dy, dx = t // 3, t % 3
        patch = x_ref[dy:dy + H, dx:dx + W, :].reshape(H * W, Cin)
        acc = acc + d32(patch, w1_ref[t])
    h1 = jnp.maximum(acc + b1_ref[...], 0.0)                    # (H*W, C1) f32

    # stash zero-padded h1 in VMEM scratch so conv2 can read halo'd windows
    h1pad_ref[...] = jnp.zeros_like(h1pad_ref)
    h1pad_ref[1:H + 1, 1:W + 1, :] = h1.reshape(H, W, C1)

    # --- encoder conv2 (3x3, C1->C2, +ReLU) ---
    acc = jnp.zeros((H * W, C2), jnp.float32)
    for t in range(9):
        dy, dx = t // 3, t % 3
        patch = h1pad_ref[dy:dy + H, dx:dx + W, :].reshape(H * W, C1)
        acc = acc + d32(patch.astype(md), w2_ref[t])
    fea = jnp.maximum(acc + b2_ref[...], 0.0)                   # (H*W, C2) f32
    fea_md = fea.astype(md)

    # --- classifier (1x1 conv), lane-dense (128-wide) padded output ---
    z_ref[...] = (d32(fea_md, cw_ref[...]) + cb_ref[...]).astype(z_ref.dtype)

    # --- projector: avg-pool (as matmul) -> 1x1+ReLU -> 1x1 -> L2 normalize ---
    fp = d32(pool_ref[...], fea_md)                             # (Hp*Wp, C2)
    p1 = jnp.maximum(d32(fp.astype(md), pw1_ref[...]) + pb1_ref[...], 0.0)
    p2 = d32(p1.astype(md), pw2_ref[...]) + pb2_ref[...]
    ssq = jnp.sum(p2 * p2, axis=-1, keepdims=True)
    inv = jax.lax.rsqrt(jnp.maximum(ssq, 1e-24))    # == 1 / max(||p2||, 1e-12)
    proj_ref[...] = (p2 * inv).astype(proj_ref.dtype)


# ---------------------------------------------------------------------------
# Wrapper glue
# ---------------------------------------------------------------------------
def _pool_matrix(H, W, ds):
    """(Hp*Wp, H*W) matrix such that pool @ flat(fea) == 2D average pooling."""
    Hp, Wp = H // ds, W // ds
    oi = jnp.arange(Hp * Wp)
    ii = jnp.arange(H * W)
    oh, ow = oi // Wp, oi % Wp
    ih, iw = ii // W, ii % W
    hit = ((ih[None, :] // ds) == oh[:, None]) & ((iw[None, :] // ds) == ow[:, None])
    return hit.astype(jnp.float32) / float(ds * ds)


def _pad_cols(a, n):
    return jnp.pad(a, ((0, 0), (0, n - a.shape[1])))


def conv3x3_weight_to_taps(w_torch_layout):
    # torch conv weight (Cout, Cin, 3, 3) -> (9, Cin, Cout), tap-major (dy, dx)
    Cout, Cin, _, _ = w_torch_layout.shape
    return jnp.transpose(w_torch_layout, (2, 3, 1, 0)).reshape(9, Cin, Cout)


def make_params(key, cin=3, hidden=16, in_dim=32, out_dim=64, num_classes=4,
                downsample=2):
    ks = jax.random.split(key, 10)
    s = 0.1
    return {
        "downsample": downsample,
        "enc_w1": conv3x3_weight_to_taps(
            s * jax.random.normal(ks[0], (hidden, cin, 3, 3), jnp.float32)),
        "enc_b1": s * jax.random.normal(ks[1], (hidden,), jnp.float32),
        "enc_w2": conv3x3_weight_to_taps(
            s * jax.random.normal(ks[2], (in_dim, hidden, 3, 3), jnp.float32)),
        "enc_b2": s * jax.random.normal(ks[3], (in_dim,), jnp.float32),
        "cls_w": s * jax.random.normal(ks[4], (in_dim, num_classes), jnp.float32),
        "cls_b": s * jax.random.normal(ks[5], (num_classes,), jnp.float32),
        "proj_w1": s * jax.random.normal(ks[6], (in_dim, in_dim), jnp.float32),
        "proj_b1": s * jax.random.normal(ks[7], (in_dim,), jnp.float32),
        "proj_w2": s * jax.random.normal(ks[8], (in_dim, out_dim), jnp.float32),
        "proj_b2": s * jax.random.normal(ks[9], (out_dim,), jnp.float32),
    }


def cdcl_ema_semi_forward(x_ul, params, *, mxu_dtype=jnp.float32):
    """CDCL_ema 'semi' forward: returns (proj_ul_ema, z_ul_ema), both NCHW."""
    x_weak = x_ul["weak_aug"]                        # (N, Cin, H, W), as PyTorch
    N, Cin, H, W = x_weak.shape
    ds = params["downsample"]
    assert H % ds == 0 and W % ds == 0
    Hp, Wp = H // ds, W // ds
    num_classes = params["cls_w"].shape[1]
    out_dim = params["proj_w2"].shape[1]
    C1 = params["enc_w1"].shape[2]
    C2 = params["enc_w2"].shape[2]
    NCp = _round_up(num_classes, 128)                # lane-dense classifier out
    ODp = _round_up(out_dim, 128)                    # lane-dense projector out

    # halo-padded NHWC input: the ONLY pre-kernel data movement (no 9x im2col)
    x_pad = jnp.pad(jnp.transpose(x_weak, (0, 2, 3, 1)),
                    ((0, 0), (1, 1), (1, 1), (0, 0))).astype(mxu_dtype)

    w1 = params["enc_w1"].astype(mxu_dtype)                      # (9, Cin, C1)
    b1 = params["enc_b1"][None, :]                               # f32
    w2 = params["enc_w2"].astype(mxu_dtype)                      # (9, C1, C2)
    b2 = params["enc_b2"][None, :]
    cw = _pad_cols(params["cls_w"], NCp).astype(mxu_dtype)       # (C2, NCp)
    cb = _pad_cols(params["cls_b"][None, :], NCp)                # f32
    pool = _pool_matrix(H, W, ds).astype(mxu_dtype)              # (Hp*Wp, H*W)
    pw1 = params["proj_w1"].astype(mxu_dtype)                    # (C2, C2)
    pb1 = params["proj_b1"][None, :]
    pw2 = _pad_cols(params["proj_w2"], ODp).astype(mxu_dtype)    # (C2, ODp)
    pb2 = _pad_cols(params["proj_b2"][None, :], ODp)

    grid_spec = pltpu.PrefetchScalarGridSpec(
        num_scalar_prefetch=0,
        grid=(N,),                                   # >= 2 steps -> both v7x TCs
        in_specs=[
            pl.BlockSpec((None, H + 2, W + 2, Cin), lambda n: (n, 0, 0, 0)),
            pl.BlockSpec((9, Cin, C1), lambda n: (0, 0, 0)),
            pl.BlockSpec((1, C1), lambda n: (0, 0)),
            pl.BlockSpec((9, C1, C2), lambda n: (0, 0, 0)),
            pl.BlockSpec((1, C2), lambda n: (0, 0)),
            pl.BlockSpec((C2, NCp), lambda n: (0, 0)),
            pl.BlockSpec((1, NCp), lambda n: (0, 0)),
            pl.BlockSpec((Hp * Wp, H * W), lambda n: (0, 0)),
            pl.BlockSpec((C2, C2), lambda n: (0, 0)),
            pl.BlockSpec((1, C2), lambda n: (0, 0)),
            pl.BlockSpec((C2, ODp), lambda n: (0, 0)),
            pl.BlockSpec((1, ODp), lambda n: (0, 0)),
        ],
        out_specs=[
            pl.BlockSpec((None, H * W, NCp), lambda n: (n, 0, 0)),
            pl.BlockSpec((None, Hp * Wp, ODp), lambda n: (n, 0, 0)),
        ],
        scratch_shapes=[pltpu.VMEM((H + 2, W + 2, C1), jnp.float32)],
    )

    z_full, proj_full = pl.pallas_call(
        _cdcl_fused_kernel,
        out_shape=(jax.ShapeDtypeStruct((N, H * W, NCp), jnp.float32),
                   jax.ShapeDtypeStruct((N, Hp * Wp, ODp), jnp.float32)),
        grid_spec=grid_spec,
        compiler_params=pltpu.CompilerParams(
            dimension_semantics=("parallel",)),
    )(x_pad, w1, b1, w2, b2, cw, cb, pool, pw1, pb1, pw2, pb2)

    z = jnp.transpose(
        z_full[:, :, :num_classes].reshape(N, H, W, num_classes), (0, 3, 1, 2))
    proj = jnp.transpose(
        proj_full[:, :, :out_dim].reshape(N, Hp, Wp, out_dim), (0, 3, 1, 2))
    # TODO(synk): 'test' mode branch (bilinear F.interpolate, align_corners=True)
    # and the CrossEntropy sup_loss are not exercised by the semi forward and
    # are not implemented here.
    return proj, z


# ---------------------------------------------------------------------------
# Pure-jnp reference (same math) for verification only
# ---------------------------------------------------------------------------
def _im2col_3x3(x_nhwc):
    N, H, W, C = x_nhwc.shape
    xp = jnp.pad(x_nhwc, ((0, 0), (1, 1), (1, 1), (0, 0)))
    cols = [xp[:, dy:dy + H, dx:dx + W, :] for dy in range(3) for dx in range(3)]
    return jnp.concatenate(cols, axis=-1)


def cdcl_ema_semi_forward_ref(x_ul, params):
    x = jnp.transpose(x_ul["weak_aug"], (0, 2, 3, 1))
    N, H, W, _ = x.shape
    ds = params["downsample"]
    Hp, Wp = H // ds, W // ds
    w1 = params["enc_w1"].reshape(-1, params["enc_w1"].shape[-1])
    w2 = params["enc_w2"].reshape(-1, params["enc_w2"].shape[-1])
    h1 = jnp.maximum(
        _im2col_3x3(x).reshape(N * H * W, -1) @ w1 + params["enc_b1"], 0.0)
    fea = jnp.maximum(
        _im2col_3x3(h1.reshape(N, H, W, -1)).reshape(N * H * W, -1) @ w2
        + params["enc_b2"], 0.0)
    z = fea @ params["cls_w"] + params["cls_b"]
    z = jnp.transpose(z.reshape(N, H, W, -1), (0, 3, 1, 2))
    fp = fea.reshape(N, Hp, ds, Wp, ds, -1).mean(axis=(2, 4)).reshape(N * Hp * Wp, -1)
    p1 = jnp.maximum(fp @ params["proj_w1"] + params["proj_b1"], 0.0)
    p2 = p1 @ params["proj_w2"] + params["proj_b2"]
    nrm = jnp.sqrt(jnp.sum(p2 * p2, axis=-1, keepdims=True))
    p2 = p2 / jnp.maximum(nrm, 1e-12)
    proj = jnp.transpose(p2.reshape(N, Hp, Wp, -1), (0, 3, 1, 2))
    return proj, z


if __name__ == "__main__":
    key = jax.random.PRNGKey(0)
    k_param, k_data = jax.random.split(key)

    # batch=2, RGB 16x16, in_dim=32, out_dim=64, downsample=2, num_classes=4
    params = make_params(k_param, cin=3, hidden=16, in_dim=32, out_dim=64,
                         num_classes=4, downsample=2)
    x_weak = jax.random.normal(k_data, (2, 3, 16, 16), jnp.float32)
    x_ul = {"weak_aug": x_weak}

    # f32 fused Pallas forward
    proj, z = cdcl_ema_semi_forward(x_ul, params)
    proj = jax.block_until_ready(proj)
    z = jax.block_until_ready(z)
    assert proj.shape == (2, 64, 8, 8), proj.shape
    assert z.shape == (2, 4, 16, 16), z.shape

    # verify against pure-jnp reference of the same math
    proj_ref, z_ref = cdcl_ema_semi_forward_ref(x_ul, params)
    assert jnp.allclose(proj, proj_ref, atol=2e-3, rtol=2e-3)
    assert jnp.allclose(z, z_ref, atol=2e-3, rtol=2e-3)

    # bf16 MXU-operand path (v6e/v7x HBM-bandwidth win); accumulation and all
    # elementwise epilogue math stay f32, so it is v5e-safe as well.
    proj_bf, z_bf = cdcl_ema_semi_forward(x_ul, params, mxu_dtype=jnp.bfloat16)
    proj_bf = jax.block_until_ready(proj_bf)
    z_bf = jax.block_until_ready(z_bf)
    assert float(jnp.max(jnp.abs(proj_bf - proj_ref))) < 0.2
    assert float(jnp.max(jnp.abs(z_bf - z_ref))) < 0.25

    print("KERNEL_OK")
</pallas_src>

<mosaic_0001>
module attributes {stable_mosaic.version = 11 : i64} {
  func.func @_cdcl_fused_kernel(%arg0: i32, %arg1: memref<1x18x18x3xf32, #tpu.memory_space<vmem>>, %arg2: memref<9x3x16xf32, #tpu.memory_space<vmem>>, %arg3: memref<1x16xf32, #tpu.memory_space<vmem>>, %arg4: memref<9x16x32xf32, #tpu.memory_space<vmem>>, %arg5: memref<1x32xf32, #tpu.memory_space<vmem>>, %arg6: memref<32x128xf32, #tpu.memory_space<vmem>>, %arg7: memref<1x128xf32, #tpu.memory_space<vmem>>, %arg8: memref<64x256xf32, #tpu.memory_space<vmem>>, %arg9: memref<32x32xf32, #tpu.memory_space<vmem>>, %arg10: memref<1x32xf32, #tpu.memory_space<vmem>>, %arg11: memref<32x128xf32, #tpu.memory_space<vmem>>, %arg12: memref<1x128xf32, #tpu.memory_space<vmem>>, %arg13: memref<1x256x128xf32, #tpu.memory_space<vmem>>, %arg14: memref<1x64x128xf32, #tpu.memory_space<vmem>>, %arg15: memref<18x18x16xf32, #tpu.memory_space<vmem>>) attributes {dimension_semantics = [#tpu.dimension_semantics<parallel>], iteration_bounds = array<i64: 2>, scalar_prefetch = 0 : i64, scratch_operands = 1 : i64, tpu.core_type = #tpu.core_type<tc>, window_params = [{transform_indices = @transform_0, window_bounds = array<i64: 1, 18, 18, 3>}, {pipeline_mode = #tpu.pipeline_mode<synchronous>, transform_indices = @transform_1, window_bounds = array<i64: 9, 3, 16>}, {pipeline_mode = #tpu.pipeline_mode<synchronous>, transform_indices = @transform_2, window_bounds = array<i64: 1, 16>}, {pipeline_mode = #tpu.pipeline_mode<synchronous>, transform_indices = @transform_3, window_bounds = array<i64: 9, 16, 32>}, {pipeline_mode = #tpu.pipeline_mode<synchronous>, transform_indices = @transform_4, window_bounds = array<i64: 1, 32>}, {pipeline_mode = #tpu.pipeline_mode<synchronous>, transform_indices = @transform_5, window_bounds = array<i64: 32, 128>}, {pipeline_mode = #tpu.pipeline_mode<synchronous>, transform_indices = @transform_6, window_bounds = array<i64: 1, 128>}, {pipeline_mode = #tpu.pipeline_mode<synchronous>, transform_indices = @transform_7, window_bounds = array<i64: 64, 256>}, {pipeline_mode = #tpu.pipeline_mode<synchronous>, transform_indices = @transform_8, window_bounds = array<i64: 32, 32>}, {pipeline_mode = #tpu.pipeline_mode<synchronous>, transform_indices = @transform_9, window_bounds = array<i64: 1, 32>}, {pipeline_mode = #tpu.pipeline_mode<synchronous>, transform_indices = @transform_10, window_bounds = array<i64: 32, 128>}, {pipeline_mode = #tpu.pipeline_mode<synchronous>, transform_indices = @transform_11, window_bounds = array<i64: 1, 128>}, {transform_indices = @transform_12, window_bounds = array<i64: 1, 256, 128>}, {transform_indices = @transform_13, window_bounds = array<i64: 1, 64, 128>}]} {
    %cst = arith.constant 0.000000e+00 : f32
    %0 = vector.broadcast %cst : f32 to vector<256x16xf32>
    %c0 = arith.constant 0 : index
    %c0_0 = arith.constant 0 : index
    %c0_1 = arith.constant 0 : index
    %c0_2 = arith.constant 0 : index
    %1 = vector.load %arg1[%c0, %c0_0, %c0_1, %c0_2] : memref<1x18x18x3xf32, #tpu.memory_space<vmem>>, vector<1x16x16x3xf32>
    %2 = vector.shape_cast %1 : vector<1x16x16x3xf32> to vector<16x16x3xf32>
    %3 = vector.shape_cast %2 : vector<16x16x3xf32> to vector<256x3xf32>
    %c0_3 = arith.constant 0 : index
    %c0_4 = arith.constant 0 : index
    %c0_5 = arith.constant 0 : index
    %4 = vector.load %arg2[%c0_3, %c0_4, %c0_5] : memref<9x3x16xf32, #tpu.memory_space<vmem>>, vector<1x3x16xf32>
    %5 = vector.shape_cast %4 : vector<1x3x16xf32> to vector<3x16xf32>
    %cst_6 = arith.constant dense<0.000000e+00> : vector<256x16xf32>
    %6 = tpu.matmul %3, %5, %cst_6 {dimension_numbers = #tpu.dot_dimension_numbers<[1], [0], [0], [1], [0, 0, 1, 1], [], []>} : vector<256x3xf32>, vector<3x16xf32>, vector<256x16xf32> -> vector<256x16xf32>
    %7 = arith.addf %0, %6 : vector<256x16xf32>
    %c0_7 = arith.constant 0 : index
    %c0_8 = arith.constant 0 : index
    %c1 = arith.constant 1 : index
    %c0_9 = arith.constant 0 : index
    %8 = vector.load %arg1[%c0_7, %c0_8, %c1, %c0_9] : memref<1x18x18x3xf32, #tpu.memory_space<vmem>>, vector<1x16x16x3xf32>
    %9 = vector.shape_cast %8 : vector<1x16x16x3xf32> to vector<16x16x3xf32>
    %10 = vector.shape_cast %9 : vector<16x16x3xf32> to vector<256x3xf32>
    %c1_10 = arith.constant 1 : index
    %c0_11 = arith.constant 0 : index
    %c0_12 = arith.constant 0 : index
    %11 = vector.load %arg2[%c1_10, %c0_11, %c0_12] : memref<9x3x16xf32, #tpu.memory_space<vmem>>, vector<1x3x16xf32>
    %12 = vector.shape_cast %11 : vector<1x3x16xf32> to vector<3x16xf32>
    %cst_13 = arith.constant dense<0.000000e+00> : vector<256x16xf32>
    %13 = tpu.matmul %10, %12, %cst_13 {dimension_numbers = #tpu.dot_dimension_numbers<[1], [0], [0], [1], [0, 0, 1, 1], [], []>} : vector<256x3xf32>, vector<3x16xf32>, vector<256x16xf32> -> vector<256x16xf32>
    %14 = arith.addf %7, %13 : vector<256x16xf32>
    %c0_14 = arith.constant 0 : index
    %c0_15 = arith.constant 0 : index
    %c2 = arith.constant 2 : index
    %c0_16 = arith.constant 0 : index
    %15 = vector.load %arg1[%c0_14, %c0_15, %c2, %c0_16] : memref<1x18x18x3xf32, #tpu.memory_space<vmem>>, vector<1x16x16x3xf32>
    %16 = vector.shape_cast %15 : vector<1x16x16x3xf32> to vector<16x16x3xf32>
    %17 = vector.shape_cast %16 : vector<16x16x3xf32> to vector<256x3xf32>
    %c2_17 = arith.constant 2 : index
    %c0_18 = arith.constant 0 : index
    %c0_19 = arith.constant 0 : index
    %18 = vector.load %arg2[%c2_17, %c0_18, %c0_19] : memref<9x3x16xf32, #tpu.memory_space<vmem>>, vector<1x3x16xf32>
    %19 = vector.shape_cast %18 : vector<1x3x16xf32> to vector<3x16xf32>
    %cst_20 = arith.constant dense<0.000000e+00> : vector<256x16xf32>
    %20 = tpu.matmul %17, %19, %cst_20 {dimension_numbers = #tpu.dot_dimension_numbers<[1], [0], [0], [1], [0, 0, 1, 1], [], []>} : vector<256x3xf32>, vector<3x16xf32>, vector<256x16xf32> -> vector<256x16xf32>
    %21 = arith.addf %14, %20 : vector<256x16xf32>
    %c0_21 = arith.constant 0 : index
    %c1_22 = arith.constant 1 : index
    %c0_23 = arith.constant 0 : index
    %c0_24 = arith.constant 0 : index
    %22 = vector.load %arg1[%c0_21, %c1_22, %c0_23, %c0_24] : memref<1x18x18x3xf32, #tpu.memory_space<vmem>>, vector<1x16x16x3xf32>
    %23 = vector.shape_cast %22 : vector<1x16x16x3xf32> to vector<16x16x3xf32>
    %24 = vector.shape_cast %23 : vector<16x16x3xf32> to vector<256x3xf32>
    %c3 = arith.constant 3 : index
    %c0_25 = arith.constant 0 : index
    %c0_26 = arith.constant 0 : index
    %25 = vector.load %arg2[%c3, %c0_25, %c0_26] : memref<9x3x16xf32, #tpu.memory_space<vmem>>, vector<1x3x16xf32>
    %26 = vector.shape_cast %25 : vector<1x3x16xf32> to vector<3x16xf32>
    %cst_27 = arith.constant dense<0.000000e+00> : vector<256x16xf32>
    %27 = tpu.matmul %24, %26, %cst_27 {dimension_numbers = #tpu.dot_dimension_numbers<[1], [0], [0], [1], [0, 0, 1, 1], [], []>} : vector<256x3xf32>, vector<3x16xf32>, vector<256x16xf32> -> vector<256x16xf32>
    %28 = arith.addf %21, %27 : vector<256x16xf32>
    %c0_28 = arith.constant 0 : index
    %c1_29 = arith.constant 1 : index
    %c1_30 = arith.constant 1 : index
    %c0_31 = arith.constant 0 : index
    %29 = vector.load %arg1[%c0_28, %c1_29, %c1_30, %c0_31] : memref<1x18x18x3xf32, #tpu.memory_space<vmem>>, vector<1x16x16x3xf32>
    %30 = vector.shape_cast %29 : vector<1x16x16x3xf32> to vector<16x16x3xf32>
    %31 = vector.shape_cast %30 : vector<16x16x3xf32> to vector<256x3xf32>
    %c4 = arith.constant 4 : index
    %c0_32 = arith.constant 0 : index
    %c0_33 = arith.constant 0 : index
    %32 = vector.load %arg2[%c4, %c0_32, %c0_33] : memref<9x3x16xf32, #tpu.memory_space<vmem>>, vector<1x3x16xf32>
    %33 = vector.shape_cast %32 : vector<1x3x16xf32> to vector<3x16xf32>
    %cst_34 = arith.constant dense<0.000000e+00> : vector<256x16xf32>
    %34 = tpu.matmul %31, %33, %cst_34 {dimension_numbers = #tpu.dot_dimension_numbers<[1], [0], [0], [1], [0, 0, 1, 1], [], []>} : vector<256x3xf32>, vector<3x16xf32>, vector<256x16xf32> -> vector<256x16xf32>
    %35 = arith.addf %28, %34 : vector<256x16xf32>
    %c0_35 = arith.constant 0 : index
    %c1_36 = arith.constant 1 : index
    %c2_37 = arith.constant 2 : index
    %c0_38 = arith.constant 0 : index
    %36 = vector.load %arg1[%c0_35, %c1_36, %c2_37, %c0_38] : memref<1x18x18x3xf32, #tpu.memory_space<vmem>>, vector<1x16x16x3xf32>
    %37 = vector.shape_cast %36 : vector<1x16x16x3xf32> to vector<16x16x3xf32>
    %38 = vector.shape_cast %37 : vector<16x16x3xf32> to vector<256x3xf32>
    %c5 = arith.constant 5 : index
    %c0_39 = arith.constant 0 : index
    %c0_40 = arith.constant 0 : index
    %39 = vector.load %arg2[%c5, %c0_39, %c0_40] : memref<9x3x16xf32, #tpu.memory_space<vmem>>, vector<1x3x16xf32>
    %40 = vector.shape_cast %39 : vector<1x3x16xf32> to vector<3x16xf32>
    %cst_41 = arith.constant dense<0.000000e+00> : vector<256x16xf32>
    %41 = tpu.matmul %38, %40, %cst_41 {dimension_numbers = #tpu.dot_dimension_numbers<[1], [0], [0], [1], [0, 0, 1, 1], [], []>} : vector<256x3xf32>, vector<3x16xf32>, vector<256x16xf32> -> vector<256x16xf32>
    %42 = arith.addf %35, %41 : vector<256x16xf32>
    %c0_42 = arith.constant 0 : index
    %c2_43 = arith.constant 2 : index
    %c0_44 = arith.constant 0 : index
    %c0_45 = arith.constant 0 : index
    %43 = vector.load %arg1[%c0_42, %c2_43, %c0_44, %c0_45] : memref<1x18x18x3xf32, #tpu.memory_space<vmem>>, vector<1x16x16x3xf32>
    %44 = vector.shape_cast %43 : vector<1x16x16x3xf32> to vector<16x16x3xf32>
    %45 = vector.shape_cast %44 : vector<16x16x3xf32> to vector<256x3xf32>
    %c6 = arith.constant 6 : index
    %c0_46 = arith.constant 0 : index
    %c0_47 = arith.constant 0 : index
    %46 = vector.load %arg2[%c6, %c0_46, %c0_47] : memref<9x3x16xf32, #tpu.memory_space<vmem>>, vector<1x3x16xf32>
    %47 = vector.shape_cast %46 : vector<1x3x16xf32> to vector<3x16xf32>
    %cst_48 = arith.constant dense<0.000000e+00> : vector<256x16xf32>
    %48 = tpu.matmul %45, %47, %cst_48 {dimension_numbers = #tpu.dot_dimension_numbers<[1], [0], [0], [1], [0, 0, 1, 1], [], []>} : vector<256x3xf32>, vector<3x16xf32>, vector<256x16xf32> -> vector<256x16xf32>
    %49 = arith.addf %42, %48 : vector<256x16xf32>
    %c0_49 = arith.constant 0 : index
    %c2_50 = arith.constant 2 : index
    %c1_51 = arith.constant 1 : index
    %c0_52 = arith.constant 0 : index
    %50 = vector.load %arg1[%c0_49, %c2_50, %c1_51, %c0_52] : memref<1x18x18x3xf32, #tpu.memory_space<vmem>>, vector<1x16x16x3xf32>
    %51 = vector.shape_cast %50 : vector<1x16x16x3xf32> to vector<16x16x3xf32>
    %52 = vector.shape_cast %51 : vector<16x16x3xf32> to vector<256x3xf32>
    %c7 = arith.constant 7 : index
    %c0_53 = arith.constant 0 : index
    %c0_54 = arith.constant 0 : index
    %53 = vector.load %arg2[%c7, %c0_53, %c0_54] : memref<9x3x16xf32, #tpu.memory_space<vmem>>, vector<1x3x16xf32>
    %54 = vector.shape_cast %53 : vector<1x3x16xf32> to vector<3x16xf32>
    %cst_55 = arith.constant dense<0.000000e+00> : vector<256x16xf32>
    %55 = tpu.matmul %52, %54, %cst_55 {dimension_numbers = #tpu.dot_dimension_numbers<[1], [0], [0], [1], [0, 0, 1, 1], [], []>} : vector<256x3xf32>, vector<3x16xf32>, vector<256x16xf32> -> vector<256x16xf32>
    %56 = arith.addf %49, %55 : vector<256x16xf32>
    %c0_56 = arith.constant 0 : index
    %c2_57 = arith.constant 2 : index
    %c2_58 = arith.constant 2 : index
    %c0_59 = arith.constant 0 : index
    %57 = vector.load %arg1[%c0_56, %c2_57, %c2_58, %c0_59] : memref<1x18x18x3xf32, #tpu.memory_space<vmem>>, vector<1x16x16x3xf32>
    %58 = vector.shape_cast %57 : vector<1x16x16x3xf32> to vector<16x16x3xf32>
    %59 = vector.shape_cast %58 : vector<16x16x3xf32> to vector<256x3xf32>
    %c8 = arith.constant 8 : index
    %c0_60 = arith.constant 0 : index
    %c0_61 = arith.constant 0 : index
    %60 = vector.load %arg2[%c8, %c0_60, %c0_61] : memref<9x3x16xf32, #tpu.memory_space<vmem>>, vector<1x3x16xf32>
    %61 = vector.shape_cast %60 : vector<1x3x16xf32> to vector<3x16xf32>
    %cst_62 = arith.constant dense<0.000000e+00> : vector<256x16xf32>
    %62 = tpu.matmul %59, %61, %cst_62 {dimension_numbers = #tpu.dot_dimension_numbers<[1], [0], [0], [1], [0, 0, 1, 1], [], []>} : vector<256x3xf32>, vector<3x16xf32>, vector<256x16xf32> -> vector<256x16xf32>
    %63 = arith.addf %56, %62 : vector<256x16xf32>
    %c0_63 = arith.constant 0 : index
    %c0_64 = arith.constant 0 : index
    %64 = vector.load %arg3[%c0_63, %c0_64] : memref<1x16xf32, #tpu.memory_space<vmem>>, vector<1x16xf32>
    %65 = vector.broadcast %64 : vector<1x16xf32> to vector<256x16xf32>
    %66 = arith.addf %63, %65 : vector<256x16xf32>
    %cst_65 = arith.constant 0.000000e+00 : f32
    %67 = vector.broadcast %cst_65 : f32 to vector<256x16xf32>
    %68 = arith.maximumf %66, %67 : vector<256x16xf32>
    %cst_66 = arith.constant 0.000000e+00 : f32
    %69 = vector.broadcast %cst_66 : f32 to vector<18x18x16xf32>
    %c0_67 = arith.constant 0 : index
    %c0_68 = arith.constant 0 : index
    %c0_69 = arith.constant 0 : index
    %70 = vector.load %arg15[%c0_67, %c0_68, %c0_69] : memref<18x18x16xf32, #tpu.memory_space<vmem>>, vector<18x18x16xf32>
    tpu.vector_store %arg15[%c0_67, %c0_68, %c0_69], %69 {strides = array<i32>} : memref<18x18x16xf32, #tpu.memory_space<vmem>>, vector<18x18x16xf32>,
    %71 = vector.shape_cast %68 : vector<256x16xf32> to vector<16x16x16xf32>
    %c1_70 = arith.constant 1 : index
    %c1_71 = arith.constant 1 : index
    %c0_72 = arith.constant 0 : index
    %72 = vector.load %arg15[%c1_70, %c1_71, %c0_72] : memref<18x18x16xf32, #tpu.memory_space<vmem>>, vector<16x16x16xf32>
    tpu.vector_store %arg15[%c1_70, %c1_71, %c0_72], %71 {strides = array<i32>} : memref<18x18x16xf32, #tpu.memory_space<vmem>>, vector<16x16x16xf32>,
    %cst_73 = arith.constant 0.000000e+00 : f32
    %73 = vector.broadcast %cst_73 : f32 to vector<256x32xf32>
    %c0_74 = arith.constant 0 : index
    %c0_75 = arith.constant 0 : index
    %c0_76 = arith.constant 0 : index
    %74 = vector.load %arg15[%c0_74, %c0_75, %c0_76] : memref<18x18x16xf32, #tpu.memory_space<vmem>>, vector<16x16x16xf32>
    %75 = vector.shape_cast %74 : vector<16x16x16xf32> to vector<256x16xf32>
    %c0_77 = arith.constant 0 : index
    %c0_78 = arith.constant 0 : index
    %c0_79 = arith.constant 0 : index
    %76 = vector.load %arg4[%c0_77, %c0_78, %c0_79] : memref<9x16x32xf32, #tpu.memory_space<vmem>>, vector<1x16x32xf32>
    %77 = vector.shape_cast %76 : vector<1x16x32xf32> to vector<16x32xf32>
    %cst_80 = arith.constant dense<0.000000e+00> : vector<256x32xf32>
    %78 = tpu.matmul %75, %77, %cst_80 {dimension_numbers = #tpu.dot_dimension_numbers<[1], [0], [0], [1], [0, 0, 1, 1], [], []>} : vector<256x16xf32>, vector<16x32xf32>, vector<256x32xf32> -> vector<256x32xf32>
    %79 = arith.addf %73, %78 : vector<256x32xf32>
    %c0_81 = arith.constant 0 : index
    %c1_82 = arith.constant 1 : index
    %c0_83 = arith.constant 0 : index
    %80 = vector.load %arg15[%c0_81, %c1_82, %c0_83] : memref<18x18x16xf32, #tpu.memory_space<vmem>>, vector<16x16x16xf32>
    %81 = vector.shape_cast %80 : vector<16x16x16xf32> to vector<256x16xf32>
    %c1_84 = arith.constant 1 : index
    %c0_85 = arith.constant 0 : index
    %c0_86 = arith.constant 0 : index
    %82 = vector.load %arg4[%c1_84, %c0_85, %c0_86] : memref<9x16x32xf32, #tpu.memory_space<vmem>>, vector<1x16x32xf32>
    %83 = vector.shape_cast %82 : vector<1x16x32xf32> to vector<16x32xf32>
    %cst_87 = arith.constant dense<0.000000e+00> : vector<256x32xf32>
    %84 = tpu.matmul %81, %83, %cst_87 {dimension_numbers = #tpu.dot_dimension_numbers<[1], [0], [0], [1], [0, 0, 1, 1], [], []>} : vector<256x16xf32>, vector<16x32xf32>, vector<256x32xf32> -> vector<256x32xf32>
    %85 = arith.addf %79, %84 : vector<256x32xf32>
    %c0_88 = arith.constant 0 : index
    %c2_89 = arith.constant 2 : index
    %c0_90 = arith.constant 0 : index
    %86 = vector.load %arg15[%c0_88, %c2_89, %c0_90] : memref<18x18x16xf32, #tpu.memory_space<vmem>>, vector<16x16x16xf32>
    %87 = vector.shape_cast %86 : vector<16x16x16xf32> to vector<256x16xf32>
    %c2_91 = arith.constant 2 : index
    %c0_92 = arith.constant 0 : index
    %c0_93 = arith.constant 0 : index
    %88 = vector.load %arg4[%c2_91, %c0_92, %c0_93] : memref<9x16x32xf32, #tpu.memory_space<vmem>>, vector<1x16x32xf32>
    %89 = vector.shape_cast %88 : vector<1x16x32xf32> to vector<16x32xf32>
    %cst_94 = arith.constant dense<0.000000e+00> : vector<256x32xf32>
    %90 = tpu.matmul %87, %89, %cst_94 {dimension_numbers = #tpu.dot_dimension_numbers<[1], [0], [0], [1], [0, 0, 1, 1], [], []>} : vector<256x16xf32>, vector<16x32xf32>, vector<256x32xf32> -> vector<256x32xf32>
    %91 = arith.addf %85, %90 : vector<256x32xf32>
    %c1_95 = arith.constant 1 : index
    %c0_96 = arith.constant 0 : index
    %c0_97 = arith.constant 0 : index
    %92 = vector.load %arg15[%c1_95, %c0_96, %c0_97] : memref<18x18x16xf32, #tpu.memory_space<vmem>>, vector<16x16x16xf32>
    %93 = vector.shape_cast %92 : vector<16x16x16xf32> to vector<256x16xf32>
    %c3_98 = arith.constant 3 : index
    %c0_99 = arith.constant 0 : index
    %c0_100 = arith.constant 0 : index
    %94 = vector.load %arg4[%c3_98, %c0_99, %c0_100] : memref<9x16x32xf32, #tpu.memory_space<vmem>>, vector<1x16x32xf32>
    %95 = vector.shape_cast %94 : vector<1x16x32xf32> to vector<16x32xf32>
    %cst_101 = arith.constant dense<0.000000e+00> : vector<256x32xf32>
    %96 = tpu.matmul %93, %95, %cst_101 {dimension_numbers = #tpu.dot_dimension_numbers<[1], [0], [0], [1], [0, 0, 1, 1], [], []>} : vector<256x16xf32>, vector<16x32xf32>, vector<256x32xf32> -> vector<256x32xf32>
    %97 = arith.addf %91, %96 : vector<256x32xf32>
    %c1_102 = arith.constant 1 : index
    %c1_103 = arith.constant 1 : index
    %c0_104 = arith.constant 0 : index
    %98 = vector.load %arg15[%c1_102, %c1_103, %c0_104] : memref<18x18x16xf32, #tpu.memory_space<vmem>>, vector<16x16x16xf32>
    %99 = vector.shape_cast %98 : vector<16x16x16xf32> to vector<256x16xf32>
    %c4_105 = arith.constant 4 : index
    %c0_106 = arith.constant 0 : index
    %c0_107 = arith.constant 0 : index
    %100 = vector.load %arg4[%c4_105, %c0_106, %c0_107] : memref<9x16x32xf32, #tpu.memory_space<vmem>>, vector<1x16x32xf32>
    %101 = vector.shape_cast %100 : vector<1x16x32xf32> to vector<16x32xf32>
    %cst_108 = arith.constant dense<0.000000e+00> : vector<256x32xf32>
    %102 = tpu.matmul %99, %101, %cst_108 {dimension_numbers = #tpu.dot_dimension_numbers<[1], [0], [0], [1], [0, 0, 1, 1], [], []>} : vector<256x16xf32>, vector<16x32xf32>, vector<256x32xf32> -> vector<256x32xf32>
    %103 = arith.addf %97, %102 : vector<256x32xf32>
    %c1_109 = arith.constant 1 : index
    %c2_110 = arith.constant 2 : index
    %c0_111 = arith.constant 0 : index
    %104 = vector.load %arg15[%c1_109, %c2_110, %c0_111] : memref<18x18x16xf32, #tpu.memory_space<vmem>>, vector<16x16x16xf32>
    %105 = vector.shape_cast %104 : vector<16x16x16xf32> to vector<256x16xf32>
    %c5_112 = arith.constant 5 : index
    %c0_113 = arith.constant 0 : index
    %c0_114 = arith.constant 0 : index
    %106 = vector.load %arg4[%c5_112, %c0_113, %c0_114] : memref<9x16x32xf32, #tpu.memory_space<vmem>>, vector<1x16x32xf32>
    %107 = vector.shape_cast %106 : vector<1x16x32xf32> to vector<16x32xf32>
    %cst_115 = arith.constant dense<0.000000e+00> : vector<256x32xf32>
    %108 = tpu.matmul %105, %107, %cst_115 {dimension_numbers = #tpu.dot_dimension_numbers<[1], [0], [0], [1], [0, 0, 1, 1], [], []>} : vector<256x16xf32>, vector<16x32xf32>, vector<256x32xf32> -> vector<256x32xf32>
    %109 = arith.addf %103, %108 : vector<256x32xf32>
    %c2_116 = arith.constant 2 : index
    %c0_117 = arith.constant 0 : index
    %c0_118 = arith.constant 0 : index
    %110 = vector.load %arg15[%c2_116, %c0_117, %c0_118] : memref<18x18x16xf32, #tpu.memory_space<vmem>>, vector<16x16x16xf32>
    %111 = vector.shape_cast %110 : vector<16x16x16xf32> to vector<256x16xf32>
    %c6_119 = arith.constant 6 : index
    %c0_120 = arith.constant 0 : index
    %c0_121 = arith.constant 0 : index
    %112 = vector.load %arg4[%c6_119, %c0_120, %c0_121] : memref<9x16x32xf32, #tpu.memory_space<vmem>>, vector<1x16x32xf32>
    %113 = vector.shape_cast %112 : vector<1x16x32xf32> to vector<16x32xf32>
    %cst_122 = arith.constant dense<0.000000e+00> : vector<256x32xf32>
    %114 = tpu.matmul %111, %113, %cst_122 {dimension_numbers = #tpu.dot_dimension_numbers<[1], [0], [0], [1], [0, 0, 1, 1], [], []>} : vector<256x16xf32>, vector<16x32xf32>, vector<256x32xf32> -> vector<256x32xf32>
    %115 = arith.addf %109, %114 : vector<256x32xf32>
    %c2_123 = arith.constant 2 : index
    %c1_124 = arith.constant 1 : index
    %c0_125 = arith.constant 0 : index
    %116 = vector.load %arg15[%c2_123, %c1_124, %c0_125] : memref<18x18x16xf32, #tpu.memory_space<vmem>>, vector<16x16x16xf32>
    %117 = vector.shape_cast %116 : vector<16x16x16xf32> to vector<256x16xf32>
    %c7_126 = arith.constant 7 : index
    %c0_127 = arith.constant 0 : index
    %c0_128 = arith.constant 0 : index
    %118 = vector.load %arg4[%c7_126, %c0_127, %c0_128] : memref<9x16x32xf32, #tpu.memory_space<vmem>>, vector<1x16x32xf32>
    %119 = vector.shape_cast %118 : vector<1x16x32xf32> to vector<16x32xf32>
    %cst_129 = arith.constant dense<0.000000e+00> : vector<256x32xf32>
    %120 = tpu.matmul %117, %119, %cst_129 {dimension_numbers = #tpu.dot_dimension_numbers<[1], [0], [0], [1], [0, 0, 1, 1], [], []>} : vector<256x16xf32>, vector<16x32xf32>, vector<256x32xf32> -> vector<256x32xf32>
    %121 = arith.addf %115, %120 : vector<256x32xf32>
    %c2_130 = arith.constant 2 : index
    %c2_131 = arith.constant 2 : index
    %c0_132 = arith.constant 0 : index
    %122 = vector.load %arg15[%c2_130, %c2_131, %c0_132] : memref<18x18x16xf32, #tpu.memory_space<vmem>>, vector<16x16x16xf32>
    %123 = vector.shape_cast %122 : vector<16x16x16xf32> to vector<256x16xf32>
    %c8_133 = arith.constant 8 : index
    %c0_134 = arith.constant 0 : index
    %c0_135 = arith.constant 0 : index
    %124 = vector.load %arg4[%c8_133, %c0_134, %c0_135] : memref<9x16x32xf32, #tpu.memory_space<vmem>>, vector<1x16x32xf32>
    %125 = vector.shape_cast %124 : vector<1x16x32xf32> to vector<16x32xf32>
    %cst_136 = arith.constant dense<0.000000e+00> : vector<256x32xf32>
    %126 = tpu.matmul %123, %125, %cst_136 {dimension_numbers = #tpu.dot_dimension_numbers<[1], [0], [0], [1], [0, 0, 1, 1], [], []>} : vector<256x16xf32>, vector<16x32xf32>, vector<256x32xf32> -> vector<256x32xf32>
    %127 = arith.addf %121, %126 : vector<256x32xf32>
    %c0_137 = arith.constant 0 : index
    %c0_138 = arith.constant 0 : index
    %128 = vector.load %arg5[%c0_137, %c0_138] : memref<1x32xf32, #tpu.memory_space<vmem>>, vector<1x32xf32>
    %129 = vector.broadcast %128 : vector<1x32xf32> to vector<256x32xf32>
    %130 = arith.addf %127, %129 : vector<256x32xf32>
    %cst_139 = arith.constant 0.000000e+00 : f32
    %131 = vector.broadcast %cst_139 : f32 to vector<256x32xf32>
    %132 = arith.maximumf %130, %131 : vector<256x32xf32>
    %c0_140 = arith.constant 0 : index
    %c0_141 = arith.constant 0 : index
    %133 = vector.load %arg6[%c0_140, %c0_141] : memref<32x128xf32, #tpu.memory_space<vmem>>, vector<32x128xf32>
    %cst_142 = arith.constant dense<0.000000e+00> : vector<256x128xf32>
    %134 = tpu.matmul %132, %133, %cst_142 {dimension_numbers = #tpu.dot_dimension_numbers<[1], [0], [0], [1], [0, 0, 1, 1], [], []>} : vector<256x32xf32>, vector<32x128xf32>, vector<256x128xf32> -> vector<256x128xf32>
    %c0_143 = arith.constant 0 : index
    %c0_144 = arith.constant 0 : index
    %135 = vector.load %arg7[%c0_143, %c0_144] : memref<1x128xf32, #tpu.memory_space<vmem>>, vector<1x128xf32>
    %136 = vector.broadcast %135 : vector<1x128xf32> to vector<256x128xf32>
    %137 = arith.addf %134, %136 : vector<256x128xf32>
    %c0_145 = arith.constant 0 : index
    %c0_146 = arith.constant 0 : index
    %c0_147 = arith.constant 0 : index
    %138 = vector.load %arg13[%c0_145, %c0_146, %c0_147] : memref<1x256x128xf32, #tpu.memory_space<vmem>>, vector<1x256x128xf32>
    %139 = vector.shape_cast %138 : vector<1x256x128xf32> to vector<256x128xf32>
    %140 = vector.shape_cast %137 : vector<256x128xf32> to vector<1x256x128xf32>
    tpu.vector_store %arg13[%c0_145, %c0_146, %c0_147], %140 {strides = array<i32>} : memref<1x256x128xf32, #tpu.memory_space<vmem>>, vector<1x256x128xf32>,
    %c0_148 = arith.constant 0 : index
    %c0_149 = arith.constant 0 : index
    %141 = vector.load %arg8[%c0_148, %c0_149] : memref<64x256xf32, #tpu.memory_space<vmem>>, vector<64x256xf32>
    %cst_150 = arith.constant dense<0.000000e+00> : vector<64x32xf32>
    %142 = tpu.matmul %141, %132, %cst_150 {dimension_numbers = #tpu.dot_dimension_numbers<[1], [0], [0], [1], [0, 0, 1, 1], [], []>} : vector<64x256xf32>, vector<256x32xf32>, vector<64x32xf32> -> vector<64x32xf32>
    %c0_151 = arith.constant 0 : index
    %c0_152 = arith.constant 0 : index
    %143 = vector.load %arg9[%c0_151, %c0_152] : memref<32x32xf32, #tpu.memory_space<vmem>>, vector<32x32xf32>
    %cst_153 = arith.constant dense<0.000000e+00> : vector<64x32xf32>
    %144 = tpu.matmul %142, %143, %cst_153 {dimension_numbers = #tpu.dot_dimension_numbers<[1], [0], [0], [1], [0, 0, 1, 1], [], []>} : vector<64x32xf32>, vector<32x32xf32>, vector<64x32xf32> -> vector<64x32xf32>
    %c0_154 = arith.constant 0 : index
    %c0_155 = arith.constant 0 : index
    %145 = vector.load %arg10[%c0_154, %c0_155] : memref<1x32xf32, #tpu.memory_space<vmem>>, vector<1x32xf32>
    %146 = vector.broadcast %145 : vector<1x32xf32> to vector<64x32xf32>
    %147 = arith.addf %144, %146 : vector<64x32xf32>
    %cst_156 = arith.constant 0.000000e+00 : f32
    %148 = vector.broadcast %cst_156 : f32 to vector<64x32xf32>
    %149 = arith.maximumf %147, %148 : vector<64x32xf32>
    %c0_157 = arith.constant 0 : index
    %c0_158 = arith.constant 0 : index
    %150 = vector.load %arg11[%c0_157, %c0_158] : memref<32x128xf32, #tpu.memory_space<vmem>>, vector<32x128xf32>
    %cst_159 = arith.constant dense<0.000000e+00> : vector<64x128xf32>
    %151 = tpu.matmul %149, %150, %cst_159 {dimension_numbers = #tpu.dot_dimension_numbers<[1], [0], [0], [1], [0, 0, 1, 1], [], []>} : vector<64x32xf32>, vector<32x128xf32>, vector<64x128xf32> -> vector<64x128xf32>
    %c0_160 = arith.constant 0 : index
    %c0_161 = arith.constant 0 : index
    %152 = vector.load %arg12[%c0_160, %c0_161] : memref<1x128xf32, #tpu.memory_space<vmem>>, vector<1x128xf32>
    %153 = vector.broadcast %152 : vector<1x128xf32> to vector<64x128xf32>
    %154 = arith.addf %151, %153 : vector<64x128xf32>
    %155 = arith.mulf %154, %154 : vector<64x128xf32>
    %cst_162 = arith.constant dense<0.000000e+00> : vector<64xf32>
    %156 = vector.multi_reduction <add>, %155, %cst_162 [1] : vector<64x128xf32> to vector<64xf32>
    %157 = vector.shape_cast %156 : vector<64xf32> to vector<64x1xf32>
    %cst_163 = arith.constant 1.000000e-24 : f32
    %158 = vector.broadcast %cst_163 : f32 to vector<64x1xf32>
    %159 = arith.maximumf %157, %158 : vector<64x1xf32>
    %160 = math.rsqrt %159 : vector<64x1xf32>
    %161 = vector.broadcast %160 : vector<64x1xf32> to vector<64x128xf32>
    %162 = arith.mulf %154, %161 : vector<64x128xf32>
    %c0_164 = arith.constant 0 : index
    %c0_165 = arith.constant 0 : index
    %c0_166 = arith.constant 0 : index
    %163 = vector.load %arg14[%c0_164, %c0_165, %c0_166] : memref<1x64x128xf32, #tpu.memory_space<vmem>>, vector<1x64x128xf32>
    %164 = vector.shape_cast %163 : vector<1x64x128xf32> to vector<64x128xf32>
    %165 = vector.shape_cast %162 : vector<64x128xf32> to vector<1x64x128xf32>
    tpu.vector_store %arg14[%c0_164, %c0_165, %c0_166], %165 {strides = array<i32>} : memref<1x64x128xf32, #tpu.memory_space<vmem>>, vector<1x64x128xf32>,
    return
  }
  func.func @transform_0(%arg0: i32) -> (i32, i32, i32, i32) {
    %c0_i32 = arith.constant 0 : i32
    %c0_i32_0 = arith.constant 0 : i32
    %c0_i32_1 = arith.constant 0 : i32
    %c0_i32_2 = arith.constant 0 : i32
    return %arg0, %c0_i32, %c0_i32_0, %c0_i32_1 : i32, i32, i32, i32
  }
  func.func @transform_1(%arg0: i32) -> (i32, i32, i32) {
    %c0_i32 = arith.constant 0 : i32
    %c0_i32_0 = arith.constant 0 : i32
    %c0_i32_1 = arith.constant 0 : i32
    %c0_i32_2 = arith.constant 0 : i32
    return %c0_i32, %c0_i32_0, %c0_i32_1 : i32, i32, i32
  }
  func.func @transform_2(%arg0: i32) -> (i32, i32) {
    %c0_i32 = arith.constant 0 : i32
    %c0_i32_0 = arith.constant 0 : i32
    %c0_i32_1 = arith.constant 0 : i32
    return %c0_i32, %c0_i32_0 : i32, i32
  }
  func.func @transform_3(%arg0: i32) -> (i32, i32, i32) {
    %c0_i32 = arith.constant 0 : i32
    %c0_i32_0 = arith.constant 0 : i32
    %c0_i32_1 = arith.constant 0 : i32
    %c0_i32_2 = arith.constant 0 : i32
    return %c0_i32, %c0_i32_0, %c0_i32_1 : i32, i32, i32
  }
  func.func @transform_4(%arg0: i32) -> (i32, i32) {
    %c0_i32 = arith.constant 0 : i32
    %c0_i32_0 = arith.constant 0 : i32
    %c0_i32_1 = arith.constant 0 : i32
    return %c0_i32, %c0_i32_0 : i32, i32
  }
  func.func @transform_5(%arg0: i32) -> (i32, i32) {
    %c0_i32 = arith.constant 0 : i32
    %c0_i32_0 = arith.constant 0 : i32
    %c0_i32_1 = arith.constant 0 : i32
    return %c0_i32, %c0_i32_0 : i32, i32
  }
  func.func @transform_6(%arg0: i32) -> (i32, i32) {
    %c0_i32 = arith.constant 0 : i32
    %c0_i32_0 = arith.constant 0 : i32
    %c0_i32_1 = arith.constant 0 : i32
    return %c0_i32, %c0_i32_0 : i32, i32
  }
  func.func @transform_7(%arg0: i32) -> (i32, i32) {
    %c0_i32 = arith.constant 0 : i32
    %c0_i32_0 = arith.constant 0 : i32
    %c0_i32_1 = arith.constant 0 : i32
    return %c0_i32, %c0_i32_0 : i32, i32
  }
  func.func @transform_8(%arg0: i32) -> (i32, i32) {
    %c0_i32 = arith.constant 0 : i32
    %c0_i32_0 = arith.constant 0 : i32
    %c0_i32_1 = arith.constant 0 : i32
    return %c0_i32, %c0_i32_0 : i32, i32
  }
  func.func @transform_9(%arg0: i32) -> (i32, i32) {
    %c0_i32 = arith.constant 0 : i32
    %c0_i32_0 = arith.constant 0 : i32
    %c0_i32_1 = arith.constant 0 : i32
    return %c0_i32, %c0_i32_0 : i32, i32
  }
  func.func @transform_10(%arg0: i32) -> (i32, i32) {
    %c0_i32 = arith.constant 0 : i32
    %c0_i32_0 = arith.constant 0 : i32
    %c0_i32_1 = arith.constant 0 : i32
    return %c0_i32, %c0_i32_0 : i32, i32
  }
  func.func @transform_11(%arg0: i32) -> (i32, i32) {
    %c0_i32 = arith.constant 0 : i32
    %c0_i32_0 = arith.constant 0 : i32
    %c0_i32_1 = arith.constant 0 : i32
    return %c0_i32, %c0_i32_0 : i32, i32
  }
  func.func @transform_12(%arg0: i32) -> (i32, i32, i32) {
    %c0_i32 = arith.constant 0 : i32
    %c0_i32_0 = arith.constant 0 : i32
    %c0_i32_1 = arith.constant 0 : i32
    return %arg0, %c0_i32, %c0_i32_0 : i32, i32, i32
  }
  func.func @transform_13(%arg0: i32) -> (i32, i32, i32) {
    %c0_i32 = arith.constant 0 : i32
    %c0_i32_0 = arith.constant 0 : i32
    %c0_i32_1 = arith.constant 0 : i32
    return %arg0, %c0_i32, %c0_i32_0 : i32, i32, i32
  }
}

</mosaic_0001>

<bundles_post_ra>
// kernel: tpu_custom_call.1
= control target key start
LH: loop header
LB: loop body
LE: loop exit
PB: predicated region body
PF: predicated region fallthrough
CT: control target
= control target key end

     0   :  { %s14285_s0 = inlined_call_operand.vmem [shape: f32[2,18,18,3], index: 0, kind: input, shape index: {}]   ;;  %s14286_s1 = inlined_call_operand.vmem [shape: f32[9,3,16], index: 1, kind: input, shape index: {}]   ;;  %s14287_s2 = inlined_call_operand.vmem [shape: f32[1,16], index: 2, kind: input, shape index: {}]   ;;  %s14288_s3 = inlined_call_operand.vmem [shape: f32[9,16,32], index: 3, kind: input, shape index: {}]   ;;  %s14289_s4 = inlined_call_operand.vmem [shape: f32[1,32], index: 4, kind: input, shape index: {}]   ;;  %s14290_s5 = inlined_call_operand.vmem [shape: f32[32,128], index: 5, kind: input, shape index: {}]   ;;  %s14291_s6 = inlined_call_operand.vmem [shape: f32[1,128], index: 6, kind: input, shape index: {}]   ;;  %s14292_s7 = inlined_call_operand.vmem [shape: f32[64,256], index: 7, kind: input, shape index: {}]   ;;  %s14293_s8 = inlined_call_operand.vmem [shape: f32[32,32], index: 8, kind: input, shape index: {}]   ;;  %s14294_s9 = inlined_call_operand.vmem [shape: f32[1,32], index: 9, kind: input, shape index: {}]   ;;  %s14295_s10 = inlined_call_operand.vmem [shape: f32[32,128], index: 10, kind: input, shape index: {}]   ;;  %s14296_s11 = inlined_call_operand.vmem [shape: f32[1,128], index: 11, kind: input, shape index: {}]   ;;  %s14297_s12 = inlined_call_operand.hbm [shape: f32[2,256,128], index: 12, kind: output, shape index: {0}]   ;;  %s14298_s13 = inlined_call_operand.hbm [shape: f32[2,64,128], index: 13, kind: output, shape index: {1}]  }
   0x1   :  { %14424 = sst [smem:[#allocation45_spill]] %s14285_s0 }
   0x2   :  { %14425 = sst [smem:[#allocation46_spill]] %s14286_s1 }
   0x3   :  { %14426 = sst [smem:[#allocation47_spill]] %s14287_s2 }
   0x4   :  { %19 = vsyncpa [#allocation4], 0 }
   0x5   :  { %21 = vsyncpa [#allocation4 + $0x1], 0 }
   0x6   :  { %22 = vsyncpa [#allocation6], 0 }
   0x7   :  { %24 = vsyncpa [#allocation6 + $0x1], 0  ;;  %s11960_s25 = smov 0   ;;  %s11962_s26 = smov 0  }
   0x8   :  { %s11964_s27 = smov 0   ;;  %s11966_s28 = smov 0  }
   0x9 LB: > { %s11981_s29 = sadd.s32 4294967295, %s11883_s28   ;;  %s8517_s30 = sadd.s32 4294967294, %s11883_s28   ;;  %s11883_s28 = sphi %s11966_s28, %s14607_s28   ;;  %s11879_s27 = sphi %s11964_s27, %s14606_s27   ;;  %s11875_s26 = sphi %s11962_s26, %s14605_s26   ;;  %s11871_s25 = sphi %s11960_s25, %s14604_s25  }
   0xa   : > { %s11985_s14 = sadd.s32 1, %s11883_s28   ;;  %s294_s15 = sadd.s32 1, %s11879_s27 }
   0xb   : > { %s291_s16 = ssub.s32 %s11883_s28, %s11985_s14  ;;  %p304_p0 = scmp.ne.s32.totalorder %s11879_s27, %s11875_s26 }
   0xc   : > { %p292_p1 = scmp.eq.s32.totalorder %s291_s16, 0  ;;  %p305_p2 = scmp.eq.s32.totalorder %s11981_s29, 1 }
   0xd   : > { %p310_p3 = scmp.ne.s32.totalorder %s11875_s26, %s11871_s25  ;;  %p311_p4 = scmp.eq.s32.totalorder %s8517_s30, 1 }
   0xe   : > { %s11996_s17 = scalar_select %p292_p1, %s11879_s27, %s294_s15  }
   0xf   : > { %p11998_p5 = por %p305_p2, %p304_p0  ;;  %p12002_p6 = por %p311_p4, %p310_p3 }
  0x10   : > { %p8520_p7 = scmp.ge.s32.totalorder %s11883_s28, 1  ;;  %p396_p8 = scmp.lt.s32.totalorder %s11883_s28, 3 }
  0x12   : > { %p397_p9 = pnand %p8520_p7, %p396_p8 }
  0x14   : > { %400 = sbr.rel (%p397_p9) target bundleno = 2416 (0x970), region = 68 }
  0x1b   : > { %s14429_s1 = sld [smem:[#allocation46_spill]]  ;;  %vm614_vm0 = vcmask 1042432   ;;  %p445_p10 = scmp.lt.s32.totalorder %s11981_s29, 1  ;;  %vm517_vm1 = vcmask 23552   ;;  %vm3970_vm2 = vcmask 130048   ;;  %vm3973_vm3 = vcmask 123904  }
  0x1c   : > { %s14430_s0 = sld [smem:[#allocation45_spill]]  ;;  %s14523_s2 = sld [smem:[#allocation47_spill]]  ;;  %vm7569_vm4 = vcmask 261120  }
  0x1d   : > { %s446_s24 = scalar_select %p445_p10, %s11981_s29, 1 }
  0x1e   : > { %s9386_s21 = sshll.u32 %s11981_s29, 12  ;;  %s11886_s16 = smov [#allocation3]  }
  0x1f   : > { %s11725_s30 = smul.u32 432, %s446_s24  ;;  %s14042_s24 = sand.u32 1, %s11875_s26  }
  0x20   : > { %s14182_s23 = scalar_lea.hbm %s14297_s12, %s9386_s21 }
  0x21   : > { %v8524_v0 = vld [vmem:[%s14429_s1 + $0x4] sm:$0x7]  ;;  %v482_v1 = vld [vmem:[%s14429_s1] sm:$0x7]  ;;  %v12033_v5 = vld [vmem:[%s14429_s1 + $0x8] sm:$0x7] }
  0x22   : > { %10107 = vmatprep.subr.msk.mxu0 %vm614_vm0, %v8524_v0  ;;  %s12022_s20 = scalar_lea.vmem %s14430_s0, %s11725_s30  ;;  %v12195_v38 = vld [vmem:[%s14429_s1 + $0xc] sm:$0x7]  ;;  %s8521_s30 = sshll.u32 %s14042_s24, 8 }
  0x23   : > { %10108 = vmatpush3.msk.msra.mxu0 %vm614_vm0, %v8524_v0  ;;  %v483_v2 = vld [vmem:[%s12022_s20 + $0x1] sm:$0xff]  ;;  %v484_v3 = vld [vmem:[%s12022_s20 + $0x9] sm:$0xff]  ;;  %v12027_v4 = vld [vmem:[%s12022_s20 + $0x19] sm:$0xff] }
  0x24   : > { %10157 = vmatprep.subr.msk.mxu0 %vm614_vm0, %v482_v1  ;;  %10109 = vmatprep.mubr.msk.f32.mxu0 %vm517_vm1, %v483_v2  ;;  %v12039_v6 = vld [vmem:[%s12022_s20 + $0x21] sm:$0xff]  ;;  %v12043_v7 = vld [vmem:[%s12022_s20 + $0x31] sm:$0xff]  ;;  %v12052_v8 = vld [vmem:[%s12022_s20 + $0x39] sm:$0xff] }
  0x25   : > { %10110 = vmatmul.mubr.msk.f32.vlgmr.msra.gmra.mrb[0].mxu0 %vm517_vm1, %v484_v3  ;;  %v12055_v9 = vld [vmem:[%s12022_s20 + $0x49] sm:$0xff]  ;;  %v12062_v10 = vld [vmem:[%s12022_s20 + $0x51] sm:$0xff]  ;;  %v12065_v11 = vld [vmem:[%s12022_s20 + $0x61] sm:$0xff] }
  0x26   : > { %10112 = vmatprep.mubr.msk.f32.mxu0 %vm517_vm1, %v12027_v4  ;;  %10158 = vmatpush3.msk.msra.mxu0 %vm614_vm0, %v482_v1  ;;  %v12072_v12 = vld [vmem:[%s12022_s20 + $0x69] sm:$0xff]  ;;  %v12075_v13 = vld [vmem:[%s12022_s20 + $0x79] sm:$0xff]  ;;  %v12082_v14 = vld [vmem:[%s12022_s20 + $0x81] sm:$0xff] }
  0x27   : > { %10207 = vmatprep.subr.msk.mxu0 %vm614_vm0, %v12033_v5  ;;  %v12085_v15 = vld [vmem:[%s12022_s20 + $0x91] sm:$0xff]  ;;  %v12092_v16 = vld [vmem:[%s12022_s20 + $0x99] sm:$0xff]  ;;  %v12095_v17 = vld [vmem:[%s12022_s20 + $0xa9] sm:$0xff] }
  0x28   : > { %v12102_v18 = vld [vmem:[%s12022_s20 + $0xb1] sm:$0xff]  ;;  %v12105_v19 = vld [vmem:[%s12022_s20 + $0xc1] sm:$0xff]  ;;  %v12112_v20 = vld [vmem:[%s12022_s20 + $0xc9] sm:$0xff] }
  0x29   : > { %10113 = vmatmul.mubr.msk.f32.gmra.mrb[2].mxu0 %vm517_vm1, %v12039_v6  ;;  %v12115_v21 = vld [vmem:[%s12022_s20 + $0xd9] sm:$0xff]  ;;  %v12122_v22 = vld [vmem:[%s12022_s20 + $0xe1] sm:$0xff]  ;;  %v12125_v23 = vld [vmem:[%s12022_s20 + $0xf1] sm:$0xff] }
  0x2a   : > { %10115 = vmatprep.mubr.msk.f32.mxu0 %vm517_vm1, %v12043_v7  ;;  %v12132_v24 = vld [vmem:[%s12022_s20 + $0xf9] sm:$0xff]  ;;  %v12135_v25 = vld [vmem:[%s12022_s20 + $0x109] sm:$0xff]  ;;  %v12142_v26 = vld [vmem:[%s12022_s20 + $0x111] sm:$0xff] }
  0x2b   : > { %v12145_v27 = vld [vmem:[%s12022_s20 + $0x121] sm:$0xff]  ;;  %v12152_v28 = vld [vmem:[%s12022_s20 + $0x129] sm:$0xff]  ;;  %v12155_v29 = vld [vmem:[%s12022_s20 + $0x139] sm:$0xff] }
  0x2c   : > { %14431 = vst [vmem:[#allocation9_spill] sm:$0xff] %v12145_v27  ;;  %14432 = vst [vmem:[#allocation10_spill] sm:$0xff] %v12152_v28  ;;  %v12162_v30 = vld [vmem:[%s12022_s20 + $0x141] sm:$0xff]  ;;  %v12165_v31 = vld [vmem:[%s12022_s20 + $0x151] sm:$0xff] }
  0x2d   : > { %10116 = vmatmul.mubr.msk.f32.gmra.mrb[4].mxu0 %vm517_vm1, %v12052_v8  ;;  %14433 = vst [vmem:[#allocation11_spill] sm:$0xff] %v12155_v29  ;;  %14434 = vst [vmem:[#allocation12_spill] sm:$0xff] %v12162_v30  ;;  %v12172_v32 = vld [vmem:[%s12022_s20 + $0x159] sm:$0xff]  ;;  %v12175_v33 = vld [vmem:[%s12022_s20 + $0x169] sm:$0xff] }
  0x2e   : > { %10118 = vmatprep.mubr.msk.f32.mxu0 %vm517_vm1, %v12055_v9  ;;  %14435 = vst [vmem:[#allocation13_spill] sm:$0xff] %v12165_v31  ;;  %14436 = vst [vmem:[#allocation14_spill] sm:$0xff] %v12172_v32  ;;  %v12182_v34 = vld [vmem:[%s12022_s20 + $0x171] sm:$0xff]  ;;  %v450_v35 = vld [vmem:[%s12022_s20] sm:$0xff] }
  0x2f   : > { %14437 = vst [vmem:[#allocation15_spill] sm:$0xff] %v12175_v33  ;;  %14438 = vst [vmem:[#allocation16_spill] sm:$0xff] %v12182_v34  ;;  %v451_v36 = vld [vmem:[%s12022_s20 + $0x8] sm:$0xff]  ;;  %v12190_v37 = vld [vmem:[%s12022_s20 + $0x18] sm:$0xff] }
  0x30   : > { %v12201_v39 = vld [vmem:[%s12022_s20 + $0x20] sm:$0xff]  ;;  %v12206_v40 = vld [vmem:[%s12022_s20 + $0x30] sm:$0xff]  ;;  %v12215_v41 = vld [vmem:[%s12022_s20 + $0x38] sm:$0xff] }
  0x31   : > { %10119 = vmatmul.mubr.msk.f32.gmra.mrb[6].mxu0 %vm517_vm1, %v12062_v10  ;;  %v12218_v42 = vld [vmem:[%s12022_s20 + $0x48] sm:$0xff]  ;;  %v12225_v43 = vld [vmem:[%s12022_s20 + $0x50] sm:$0xff]  ;;  %v12228_v44 = vld [vmem:[%s12022_s20 + $0x60] sm:$0xff] }
  0x32   : > { %10121 = vmatprep.mubr.msk.f32.mxu0 %vm517_vm1, %v12065_v11  ;;  %v12235_v45 = vld [vmem:[%s12022_s20 + $0x68] sm:$0xff]  ;;  %v12238_v46 = vld [vmem:[%s12022_s20 + $0x78] sm:$0xff]  ;;  %v12245_v47 = vld [vmem:[%s12022_s20 + $0x80] sm:$0xff] }
  0x33   : > { %v12248_v48 = vld [vmem:[%s12022_s20 + $0x90] sm:$0xff]  ;;  %v12255_v49 = vld [vmem:[%s12022_s20 + $0x98] sm:$0xff]  ;;  %v12258_v50 = vld [vmem:[%s12022_s20 + $0xa8] sm:$0xff] }
  0x34   : > { %v12265_v51 = vld [vmem:[%s12022_s20 + $0xb0] sm:$0xff]  ;;  %v12268_v52 = vld [vmem:[%s12022_s20 + $0xc0] sm:$0xff]  ;;  %v12275_v53 = vld [vmem:[%s12022_s20 + $0xc8] sm:$0xff] }
  0x35   : > { %10122 = vmatmul.mubr.msk.f32.gmra.mrb[8].mxu0 %vm517_vm1, %v12072_v12  ;;  %v12278_v54 = vld [vmem:[%s12022_s20 + $0xd8] sm:$0xff]  ;;  %v12285_v55 = vld [vmem:[%s12022_s20 + $0xe0] sm:$0xff]  ;;  %v12288_v56 = vld [vmem:[%s12022_s20 + $0xf0] sm:$0xff] }
  0x36   : > { %10124 = vmatprep.mubr.msk.f32.mxu0 %vm517_vm1, %v12075_v13  ;;  %v12295_v57 = vld [vmem:[%s12022_s20 + $0xf8] sm:$0xff]  ;;  %v12298_v58 = vld [vmem:[%s12022_s20 + $0x108] sm:$0xff]  ;;  %v12305_v59 = vld [vmem:[%s12022_s20 + $0x110] sm:$0xff] }
  0x37   : > { %v12308_v60 = vld [vmem:[%s12022_s20 + $0x120] sm:$0xff]  ;;  %v12315_v61 = vld [vmem:[%s12022_s20 + $0x128] sm:$0xff]  ;;  %v12318_v62 = vld [vmem:[%s12022_s20 + $0x138] sm:$0xff] }
  0x38   : > { %v12325_v63 = vld [vmem:[%s12022_s20 + $0x140] sm:$0xff]  ;;  %v12328_v0 = vld [vmem:[%s12022_s20 + $0x150] sm:$0xff]  ;;  %v12335_v1 = vld [vmem:[%s12022_s20 + $0x158] sm:$0xff] }
  0x39   : > { %10125 = vmatmul.mubr.msk.f32.gmra.mrb[10].mxu0 %vm517_vm1, %v12082_v14  ;;  %v12338_v2 = vld [vmem:[%s12022_s20 + $0x168] sm:$0xff]  ;;  %v12345_v3 = vld [vmem:[%s12022_s20 + $0x170] sm:$0xff] }
  0x3a   : > { %10127 = vmatprep.mubr.msk.f32.mxu0 %vm517_vm1, %v12085_v15 }
  0x3d   : > { %10128 = vmatmul.mubr.msk.f32.gmra.mrb[12].mxu0 %vm517_vm1, %v12092_v16 }
  0x3e   : > { %10130 = vmatprep.mubr.msk.f32.mxu0 %vm517_vm1, %v12095_v17 }
  0x41   : > { %10131 = vmatmul.mubr.msk.f32.gmra.mrb[14].mxu0 %vm517_vm1, %v12102_v18 }
  0x42   : > { %10133 = vmatprep.mubr.msk.f32.mxu0 %vm517_vm1, %v12105_v19 }
  0x45   : > { %10134 = vmatmul.mubr.msk.f32.gmra.mrb[16].mxu0 %vm517_vm1, %v12112_v20 }
  0x46   : > { %10136 = vmatprep.mubr.msk.f32.mxu0 %vm517_vm1, %v12115_v21 }
  0x49   : > { %10137 = vmatmul.mubr.msk.f32.gmra.mrb[18].mxu0 %vm517_vm1, %v12122_v22 }
  0x4a   : > { %10139 = vmatprep.mubr.msk.f32.mxu0 %vm517_vm1, %v12125_v23 }
  0x4d   : > { %10140 = vmatmul.mubr.msk.f32.gmra.mrb[20].mxu0 %vm517_vm1, %v12132_v24 }
  0x4e   : > { %10142 = vmatprep.mubr.msk.f32.mxu0 %vm517_vm1, %v12135_v25 }
  0x51   : > { %10143 = vmatmul.mubr.msk.f32.gmra.mrb[22].mxu0 %vm517_vm1, %v12142_v26 }
  0x52   : > { %10145 = vmatprep.mubr.msk.f32.mxu0 %vm517_vm1, %v12145_v27 }
  0x55   : > { %10146 = vmatmul.mubr.msk.f32.gmra.mrb[24].mxu0 %vm517_vm1, %v12152_v28 }
  0x56   : > { %10148 = vmatprep.mubr.msk.f32.mxu0 %vm517_vm1, %v12155_v29 }
  0x59   : > { %10149 = vmatmul.mubr.msk.f32.gmra.mrb[26].mxu0 %vm517_vm1, %v12162_v30 }
  0x5a   : > { %10151 = vmatprep.mubr.msk.f32.mxu0 %vm517_vm1, %v12165_v31 }
  0x5d   : > { %10152 = vmatmul.mubr.msk.f32.gmra.mrb[28].mxu0 %vm517_vm1, %v12172_v32  ;;  %v12391_v32 = vld [vmem:[%s12022_s20 + $0x62] sm:$0xff] }
  0x5e   : > { %10154 = vmatprep.mubr.msk.f32.mxu0 %vm517_vm1, %v12175_v33  ;;  %v12364_v33 = vld [vmem:[%s12022_s20 + $0x22] sm:$0xff]  ;;  %14445 = vst [vmem:[#allocation23_spill] sm:$0xff] %v12391_v32 }
  0x5f   : > { %14440 = vst [vmem:[#allocation18_spill] sm:$0xff] %v12364_v33 }
  0x61   : > { %10155 = vmatmul.mubr.msk.f32.gmra.mrb[30].mxu0 %vm517_vm1, %v12182_v34  ;;  %v12358_v34 = vld [vmem:[%s14429_s1 + $0x10] sm:$0x7] }
  0x62   : > { %10159 = vmatprep.mubr.msk.f32.mxu0 %vm517_vm1, %v450_v35  ;;  %v1168_v35 = vld [vmem:[%s12022_s20 + $0xa] sm:$0xff] }
  0x65   : > { %10160 = vmatmul.mubr.msk.f32.vlgmr.msra.gmra.mrb[0].mxu0 %vm517_vm1, %v451_v36  ;;  %v12353_v36 = vld [vmem:[%s12022_s20 + $0x1a] sm:$0xff] }
  0x66   : > { %10162 = vmatprep.mubr.msk.f32.mxu0 %vm517_vm1, %v12190_v37  ;;  %10208 = vmatpush3.msk.msra.mxu0 %vm614_vm0, %v12033_v5  ;;  %v1167_v5 = vld [vmem:[%s12022_s20 + $0x2] sm:$0xff]  ;;  %14439 = vst [vmem:[#allocation17_spill] sm:$0xff] %v12353_v36 }
  0x67   : > { %10257 = vmatprep.subr.msk.mxu0 %vm614_vm0, %v12195_v38 }
  0x69   : > { %10163 = vmatmul.mubr.msk.f32.gmra.mrb[2].mxu0 %vm517_vm1, %v12201_v39 }
  0x6a   : > { %10165 = vmatprep.mubr.msk.f32.mxu0 %vm517_vm1, %v12206_v40 }
  0x6d   : > { %10166 = vmatmul.mubr.msk.f32.gmra.mrb[4].mxu0 %vm517_vm1, %v12215_v41 }
  0x6e   : > { %10168 = vmatprep.mubr.msk.f32.mxu0 %vm517_vm1, %v12218_v42 }
  0x71   : > { %10169 = vmatmul.mubr.msk.f32.gmra.mrb[6].mxu0 %vm517_vm1, %v12225_v43 }
  0x72   : > { %10171 = vmatprep.mubr.msk.f32.mxu0 %vm517_vm1, %v12228_v44 }
  0x75   : > { %10172 = vmatmul.mubr.msk.f32.gmra.mrb[8].mxu0 %vm517_vm1, %v12235_v45 }
  0x76   : > { %10174 = vmatprep.mubr.msk.f32.mxu0 %vm517_vm1, %v12238_v46 }
  0x79   : > { %10175 = vmatmul.mubr.msk.f32.gmra.mrb[10].mxu0 %vm517_vm1, %v12245_v47 }
  0x7a   : > { %10177 = vmatprep.mubr.msk.f32.mxu0 %vm517_vm1, %v12248_v48 }
  0x7d   : > { %10178 = vmatmul.mubr.msk.f32.gmra.mrb[12].mxu0 %vm517_vm1, %v12255_v49 }
  0x7e   : > { %10180 = vmatprep.mubr.msk.f32.mxu0 %vm517_vm1, %v12258_v50 }
  0x81   : > { %10181 = vmatmul.mubr.msk.f32.gmra.mrb[14].mxu0 %vm517_vm1, %v12265_v51 }
  0x82   : > { %10183 = vmatprep.mubr.msk.f32.mxu0 %vm517_vm1, %v12268_v52 }
  0x85   : > { %10184 = vmatmul.mubr.msk.f32.gmra.mrb[16].mxu0 %vm517_vm1, %v12275_v53 }
  0x86   : > { %10186 = vmatprep.mubr.msk.f32.mxu0 %vm517_vm1, %v12278_v54 }
  0x89   : > { %10187 = vmatmul.mubr.msk.f32.gmra.mrb[18].mxu0 %vm517_vm1, %v12285_v55 }
  0x8a   : > { %10189 = vmatprep.mubr.msk.f32.mxu0 %vm517_vm1, %v12288_v56 }
  0x8d   : > { %10190 = vmatmul.mubr.msk.f32.gmra.mrb[20].mxu0 %vm517_vm1, %v12295_v57 }
  0x8e   : > { %10192 = vmatprep.mubr.msk.f32.mxu0 %vm517_vm1, %v12298_v58 }
  0x91   : > { %10193 = vmatmul.mubr.msk.f32.gmra.mrb[22].mxu0 %vm517_vm1, %v12305_v59 }
  0x92   : > { %10195 = vmatprep.mubr.msk.f32.mxu0 %vm517_vm1, %v12308_v60 }
  0x95   : > { %10196 = vmatmul.mubr.msk.f32.gmra.mrb[24].mxu0 %vm517_vm1, %v12315_v61 }
  0x96   : > { %10198 = vmatprep.mubr.msk.f32.mxu0 %vm517_vm1, %v12318_v62 }
  0x99   : > { %10199 = vmatmul.mubr.msk.f32.gmra.mrb[26].mxu0 %vm517_vm1, %v12325_v63 }
  0x9a   : > { %10201 = vmatprep.mubr.msk.f32.mxu0 %vm517_vm1, %v12328_v0 }
  0x9d   : > { %10202 = vmatmul.mubr.msk.f32.gmra.mrb[28].mxu0 %vm517_vm1, %v12335_v1 }
  0x9e   : > { %10204 = vmatprep.mubr.msk.f32.mxu0 %vm517_vm1, %v12338_v2 }
  0xa1   : > { %10205 = vmatmul.mubr.msk.f32.gmra.mrb[30].mxu0 %vm517_vm1, %v12345_v3 }
  0xa2   : > { %10209 = vmatprep.mubr.msk.f32.mxu0 %vm517_vm1, %v1167_v5  ;;  %v12369_v5 = vld [vmem:[%s12022_s20 + $0x32] sm:$0xff] }
  0xa3   : > { %14441 = vst [vmem:[#allocation19_spill] sm:$0xff] %v12369_v5 }
  0xa5   : > { %10210 = vmatmul.mubr.msk.f32.vlgmr.msra.gmra.mrb[0].mxu0 %vm517_vm1, %v1168_v35  ;;  %v12378_v35 = vld [vmem:[%s12022_s20 + $0x3a] sm:$0xff] }
  0xa6   : > { %10212 = vmatprep.mubr.msk.f32.mxu0 %vm517_vm1, %v12353_v36  ;;  %10258 = vmatpush3.msk.msra.mxu0 %vm614_vm0, %v12195_v38  ;;  %14442 = vst [vmem:[#allocation20_spill] sm:$0xff] %v12378_v35  ;;  %v12381_v36 = vld [vmem:[%s12022_s20 + $0x4a] sm:$0xff]  ;;  %v12388_v38 = vld [vmem:[%s12022_s20 + $0x52] sm:$0xff] }
  0xa7   : > { %10307 = vmatprep.subr.msk.mxu0 %vm614_vm0, %v12358_v34  ;;  %14443 = vst [vmem:[#allocation21_spill] sm:$0xff] %v12381_v36  ;;  %14444 = vst [vmem:[#allocation22_spill] sm:$0xff] %v12388_v38 }
  0xa9   : > { %10213 = vmatmul.mubr.msk.f32.gmra.mrb[2].mxu0 %vm517_vm1, %v12364_v33  ;;  %v12401_v33 = vld [vmem:[%s12022_s20 + $0x7a] sm:$0xff] }
  0xaa   : > { %10215 = vmatprep.mubr.msk.f32.mxu0 %vm517_vm1, %v12369_v5  ;;  %v12398_v5 = vld [vmem:[%s12022_s20 + $0x6a] sm:$0xff]  ;;  %14447 = vst [vmem:[#allocation25_spill] sm:$0xff] %v12401_v33 }
  0xab   : > { %14446 = vst [vmem:[#allocation24_spill] sm:$0xff] %v12398_v5 }
  0xad   : > { %10216 = vmatmul.mubr.msk.f32.gmra.mrb[4].mxu0 %vm517_vm1, %v12378_v35  ;;  %v12411_v35 = vld [vmem:[%s12022_s20 + $0x92] sm:$0xff] }
  0xae   : > { %10218 = vmatprep.mubr.msk.f32.mxu0 %vm517_vm1, %v12381_v36  ;;  %v12408_v36 = vld [vmem:[%s12022_s20 + $0x82] sm:$0xff]  ;;  %14449 = vst [vmem:[#allocation27_spill] sm:$0xff] %v12411_v35 }
  0xaf   : > { %14448 = vst [vmem:[#allocation26_spill] sm:$0xff] %v12408_v36 }
  0xb1   : > { %10219 = vmatmul.mubr.msk.f32.gmra.mrb[6].mxu0 %vm517_vm1, %v12388_v38  ;;  %v12421_v38 = vld [vmem:[%s12022_s20 + $0xaa] sm:$0xff] }
  0xb2   : > { %10221 = vmatprep.mubr.msk.f32.mxu0 %vm517_vm1, %v12391_v32  ;;  %v12418_v32 = vld [vmem:[%s12022_s20 + $0x9a] sm:$0xff]  ;;  %14451 = vst [vmem:[#allocation29_spill] sm:$0xff] %v12421_v38 }
  0xb3   : > { %14450 = vst [vmem:[#allocation28_spill] sm:$0xff] %v12418_v32 }
  0xb5   : > { %10222 = vmatmul.mubr.msk.f32.gmra.mrb[8].mxu0 %vm517_vm1, %v12398_v5  ;;  %v12431_v5 = vld [vmem:[%s12022_s20 + $0xc2] sm:$0xff] }
  0xb6   : > { %10224 = vmatprep.mubr.msk.f32.mxu0 %vm517_vm1, %v12401_v33  ;;  %v12428_v33 = vld [vmem:[%s12022_s20 + $0xb2] sm:$0xff]  ;;  %14453 = vst [vmem:[#allocation31_spill] sm:$0xff] %v12431_v5 }
  0xb7   : > { %14452 = vst [vmem:[#allocation30_spill] sm:$0xff] %v12428_v33 }
  0xb9   : > { %10225 = vmatmul.mubr.msk.f32.gmra.mrb[10].mxu0 %vm517_vm1, %v12408_v36  ;;  %v12441_v36 = vld [vmem:[%s12022_s20 + $0xda] sm:$0xff] }
  0xba   : > { %10227 = vmatprep.mubr.msk.f32.mxu0 %vm517_vm1, %v12411_v35  ;;  %v12438_v35 = vld [vmem:[%s12022_s20 + $0xca] sm:$0xff]  ;;  %14455 = vst [vmem:[#allocation33_spill] sm:$0xff] %v12441_v36 }
  0xbb   : > { %14454 = vst [vmem:[#allocation32_spill] sm:$0xff] %v12438_v35 }
  0xbd   : > { %10228 = vmatmul.mubr.msk.f32.gmra.mrb[12].mxu0 %vm517_vm1, %v12418_v32  ;;  %v12451_v32 = vld [vmem:[%s12022_s20 + $0xf2] sm:$0xff] }
  0xbe   : > { %10230 = vmatprep.mubr.msk.f32.mxu0 %vm517_vm1, %v12421_v38  ;;  %v12448_v38 = vld [vmem:[%s12022_s20 + $0xe2] sm:$0xff]  ;;  %14457 = vst [vmem:[#allocation35_spill] sm:$0xff] %v12451_v32 }
  0xbf   : > { %14456 = vst [vmem:[#allocation34_spill] sm:$0xff] %v12448_v38 }
  0xc1   : > { %10231 = vmatmul.mubr.msk.f32.gmra.mrb[14].mxu0 %vm517_vm1, %v12428_v33  ;;  %v12461_v33 = vld [vmem:[%s12022_s20 + $0x10a] sm:$0xff] }
  0xc2   : > { %10233 = vmatprep.mubr.msk.f32.mxu0 %vm517_vm1, %v12431_v5  ;;  %v12458_v5 = vld [vmem:[%s12022_s20 + $0xfa] sm:$0xff]  ;;  %14459 = vst [vmem:[#allocation37_spill] sm:$0xff] %v12461_v33 }
  0xc3   : > { %14458 = vst [vmem:[#allocation36_spill] sm:$0xff] %v12458_v5 }
  0xc5   : > { %10234 = vmatmul.mubr.msk.f32.gmra.mrb[16].mxu0 %vm517_vm1, %v12438_v35  ;;  %v12471_v35 = vld [vmem:[%s12022_s20 + $0x122] sm:$0xff] }
  0xc6   : > { %10236 = vmatprep.mubr.msk.f32.mxu0 %vm517_vm1, %v12441_v36  ;;  %v12468_v36 = vld [vmem:[%s12022_s20 + $0x112] sm:$0xff]  ;;  %14461 = vst [vmem:[#allocation39_spill] sm:$0xff] %v12471_v35 }
  0xc7   : > { %14460 = vst [vmem:[#allocation38_spill] sm:$0xff] %v12468_v36 }
  0xc9   : > { %10237 = vmatmul.mubr.msk.f32.gmra.mrb[18].mxu0 %vm517_vm1, %v12448_v38  ;;  %v12481_v38 = vld [vmem:[%s12022_s20 + $0x13a] sm:$0xff] }
  0xca   : > { %10239 = vmatprep.mubr.msk.f32.mxu0 %vm517_vm1, %v12451_v32  ;;  %v12478_v32 = vld [vmem:[%s12022_s20 + $0x12a] sm:$0xff]  ;;  %14462 = vst [vmem:[#allocation40_spill] sm:$0xff] %v12481_v38 }
  0xcd   : > { %10240 = vmatmul.mubr.msk.f32.gmra.mrb[20].mxu0 %vm517_vm1, %v12458_v5  ;;  %v12491_v5 = vld [vmem:[%s12022_s20 + $0x152] sm:$0xff] }
  0xce   : > { %10242 = vmatprep.mubr.msk.f32.mxu0 %vm517_vm1, %v12461_v33  ;;  %v12488_v33 = vld [vmem:[%s12022_s20 + $0x142] sm:$0xff]  ;;  %14463 = vst [vmem:[#allocation41_spill] sm:$0xff] %v12491_v5 }
  0xd1   : > { %10243 = vmatmul.mubr.msk.f32.gmra.mrb[22].mxu0 %vm517_vm1, %v12468_v36  ;;  %v12501_v36 = vld [vmem:[%s12022_s20 + $0x16a] sm:$0xff] }
  0xd2   : > { %10245 = vmatprep.mubr.msk.f32.mxu0 %vm517_vm1, %v12471_v35  ;;  %v12498_v35 = vld [vmem:[%s12022_s20 + $0x15a] sm:$0xff]  ;;  %14464 = vst [vmem:[#allocation42_spill] sm:$0xff] %v12501_v36 }
  0xd5   : > { %10246 = vmatmul.mubr.msk.f32.gmra.mrb[24].mxu0 %vm517_vm1, %v12478_v32 }
  0xd6   : > { %10248 = vmatprep.mubr.msk.f32.mxu0 %vm517_vm1, %v12481_v38  ;;  %v12508_v38 = vld [vmem:[%s12022_s20 + $0x172] sm:$0xff] }
  0xd9   : > { %10249 = vmatmul.mubr.msk.f32.gmra.mrb[26].mxu0 %vm517_vm1, %v12488_v33 }
  0xda   : > { %10251 = vmatprep.mubr.msk.f32.mxu0 %vm517_vm1, %v12491_v5  ;;  %v8789_v5 = vld [vmem:[%s14429_s1 + $0x14] sm:$0x7] }
  0xdd   : > { %10252 = vmatmul.mubr.msk.f32.gmra.mrb[28].mxu0 %vm517_vm1, %v12498_v35 }
  0xde   : > { %10254 = vmatprep.mubr.msk.f32.mxu0 %vm517_vm1, %v12501_v36 }
  0xe1   : > { %10255 = vmatmul.mubr.msk.f32.gmra.mrb[30].mxu0 %vm517_vm1, %v12508_v38 }
  0xe2   : > { %10259 = vmatprep.mubr.msk.f32.mxu0 %vm517_vm1, %v12190_v37  ;;  %v12584_v37 = vld [vmem:[%s12022_s20 + $0x188] sm:$0xff] }
  0xe5   : > { %10260 = vmatmul.mubr.msk.f32.vlgmr.msra.gmra.mrb[0].mxu0 %vm517_vm1, %v12201_v39  ;;  %v8855_v39 = vld [vmem:[%s14429_s1 + $0x18] sm:$0x7] }
  0xe6   : > { %10262 = vmatprep.mubr.msk.f32.mxu0 %vm517_vm1, %v12206_v40  ;;  %10308 = vmatpush3.msk.msra.mxu0 %vm614_vm0, %v12358_v34  ;;  %v12577_v34 = vld [vmem:[%s12022_s20 + $0x180] sm:$0xff] }
  0xe7   : > { %10357 = vmatprep.subr.msk.mxu0 %vm614_vm0, %v8789_v5 }
  0xe9   : > { %10263 = vmatmul.mubr.msk.f32.gmra.mrb[2].mxu0 %vm517_vm1, %v12215_v41 }
  0xea   : > { %10265 = vmatprep.mubr.msk.f32.mxu0 %vm517_vm1, %v12218_v42 }
  0xed   : > { %10266 = vmatmul.mubr.msk.f32.gmra.mrb[4].mxu0 %vm517_vm1, %v12225_v43 }
  0xee   : > { %10268 = vmatprep.mubr.msk.f32.mxu0 %vm517_vm1, %v12228_v44 }
  0xf1   : > { %10269 = vmatmul.mubr.msk.f32.gmra.mrb[6].mxu0 %vm517_vm1, %v12235_v45 }
  0xf2   : > { %10271 = vmatprep.mubr.msk.f32.mxu0 %vm517_vm1, %v12238_v46 }
  0xf5   : > { %10272 = vmatmul.mubr.msk.f32.gmra.mrb[8].mxu0 %vm517_vm1, %v12245_v47 }
  0xf6   : > { %10274 = vmatprep.mubr.msk.f32.mxu0 %vm517_vm1, %v12248_v48 }
  0xf9   : > { %10275 = vmatmul.mubr.msk.f32.gmra.mrb[10].mxu0 %vm517_vm1, %v12255_v49 }
  0xfa   : > { %10277 = vmatprep.mubr.msk.f32.mxu0 %vm517_vm1, %v12258_v50 }
  0xfd   : > { %10278 = vmatmul.mubr.msk.f32.gmra.mrb[12].mxu0 %vm517_vm1, %v12265_v51 }
  0xfe   : > { %10280 = vmatprep.mubr.msk.f32.mxu0 %vm517_vm1, %v12268_v52 }
 0x101   : > { %10281 = vmatmul.mubr.msk.f32.gmra.mrb[14].mxu0 %vm517_vm1, %v12275_v53 }
 0x102   : > { %10283 = vmatprep.mubr.msk.f32.mxu0 %vm517_vm1, %v12278_v54 }
 0x105   : > { %10284 = vmatmul.mubr.msk.f32.gmra.mrb[16].mxu0 %vm517_vm1, %v12285_v55 }
 0x106   : > { %10286 = vmatprep.mubr.msk.f32.mxu0 %vm517_vm1, %v12288_v56 }
 0x109   : > { %10287 = vmatmul.mubr.msk.f32.gmra.mrb[18].mxu0 %vm517_vm1, %v12295_v57 }
 0x10a   : > { %10289 = vmatprep.mubr.msk.f32.mxu0 %vm517_vm1, %v12298_v58 }
 0x10d   : > { %10290 = vmatmul.mubr.msk.f32.gmra.mrb[20].mxu0 %vm517_vm1, %v12305_v59 }
 0x10e   : > { %10292 = vmatprep.mubr.msk.f32.mxu0 %vm517_vm1, %v12308_v60 }
 0x111   : > { %10293 = vmatmul.mubr.msk.f32.gmra.mrb[22].mxu0 %vm517_vm1, %v12315_v61 }
 0x112   : > { %10295 = vmatprep.mubr.msk.f32.mxu0 %vm517_vm1, %v12318_v62 }
 0x115   : > { %10296 = vmatmul.mubr.msk.f32.gmra.mrb[24].mxu0 %vm517_vm1, %v12325_v63 }
 0x116   : > { %10298 = vmatprep.mubr.msk.f32.mxu0 %vm517_vm1, %v12328_v0 }
 0x119   : > { %10299 = vmatmul.mubr.msk.f32.gmra.mrb[26].mxu0 %vm517_vm1, %v12335_v1 }
 0x11a   : > { %10301 = vmatprep.mubr.msk.f32.mxu0 %vm517_vm1, %v12338_v2 }
 0x11d   : > { %10302 = vmatmul.mubr.msk.f32.gmra.mrb[28].mxu0 %vm517_vm1, %v12345_v3 }
 0x11e   : > { %10304 = vmatprep.mubr.msk.f32.mxu0 %vm517_vm1, %v12577_v34 }
 0x121   : > { %10305 = vmatmul.mubr.msk.f32.gmra.mrb[30].mxu0 %vm517_vm1, %v12584_v37 }
 0x122   : > { %10309 = vmatprep.mubr.msk.f32.mxu0 %vm517_vm1, %v12027_v4  ;;  %v14465_v4 = vld [vmem:[#allocation14_spill] sm:$0xff] }
 0x125   : > { %10310 = vmatmul.mubr.msk.f32.vlgmr.msra.gmra.mrb[0].mxu0 %vm517_vm1, %v12039_v6  ;;  %v14466_v6 = vld [vmem:[#allocation15_spill] sm:$0xff] }
 0x126   : > { %10312 = vmatprep.mubr.msk.f32.mxu0 %vm517_vm1, %v12043_v7  ;;  %10358 = vmatpush3.msk.msra.mxu0 %vm614_vm0, %v8789_v5  ;;  %v12652_v5 = vld [vmem:[%s12022_s20 + $0x181] sm:$0xff] }
 0x127   : > { %10407 = vmatprep.subr.msk.mxu0 %vm614_vm0, %v8855_v39  ;;  %14467 = vst [vmem:[#allocation43_spill] sm:$0xff] %v12652_v5 }
 0x129   : > { %10313 = vmatmul.mubr.msk.f32.gmra.mrb[2].mxu0 %vm517_vm1, %v12052_v8 }
 0x12a   : > { %10315 = vmatprep.mubr.msk.f32.mxu0 %vm517_vm1, %v12055_v9 }
 0x12d   : > { %10316 = vmatmul.mubr.msk.f32.gmra.mrb[4].mxu0 %vm517_vm1, %v12062_v10 }
 0x12e   : > { %10318 = vmatprep.mubr.msk.f32.mxu0 %vm517_vm1, %v12065_v11 }
 0x131   : > { %10319 = vmatmul.mubr.msk.f32.gmra.mrb[6].mxu0 %vm517_vm1, %v12072_v12 }
 0x132   : > { %10321 = vmatprep.mubr.msk.f32.mxu0 %vm517_vm1, %v12075_v13 }
 0x135   : > { %10322 = vmatmul.mubr.msk.f32.gmra.mrb[8].mxu0 %vm517_vm1, %v12082_v14 }
 0x136   : > { %10324 = vmatprep.mubr.msk.f32.mxu0 %vm517_vm1, %v12085_v15 }
 0x139   : > { %10325 = vmatmul.mubr.msk.f32.gmra.mrb[10].mxu0 %vm517_vm1, %v12092_v16 }
 0x13a   : > { %10327 = vmatprep.mubr.msk.f32.mxu0 %vm517_vm1, %v12095_v17 }
 0x13d   : > { %10328 = vmatmul.mubr.msk.f32.gmra.mrb[12].mxu0 %vm517_vm1, %v12102_v18 }
 0x13e   : > { %10330 = vmatprep.mubr.msk.f32.mxu0 %vm517_vm1, %v12105_v19 }
 0x141   : > { %10331 = vmatmul.mubr.msk.f32.gmra.mrb[14].mxu0 %vm517_vm1, %v12112_v20 }
 0x142   : > { %10333 = vmatprep.mubr.msk.f32.mxu0 %vm517_vm1, %v12115_v21 }
 0x145   : > { %10334 = vmatmul.mubr.msk.f32.gmra.mrb[16].mxu0 %vm517_vm1, %v12122_v22 }
 0x146   : > { %10336 = vmatprep.mubr.msk.f32.mxu0 %vm517_vm1, %v12125_v23 }
 0x149   : > { %10337 = vmatmul.mubr.msk.f32.gmra.mrb[18].mxu0 %vm517_vm1, %v12132_v24 }
 0x14a   : > { %10339 = vmatprep.mubr.msk.f32.mxu0 %vm517_vm1, %v12135_v25 }
 0x14d   : > { %10340 = vmatmul.mubr.msk.f32.gmra.mrb[20].mxu0 %vm517_vm1, %v12142_v26 }
 0x14e   : > { %10342 = vmatprep.mubr.msk.f32.mxu0 %vm517_vm1, %v12145_v27  ;;  %v14468_v27 = vld [vmem:[#allocation16_spill] sm:$0xff] }
 0x151   : > { %10343 = vmatmul.mubr.msk.f32.gmra.mrb[22].mxu0 %vm517_vm1, %v12152_v28  ;;  %v14480_v28 = vld [vmem:[#allocation27_spill] sm:$0xff] }
 0x152   : > { %10345 = vmatprep.mubr.msk.f32.mxu0 %vm517_vm1, %v12155_v29  ;;  %v12659_v29 = vld [vmem:[%s12022_s20 + $0x189] sm:$0xff] }
 0x153   : > { %14469 = vst [vmem:[#allocation44_spill] sm:$0xff] %v12659_v29 }
 0x155   : > { %10346 = vmatmul.mubr.msk.f32.gmra.mrb[24].mxu0 %vm517_vm1, %v12162_v30  ;;  %v14472_v30 = vld [vmem:[#allocation19_spill] sm:$0xff] }
 0x156   : > { %10348 = vmatprep.mubr.msk.f32.mxu0 %vm517_vm1, %v12165_v31  ;;  %v14470_v31 = vld [vmem:[#allocation17_spill] sm:$0xff] }
 0x159   : > { %10349 = vmatmul.mubr.msk.f32.gmra.mrb[26].mxu0 %vm517_vm1, %v14465_v4  ;;  %v14471_v4 = vld [vmem:[#allocation18_spill] sm:$0xff] }
 0x15a   : > { %10351 = vmatprep.mubr.msk.f32.mxu0 %vm517_vm1, %v14466_v6  ;;  %v8921_v6 = vld [vmem:[%s14429_s1 + $0x1c] sm:$0x7] }
 0x15d   : > { %10352 = vmatmul.mubr.msk.f32.gmra.mrb[28].mxu0 %vm517_vm1, %v14468_v27  ;;  %v14476_v27 = vld [vmem:[#allocation23_spill] sm:$0xff] }
 0x15e   : > { %10354 = vmatprep.mubr.msk.f32.mxu0 %vm517_vm1, %v12652_v5  ;;  %v14473_v5 = vld [vmem:[#allocation20_spill] sm:$0xff] }
 0x161   : > { %10355 = vmatmul.mubr.msk.f32.gmra.mrb[30].mxu0 %vm517_vm1, %v12659_v29  ;;  %v14474_v29 = vld [vmem:[#allocation21_spill] sm:$0xff] }
 0x162   : > { %10359 = vmatprep.mubr.msk.f32.mxu0 %vm517_vm1, %v14470_v31  ;;  %v14475_v31 = vld [vmem:[#allocation22_spill] sm:$0xff] }
 0x165   : > { %10360 = vmatmul.mubr.msk.f32.vlgmr.msra.gmra.mrb[0].mxu0 %vm517_vm1, %v14471_v4  ;;  %v14477_v4 = vld [vmem:[#allocation24_spill] sm:$0xff] }
 0x166   : > { %10362 = vmatprep.mubr.msk.f32.mxu0 %vm517_vm1, %v14472_v30  ;;  %10408 = vmatpush3.msk.msra.mxu0 %vm614_vm0, %v8855_v39  ;;  %v14478_v30 = vld [vmem:[#allocation25_spill] sm:$0xff]  ;;  %v14479_v39 = vld [vmem:[#allocation26_spill] sm:$0xff] }
 0x167   : > { %10457 = vmatprep.subr.msk.mxu0 %vm614_vm0, %v8921_v6 }
 0x169   : > { %10363 = vmatmul.mubr.msk.f32.gmra.mrb[2].mxu0 %vm517_vm1, %v14473_v5  ;;  %v14481_v5 = vld [vmem:[#allocation28_spill] sm:$0xff] }
 0x16a   : > { %10365 = vmatprep.mubr.msk.f32.mxu0 %vm517_vm1, %v14474_v29  ;;  %v14482_v29 = vld [vmem:[#allocation29_spill] sm:$0xff] }
 0x16d   : > { %10366 = vmatmul.mubr.msk.f32.gmra.mrb[4].mxu0 %vm517_vm1, %v14475_v31  ;;  %v14483_v31 = vld [vmem:[#allocation30_spill] sm:$0xff] }
 0x16e   : > { %10368 = vmatprep.mubr.msk.f32.mxu0 %vm517_vm1, %v14476_v27  ;;  %v14484_v27 = vld [vmem:[#allocation31_spill] sm:$0xff] }
 0x171   : > { %10369 = vmatmul.mubr.msk.f32.gmra.mrb[6].mxu0 %vm517_vm1, %v14477_v4 }
 0x172   : > { %10371 = vmatprep.mubr.msk.f32.mxu0 %vm517_vm1, %v14478_v30  ;;  %v14485_v30 = vld [vmem:[#allocation32_spill] sm:$0xff] }
 0x175   : > { %10372 = vmatmul.mubr.msk.f32.gmra.mrb[8].mxu0 %vm517_vm1, %v14479_v39  ;;  %v14486_v39 = vld [vmem:[#allocation33_spill] sm:$0xff] }
 0x176   : > { %10374 = vmatprep.mubr.msk.f32.mxu0 %vm517_vm1, %v14480_v28  ;;  %v14487_v28 = vld [vmem:[#allocation34_spill] sm:$0xff] }
 0x179   : > { %10375 = vmatmul.mubr.msk.f32.gmra.mrb[10].mxu0 %vm517_vm1, %v14481_v5  ;;  %v14488_v5 = vld [vmem:[#allocation35_spill] sm:$0xff] }
 0x17a   : > { %10377 = vmatprep.mubr.msk.f32.mxu0 %vm517_vm1, %v14482_v29  ;;  %v14489_v29 = vld [vmem:[#allocation36_spill] sm:$0xff] }
 0x17d   : > { %10378 = vmatmul.mubr.msk.f32.gmra.mrb[12].mxu0 %vm517_vm1, %v14483_v31  ;;  %v14490_v31 = vld [vmem:[#allocation37_spill] sm:$0xff] }
 0x17e   : > { %10380 = vmatprep.mubr.msk.f32.mxu0 %vm517_vm1, %v14484_v27  ;;  %v14491_v27 = vld [vmem:[#allocation38_spill] sm:$0xff] }
 0x181   : > { %10381 = vmatmul.mubr.msk.f32.gmra.mrb[14].mxu0 %vm517_vm1, %v14485_v30  ;;  %v14492_v30 = vld [vmem:[#allocation39_spill] sm:$0xff] }
 0x182   : > { %10383 = vmatprep.mubr.msk.f32.mxu0 %vm517_vm1, %v14486_v39  ;;  %v14493_v39 = vld [vmem:[#allocation40_spill] sm:$0xff] }
 0x185   : > { %10384 = vmatmul.mubr.msk.f32.gmra.mrb[16].mxu0 %vm517_vm1, %v14487_v28 }
 0x186   : > { %10386 = vmatprep.mubr.msk.f32.mxu0 %vm517_vm1, %v14488_v5  ;;  %v14494_v5 = vld [vmem:[#allocation41_spill] sm:$0xff] }
 0x189   : > { %10387 = vmatmul.mubr.msk.f32.gmra.mrb[18].mxu0 %vm517_vm1, %v14489_v29 }
 0x18a   : > { %10389 = vmatprep.mubr.msk.f32.mxu0 %vm517_vm1, %v14490_v31 }
 0x18d   : > { %10390 = vmatmul.mubr.msk.f32.gmra.mrb[20].mxu0 %vm517_vm1, %v14491_v27  ;;  %v12727_v27 = vld [vmem:[%s12022_s20 + $0x182] sm:$0xff] }
 0x18e   : > { %10392 = vmatprep.mubr.msk.f32.mxu0 %vm517_vm1, %v14492_v30 }
 0x191   : > { %10393 = vmatmul.mubr.msk.f32.gmra.mrb[22].mxu0 %vm517_vm1, %v12478_v32 }
 0x192   : > { %10395 = vmatprep.mubr.msk.f32.mxu0 %vm517_vm1, %v14493_v39  ;;  %v12734_v39 = vld [vmem:[%s12022_s20 + $0x18a] sm:$0xff] }
 0x195   : > { %10396 = vmatmul.mubr.msk.f32.gmra.mrb[24].mxu0 %vm517_vm1, %v12488_v33 }
 0x196   : > { %10398 = vmatprep.mubr.msk.f32.mxu0 %vm517_vm1, %v14494_v5 }
 0x199   : > { %10399 = vmatmul.mubr.msk.f32.gmra.mrb[26].mxu0 %vm517_vm1, %v12498_v35 }
 0x19a   : > { %10401 = vmatprep.mubr.msk.f32.mxu0 %vm517_vm1, %v12501_v36  ;;  %v8987_v36 = vld [vmem:[%s14429_s1 + $0x20] sm:$0x7] }
 0x19d   : > { %10402 = vmatmul.mubr.msk.f32.gmra.mrb[28].mxu0 %vm517_vm1, %v12508_v38 }
 0x19e   : > { %10404 = vmatprep.mubr.msk.f32.mxu0 %vm517_vm1, %v12727_v27 }
 0x1a1   : > { %10405 = vmatmul.mubr.msk.f32.gmra.mrb[30].mxu0 %vm517_vm1, %v12734_v39 }
 0x1a2   : > { %10409 = vmatprep.mubr.msk.f32.mxu0 %vm517_vm1, %v12206_v40  ;;  %v8853_v40 = vld [vmem:[%s12022_s20 + $0x198] sm:$0xff] }
 0x1a5   : > { %10410 = vmatmul.mubr.msk.f32.vlgmr.msra.gmra.mrb[0].mxu0 %vm517_vm1, %v12215_v41  ;;  %v8854_v41 = vld [vmem:[%s12022_s20 + $0x1a0] sm:$0xff] }
 0x1a6   : > { %10412 = vmatprep.mubr.msk.f32.mxu0 %vm517_vm1, %v12218_v42  ;;  %10458 = vmatpush3.msk.msra.mxu0 %vm614_vm0, %v8921_v6  ;;  %v14513_v42 = vld [vmem:[#allocation28_spill] sm:$0xff] }
 0x1a7   : > { %10507 = vmatprep.subr.msk.mxu0 %vm614_vm0, %v8987_v36 }
 0x1a9   : > { %10413 = vmatmul.mubr.msk.f32.gmra.mrb[2].mxu0 %vm517_vm1, %v12225_v43  ;;  %v14514_v43 = vld [vmem:[#allocation29_spill] sm:$0xff] }
 0x1aa   : > { %10415 = vmatprep.mubr.msk.f32.mxu0 %vm517_vm1, %v12228_v44  ;;  %v14515_v44 = vld [vmem:[#allocation30_spill] sm:$0xff] }
 0x1ad   : > { %10416 = vmatmul.mubr.msk.f32.gmra.mrb[4].mxu0 %vm517_vm1, %v12235_v45  ;;  %v14516_v45 = vld [vmem:[#allocation31_spill] sm:$0xff] }
 0x1ae   : > { %10418 = vmatprep.mubr.msk.f32.mxu0 %vm517_vm1, %v12238_v46  ;;  %v14517_v46 = vld [vmem:[#allocation32_spill] sm:$0xff] }
 0x1b1   : > { %10419 = vmatmul.mubr.msk.f32.gmra.mrb[6].mxu0 %vm517_vm1, %v12245_v47  ;;  %v14518_v47 = vld [vmem:[#allocation33_spill] sm:$0xff] }
 0x1b2   : > { %10421 = vmatprep.mubr.msk.f32.mxu0 %vm517_vm1, %v12248_v48  ;;  %v14519_v48 = vld [vmem:[#allocation35_spill] sm:$0xff] }
 0x1b5   : > { %10422 = vmatmul.mubr.msk.f32.gmra.mrb[8].mxu0 %vm517_vm1, %v12255_v49  ;;  %v14520_v49 = vld [vmem:[#allocation38_spill] sm:$0xff] }
 0x1b6   : > { %10424 = vmatprep.mubr.msk.f32.mxu0 %vm517_vm1, %v12258_v50  ;;  %v9023_v50 = vld [vmem:[%s14288_s3 + $0x18] sm:$0xff] }
 0x1b9   : > { %10425 = vmatmul.mubr.msk.f32.gmra.mrb[10].mxu0 %vm517_vm1, %v12265_v51 }
 0x1ba   : > { %10427 = vmatprep.mubr.msk.f32.mxu0 %vm517_vm1, %v12268_v52 }
 0x1bd   : > { %10428 = vmatmul.mubr.msk.f32.gmra.mrb[12].mxu0 %vm517_vm1, %v12275_v53 }
 0x1be   : > { %10430 = vmatprep.mubr.msk.f32.mxu0 %vm517_vm1, %v12278_v54  ;;  %v4091_v54 = vld [vmem:[%s14288_s3] sm:$0xff] }
 0x1c1   : > { %10431 = vmatmul.mubr.msk.f32.gmra.mrb[14].mxu0 %vm517_vm1, %v12285_v55  ;;  %v4092_v55 = vld [vmem:[%s14288_s3 + $0x8] sm:$0xff] }
 0x1c2   : > { %10433 = vmatprep.mubr.msk.f32.mxu0 %vm517_vm1, %v12288_v56  ;;  %v11125_v56 = vpack.c.bf16 %v4092_v55, %v4091_v54 }
 0x1c5   : > { %10434 = vmatmul.mubr.msk.f32.gmra.mrb[16].mxu0 %vm517_vm1, %v12295_v57  ;;  %v9088_v57 = vld [vmem:[%s14288_s3 + $0x20] sm:$0xff] }
 0x1c6   : > { %10436 = vmatprep.mubr.msk.f32.mxu0 %vm517_vm1, %v12298_v58  ;;  %v9089_v58 = vld [vmem:[%s14288_s3 + $0x28] sm:$0xff] }
 0x1c9   : > { %10437 = vmatmul.mubr.msk.f32.gmra.mrb[18].mxu0 %vm517_vm1, %v12305_v59  ;;  %v13010_v59 = vpack.c.bf16 %v9089_v58, %v9088_v57 }
 0x1ca   : > { %10439 = vmatprep.mubr.msk.f32.mxu0 %vm517_vm1, %v12308_v60  ;;  %v13016_v60 = vld [vmem:[%s14523_s2] ss:$0 sm:$0xff]  ;;  %s11793_s2 = sshll.u32 %s11886_s16, 4  ;;  %s11794_s2 = int_to_ptr.vmem [resolvable:$false] %s11793_s2 }
 0x1cd   : > { %10440 = vmatmul.mubr.msk.f32.gmra.mrb[20].mxu0 %vm517_vm1, %v12315_v61 }
 0x1ce   : > { %10442 = vmatprep.mubr.msk.f32.mxu0 %vm517_vm1, %v12318_v62 }
 0x1d1   : > { %10443 = vmatmul.mubr.msk.f32.gmra.mrb[22].mxu0 %vm517_vm1, %v12325_v63 }
 0x1d2   : > { %10445 = vmatprep.mubr.msk.f32.mxu0 %vm517_vm1, %v12328_v0 }
 0x1d5   : > { %10446 = vmatmul.mubr.msk.f32.gmra.mrb[24].mxu0 %vm517_vm1, %v12335_v1 }
 0x1d6   : > { %10448 = vmatprep.mubr.msk.f32.mxu0 %vm517_vm1, %v12338_v2 }
 0x1d9   : > { %10449 = vmatmul.mubr.msk.f32.gmra.mrb[26].mxu0 %vm517_vm1, %v12345_v3 }
 0x1da   : > { %10451 = vmatprep.mubr.msk.f32.mxu0 %vm517_vm1, %v12577_v34 }
 0x1dd   : > { %10452 = vmatmul.mubr.msk.f32.gmra.mrb[28].mxu0 %vm517_vm1, %v12584_v37 }
 0x1de   : > { %10454 = vmatprep.mubr.msk.f32.mxu0 %vm517_vm1, %v8853_v40 }
 0x1e1   : > { %10455 = vmatmul.mubr.msk.f32.gmra.mrb[30].mxu0 %vm517_vm1, %v8854_v41 }
 0x1e2   : > { %10459 = vmatprep.mubr.msk.f32.mxu0 %vm517_vm1, %v12043_v7  ;;  %v14495_v7 = vld [vmem:[#allocation9_spill] sm:$0xff] }
 0x1e5   : > { %10460 = vmatmul.mubr.msk.f32.vlgmr.msra.gmra.mrb[0].mxu0 %vm517_vm1, %v12052_v8  ;;  %v14496_v8 = vld [vmem:[#allocation10_spill] sm:$0xff] }
 0x1e6   : > { %10462 = vmatprep.mubr.msk.f32.mxu0 %vm517_vm1, %v12055_v9  ;;  %10508 = vmatpush3.msk.msra.mxu0 %vm614_vm0, %v8987_v36  ;;  %v14497_v9 = vld [vmem:[#allocation11_spill] sm:$0xff] }
 0x1e9   : > { %10463 = vmatmul.mubr.msk.f32.gmra.mrb[2].mxu0 %vm517_vm1, %v12062_v10  ;;  %v14498_v10 = vld [vmem:[#allocation12_spill] sm:$0xff] }
 0x1ea   : > { %10465 = vmatprep.mubr.msk.f32.mxu0 %vm517_vm1, %v12065_v11  ;;  %v14499_v11 = vld [vmem:[#allocation13_spill] sm:$0xff] }
 0x1ed   : > { %10466 = vmatmul.mubr.msk.f32.gmra.mrb[4].mxu0 %vm517_vm1, %v12072_v12  ;;  %v14500_v12 = vld [vmem:[#allocation14_spill] sm:$0xff] }
 0x1ee   : > { %10468 = vmatprep.mubr.msk.f32.mxu0 %vm517_vm1, %v12075_v13  ;;  %v14501_v13 = vld [vmem:[#allocation15_spill] sm:$0xff] }
 0x1f1   : > { %10469 = vmatmul.mubr.msk.f32.gmra.mrb[6].mxu0 %vm517_vm1, %v12082_v14  ;;  %v14502_v14 = vld [vmem:[#allocation16_spill] sm:$0xff] }
 0x1f2   : > { %10471 = vmatprep.mubr.msk.f32.mxu0 %vm517_vm1, %v12085_v15  ;;  %v14503_v15 = vld [vmem:[#allocation43_spill] sm:$0xff] }
 0x1f5   : > { %10472 = vmatmul.mubr.msk.f32.gmra.mrb[8].mxu0 %vm517_vm1, %v12092_v16  ;;  %v8919_v16 = vld [vmem:[%s12022_s20 + $0x199] sm:$0xff] }
 0x1f6   : > { %10474 = vmatprep.mubr.msk.f32.mxu0 %vm517_vm1, %v12095_v17  ;;  %v14504_v17 = vld [vmem:[#allocation44_spill] sm:$0xff] }
 0x1f9   : > { %10475 = vmatmul.mubr.msk.f32.gmra.mrb[10].mxu0 %vm517_vm1, %v12102_v18  ;;  %v8920_v18 = vld [vmem:[%s12022_s20 + $0x1a1] sm:$0xff] }
 0x1fa   : > { %10477 = vmatprep.mubr.msk.f32.mxu0 %vm517_vm1, %v12105_v19  ;;  %v14505_v19 = vld [vmem:[#allocation19_spill] sm:$0xff] }
 0x1fd   : > { %10478 = vmatmul.mubr.msk.f32.gmra.mrb[12].mxu0 %vm517_vm1, %v12112_v20  ;;  %v14506_v20 = vld [vmem:[#allocation20_spill] sm:$0xff] }
 0x1fe   : > { %10480 = vmatprep.mubr.msk.f32.mxu0 %vm517_vm1, %v12115_v21  ;;  %v14507_v21 = vld [vmem:[#allocation21_spill] sm:$0xff] }
 0x201   : > { %10481 = vmatmul.mubr.msk.f32.gmra.mrb[14].mxu0 %vm517_vm1, %v12122_v22  ;;  %v14508_v22 = vld [vmem:[#allocation22_spill] sm:$0xff] }
 0x202   : > { %10483 = vmatprep.mubr.msk.f32.mxu0 %vm517_vm1, %v12125_v23  ;;  %v14509_v23 = vld [vmem:[#allocation23_spill] sm:$0xff] }
 0x205   : > { %10484 = vmatmul.mubr.msk.f32.gmra.mrb[16].mxu0 %vm517_vm1, %v12132_v24  ;;  %v14510_v24 = vld [vmem:[#allocation25_spill] sm:$0xff] }
 0x206   : > { %10486 = vmatprep.mubr.msk.f32.mxu0 %vm517_vm1, %v12135_v25  ;;  %v14511_v25 = vld [vmem:[#allocation26_spill] sm:$0xff] }
 0x209   : > { %10487 = vmatmul.mubr.msk.f32.gmra.mrb[18].mxu0 %vm517_vm1, %v12142_v26  ;;  %v14512_v26 = vld [vmem:[#allocation27_spill] sm:$0xff] }
 0x20a   : > { %10489 = vmatprep.mubr.msk.f32.mxu0 %vm517_vm1, %v14495_v7 }
 0x20d   : > { %10490 = vmatmul.mubr.msk.f32.gmra.mrb[20].mxu0 %vm517_vm1, %v14496_v8 }
 0x20e   : > { %10492 = vmatprep.mubr.msk.f32.mxu0 %vm517_vm1, %v14497_v9 }
 0x211   : > { %10493 = vmatmul.mubr.msk.f32.gmra.mrb[22].mxu0 %vm517_vm1, %v14498_v10 }
 0x212   : > { %10495 = vmatprep.mubr.msk.f32.mxu0 %vm517_vm1, %v14499_v11 }
 0x215   : > { %10496 = vmatmul.mubr.msk.f32.gmra.mrb[24].mxu0 %vm517_vm1, %v14500_v12 }
 0x216   : > { %10498 = vmatprep.mubr.msk.f32.mxu0 %vm517_vm1, %v14501_v13 }
 0x219   : > { %10499 = vmatmul.mubr.msk.f32.gmra.mrb[26].mxu0 %vm517_vm1, %v14502_v14 }
 0x21a   : > { %10501 = vmatprep.mubr.msk.f32.mxu0 %vm517_vm1, %v14503_v15 }
 0x21d   : > { %10502 = vmatmul.mubr.msk.f32.gmra.mrb[28].mxu0 %vm517_vm1, %v14504_v17 }
 0x21e   : > { %10504 = vmatprep.mubr.msk.f32.mxu0 %vm517_vm1, %v8919_v16 }
 0x221   : > { %10505 = vmatmul.mubr.msk.f32.gmra.mrb[30].mxu0 %vm517_vm1, %v8920_v18 }
 0x222   : > { %10509 = vmatprep.mubr.msk.f32.mxu0 %vm517_vm1, %v14505_v19 }
 0x225   : > { %10510 = vmatmul.mubr.msk.f32.vlgmr.msra.gmra.mrb[0].mxu0 %vm517_vm1, %v14506_v20 }
 0x226   : > { %10512 = vmatprep.mubr.msk.f32.mxu0 %vm517_vm1, %v14507_v21 }
 0x229   : > { %10513 = vmatmul.mubr.msk.f32.gmra.mrb[2].mxu0 %vm517_vm1, %v14508_v22 }
 0x22a   : > { %10515 = vmatprep.mubr.msk.f32.mxu0 %vm517_vm1, %v14509_v23 }
 0x22d   : > { %10516 = vmatmul.mubr.msk.f32.gmra.mrb[4].mxu0 %vm517_vm1, %v14477_v4 }
 0x22e   : > { %10518 = vmatprep.mubr.msk.f32.mxu0 %vm517_vm1, %v14510_v24 }
 0x231   : > { %10519 = vmatmul.mubr.msk.f32.gmra.mrb[6].mxu0 %vm517_vm1, %v14511_v25 }
 0x232   : > { %10521 = vmatprep.mubr.msk.f32.mxu0 %vm517_vm1, %v14512_v26 }
 0x235   : > { %10522 = vmatmul.mubr.msk.f32.gmra.mrb[8].mxu0 %vm517_vm1, %v14513_v42 }
 0x236   : > { %10524 = vmatprep.mubr.msk.f32.mxu0 %vm517_vm1, %v14514_v43 }
 0x239   : > { %10525 = vmatmul.mubr.msk.f32.gmra.mrb[10].mxu0 %vm517_vm1, %v14515_v44 }
 0x23a   : > { %10527 = vmatprep.mubr.msk.f32.mxu0 %vm517_vm1, %v14516_v45 }
 0x23d   : > { %10528 = vmatmul.mubr.msk.f32.gmra.mrb[12].mxu0 %vm517_vm1, %v14517_v46 }
 0x23e   : > { %10530 = vmatprep.mubr.msk.f32.mxu0 %vm517_vm1, %v14518_v47 }
 0x241   : > { %10531 = vmatmul.mubr.msk.f32.gmra.mrb[14].mxu0 %vm517_vm1, %v14487_v28  ;;  %v14521_v28 = vld [vmem:[#allocation40_spill] sm:$0xff] }
 0x242   : > { %10533 = vmatprep.mubr.msk.f32.mxu0 %vm517_vm1, %v14519_v48 }
 0x245   : > { %10534 = vmatmul.mubr.msk.f32.gmra.mrb[16].mxu0 %vm517_vm1, %v14489_v29  ;;  %v14522_v29 = vld [vmem:[#allocation42_spill] sm:$0xff] }
 0x246   : > { %10536 = vmatprep.mubr.msk.f32.mxu0 %vm517_vm1, %v14490_v31 }
 0x249   : > { %10537 = vmatmul.mubr.msk.f32.gmra.mrb[18].mxu0 %vm517_vm1, %v14520_v49 }
 0x24a   : > { %10539 = vmatprep.mubr.msk.f32.mxu0 %vm517_vm1, %v14492_v30  ;;  %v8985_v30 = vld [vmem:[%s12022_s20 + $0x19a] sm:$0xff] }
 0x24d   : > { %10540 = vmatmul.mubr.msk.f32.gmra.mrb[20].mxu0 %vm517_vm1, %v12478_v32  ;;  %v8986_v32 = vld [vmem:[%s12022_s20 + $0x1a2] sm:$0xff]  ;;  %s14052_s20 = scalar_lea.vmem [#allocation3], %s8521_s30 }
 0x24e   : > { %10542 = vmatprep.mubr.msk.f32.mxu0 %vm517_vm1, %v14521_v28  ;;  %s8407_s0 = sshll.u32 %s14052_s20, 4  ;;  %s14184_s0 = int_to_ptr.vmem [resolvable:$true] %s8407_s0 }
 0x24f   : > { %s11789_s15 = scalar_lea.vmem %s14184_s0, 4096  ;;  %p11796_p0 = scmp.lt.s32.totalorder %s14184_s0, %s11794_s2 }
 0x250   : > { %p11790_p11 = scmp.ne.s32.totalorder %s14184_s0, %s11789_s15 }
 0x251   : > { %10543 = vmatmul.mubr.msk.f32.gmra.mrb[22].mxu0 %vm517_vm1, %v12488_v33  ;;  %v11885_v33 = vmov 0.0  }
 0x252   : > { %10545 = vmatprep.mubr.msk.f32.mxu0 %vm517_vm1, %v14494_v5  ;;  %3976 = vst.msk [vmem:[#allocation2 + $0x20] sm:$0xff] %vm3970_vm2, %v11885_v33  ;;  %3971 = vst.msk [vmem:[#allocation2] sm:$0xff] %vm3970_vm2, %v11885_v33  ;;  %p11791_p12 = pnand %p11790_p11, %p11998_p5 }
 0x253   : > { %3972 = vst.msk [vmem:[#allocation2 + $0x8] sm:$0xff] %vm3970_vm2, %v11885_v33  ;;  %3975 = vst.msk [vmem:[#allocation2 + $0x18] sm:$0xff] %vm3970_vm2, %v11885_v33 }
 0x254   : > { %3978 = vst.msk [vmem:[#allocation2 + $0x30] sm:$0xff] %vm3970_vm2, %v11885_v33  ;;  %3979 = vst.msk [vmem:[#allocation2 + $0x38] sm:$0xff] %vm3970_vm2, %v11885_v33  ;;  %p11792_p13 = pneg %p11791_p12 }
 0x255   : > { %10546 = vmatmul.mubr.msk.f32.gmra.mrb[24].mxu0 %vm517_vm1, %v12498_v35  ;;  %3981 = vst.msk [vmem:[#allocation2 + $0x48] sm:$0xff] %vm3970_vm2, %v11885_v33  ;;  %3982 = vst.msk [vmem:[#allocation2 + $0x50] sm:$0xff] %vm3970_vm2, %v11885_v33 }
 0x256   : > { %10548 = vmatprep.mubr.msk.f32.mxu0 %vm517_vm1, %v14522_v29  ;;  %3984 = vst.msk [vmem:[#allocation2 + $0x60] sm:$0xff] %vm3970_vm2, %v11885_v33  ;;  %3985 = vst.msk [vmem:[#allocation2 + $0x68] sm:$0xff] %vm3970_vm2, %v11885_v33 }
 0x257   : > { %3987 = vst.msk [vmem:[#allocation2 + $0x78] sm:$0xff] %vm3970_vm2, %v11885_v33  ;;  %3988 = vst.msk [vmem:[#allocation2 + $0x80] sm:$0xff] %vm3970_vm2, %v11885_v33 }
 0x258   : > { %3990 = vst.msk [vmem:[#allocation2 + $0x90] sm:$0xff] %vm3970_vm2, %v11885_v33  ;;  %3991 = vst.msk [vmem:[#allocation2 + $0x98] sm:$0xff] %vm3970_vm2, %v11885_v33 }
 0x259   : > { %10549 = vmatmul.mubr.msk.f32.gmra.mrb[26].mxu0 %vm517_vm1, %v12508_v38  ;;  %3993 = vst.msk [vmem:[#allocation2 + $0xa8] sm:$0xff] %vm3970_vm2, %v11885_v33  ;;  %3994 = vst.msk [vmem:[#allocation2 + $0xb0] sm:$0xff] %vm3970_vm2, %v11885_v33 }
 0x25a   : > { %10551 = vmatprep.mubr.msk.f32.mxu0 %vm517_vm1, %v12727_v27  ;;  %3996 = vst.msk [vmem:[#allocation2 + $0xc0] sm:$0xff] %vm3970_vm2, %v11885_v33  ;;  %3997 = vst.msk [vmem:[#allocation2 + $0xc8] sm:$0xff] %vm3970_vm2, %v11885_v33  ;;  %v9022_v27 = vld [vmem:[%s14288_s3 + $0x10] sm:$0xff] }
 0x25b   : > { %3999 = vst.msk [vmem:[#allocation2 + $0xd8] sm:$0xff] %vm3970_vm2, %v11885_v33  ;;  %4000 = vst.msk [vmem:[#allocation2 + $0xe0] sm:$0xff] %vm3970_vm2, %v11885_v33  ;;  %v11121_v51 = vpack.c.bf16 %v9023_v50, %v9022_v27  ;;  %v4093_v52 = vld [vmem:[#allocation2 + $0x1] sm:$0xff] }
 0x25c   : > { %4002 = vst.msk [vmem:[#allocation2 + $0xf0] sm:$0xff] %vm3970_vm2, %v11885_v33  ;;  %4003 = vst.msk [vmem:[#allocation2 + $0xf8] sm:$0xff] %vm3970_vm2, %v11885_v33  ;;  %10561 = vmatprep.mubr.msk.f32.mxu1 %vm3970_vm2, %v4093_v52 }
 0x25d   : > { %10552 = vmatmul.mubr.msk.f32.gmra.mrb[28].mxu0 %vm517_vm1, %v12734_v39  ;;  %4005 = vst.msk [vmem:[#allocation2 + $0x108] sm:$0xff] %vm3970_vm2, %v11885_v33  ;;  %4006 = vst.msk [vmem:[#allocation2 + $0x110] sm:$0xff] %vm3970_vm2, %v11885_v33  ;;  %11122 = vmatprep.subr.bf16.mxu1 %v11121_v51 }
 0x25e   : > { %10554 = vmatprep.mubr.msk.f32.mxu0 %vm517_vm1, %v8985_v30  ;;  %4008 = vst.msk [vmem:[#allocation2 + $0x120] sm:$0xff] %vm3970_vm2, %v11885_v33  ;;  %4009 = vst.msk [vmem:[#allocation2 + $0x128] sm:$0xff] %vm3970_vm2, %v11885_v33  ;;  %11124 = vmatpush3.bf16.msra.mxu1 %v11121_v51 }
 0x25f   : > { %4011 = vst.msk [vmem:[#allocation2 + $0x138] sm:$0xff] %vm3970_vm2, %v11885_v33  ;;  %4012 = vst.msk [vmem:[#allocation2 + $0x140] sm:$0xff] %vm3970_vm2, %v11885_v33  ;;  %11126 = vmatprep.subr.bf16.mxu1 %v11125_v56 }
 0x260   : > { %4014 = vst.msk [vmem:[#allocation2 + $0x150] sm:$0xff] %vm3970_vm2, %v11885_v33  ;;  %4015 = vst.msk [vmem:[#allocation2 + $0x158] sm:$0xff] %vm3970_vm2, %v11885_v33 }
 0x261   : > { %10555 = vmatmul.mubr.msk.f32.gmra.mrb[30].mxu0 %vm517_vm1, %v8986_v32  ;;  %4017 = vst.msk [vmem:[#allocation2 + $0x168] sm:$0xff] %vm3970_vm2, %v11885_v33  ;;  %4018 = vst.msk [vmem:[#allocation2 + $0x170] sm:$0xff] %vm3970_vm2, %v11885_v33 }
 0x262   : > { %4020 = vst.msk [vmem:[#allocation2 + $0x180] sm:$0xff] %vm3970_vm2, %v11885_v33  ;;  %4021 = vst.msk [vmem:[#allocation2 + $0x188] sm:$0xff] %vm3970_vm2, %v11885_v33 }
 0x263   : > { %4023 = vst.msk [vmem:[#allocation2 + $0x198] sm:$0xff] %vm3970_vm2, %v11885_v33  ;;  %4024 = vst.msk [vmem:[#allocation2 + $0x1a0] sm:$0xff] %vm3970_vm2, %v11885_v33 }
 0x264   : > { %3977 = vst.msk [vmem:[#allocation2 + $0x28] sm:$0x3] %vm3973_vm3, %v11885_v33  ;;  %3974 = vst.msk [vmem:[#allocation2 + $0x10] sm:$0x3] %vm3973_vm3, %v11885_v33 }
 0x265   : > { %3980 = vst.msk [vmem:[#allocation2 + $0x40] sm:$0x3] %vm3973_vm3, %v11885_v33  ;;  %3983 = vst.msk [vmem:[#allocation2 + $0x58] sm:$0x3] %vm3973_vm3, %v11885_v33 }
 0x266   : > { %3986 = vst.msk [vmem:[#allocation2 + $0x70] sm:$0x3] %vm3973_vm3, %v11885_v33  ;;  %3989 = vst.msk [vmem:[#allocation2 + $0x88] sm:$0x3] %vm3973_vm3, %v11885_v33 }
 0x267   : > { %3992 = vst.msk [vmem:[#allocation2 + $0xa0] sm:$0x3] %vm3973_vm3, %v11885_v33  ;;  %3995 = vst.msk [vmem:[#allocation2 + $0xb8] sm:$0x3] %vm3973_vm3, %v11885_v33 }
 0x268   : > { %3998 = vst.msk [vmem:[#allocation2 + $0xd0] sm:$0x3] %vm3973_vm3, %v11885_v33  ;;  %4001 = vst.msk [vmem:[#allocation2 + $0xe8] sm:$0x3] %vm3973_vm3, %v11885_v33 }
 0x269   : > { %4004 = vst.msk [vmem:[#allocation2 + $0x100] sm:$0x3] %vm3973_vm3, %v11885_v33  ;;  %4007 = vst.msk [vmem:[#allocation2 + $0x118] sm:$0x3] %vm3973_vm3, %v11885_v33 }
 0x26a   : > { %4010 = vst.msk [vmem:[#allocation2 + $0x130] sm:$0x3] %vm3973_vm3, %v11885_v33  ;;  %4013 = vst.msk [vmem:[#allocation2 + $0x148] sm:$0x3] %vm3973_vm3, %v11885_v33 }
 0x26b   : > { %4016 = vst.msk [vmem:[#allocation2 + $0x160] sm:$0x3] %vm3973_vm3, %v11885_v33  ;;  %4019 = vst.msk [vmem:[#allocation2 + $0x178] sm:$0x3] %vm3973_vm3, %v11885_v33  ;;  %v4094_v53 = vld [vmem:[#allocation2 + $0x9] sm:$0xff] }
 0x26c   : > { %4022 = vst.msk [vmem:[#allocation2 + $0x190] sm:$0x3] %vm3973_vm3, %v11885_v33  ;;  %4025 = vst.msk [vmem:[#allocation2 + $0x1a8] sm:$0x3] %vm3973_vm3, %v11885_v33  ;;  %10562 = vmatmul.mubr.msk.f32.vlgmr.msra.gmra.mrb[0].mxu1 %vm3970_vm2, %v4094_v53 }
 0x26d   : > { %11128 = vmatpush3.bf16.msra.mxu1 %v11125_v56 }
 0x26e   : > { %11130 = vmatprep.subr.bf16.mxu1 %v13010_v59 }
 0x2f8   : > { %v10511_v61 = vpop.f32.mrb[0].mxu0 }
 0x2f9   : > { %v3907_v62 = vadd.f32 %v10511_v61, %v13016_v60  ;;  %v3708_v63 = vpop.f32.mrb[1].mxu0 }
 0x2fa   : > { %v3906_v0 = vadd.f32 %v13016_v60, %v3708_v63 }
 0x2fb   : > { %v3939_v1 = vmax.f32 %v3907_v62, 0.0 }
 0x2fc   : > { %v3938_v2 = vmax.f32 %v3906_v0, 0.0  ;;  %v10514_v3 = vpop.f32.mrb[2].mxu0 }
 0x2fd   : > { %4028 = vst.msk [vmem:[#allocation2 + $0x21] sm:$0xff] %vm3970_vm2, %v3939_v1  ;;  %v3909_v36 = vadd.f32 %v10514_v3, %v13016_v60  ;;  %v3718_v35 = vpop.f32.mrb[3].mxu0 }
 0x2fe   : > { %4027 = vst.msk [vmem:[#allocation2 + $0x19] sm:$0xff] %vm3970_vm2, %v3938_v2  ;;  %v3908_v38 = vadd.f32 %v13016_v60, %v3718_v35 }
 0x2ff   : > { %v3941_v34 = vmax.f32 %v3909_v36, 0.0 }
 0x300   : > { %v3940_v37 = vmax.f32 %v3908_v38, 0.0  ;;  %v10517_v6 = vpop.f32.mrb[4].mxu0 }
 0x301   : > { %4030 = vst.msk [vmem:[#allocation2 + $0x39] sm:$0xff] %vm3970_vm2, %v3941_v34  ;;  %v3911_v5 = vadd.f32 %v10517_v6, %v13016_v60  ;;  %v3728_v31 = vpop.f32.mrb[5].mxu0 }
 0x302   : > { %4029 = vst.msk [vmem:[#allocation2 + $0x31] sm:$0xff] %vm3970_vm2, %v3940_v37  ;;  %v3910_v4 = vadd.f32 %v13016_v60, %v3728_v31 }
 0x303   : > { %v3943_v39 = vmax.f32 %v3911_v5, 0.0 }
 0x304   : > { %v3942_v40 = vmax.f32 %v3910_v4, 0.0  ;;  %v10520_v41 = vpop.f32.mrb[6].mxu0  ;;  %v13036_v11 = vld [vmem:[#allocation2 + $0x21] sm:$0xff] }
 0x305   : > { %4032 = vst.msk [vmem:[#allocation2 + $0x51] sm:$0xff] %vm3970_vm2, %v3943_v39  ;;  %v3913_v7 = vadd.f32 %v10520_v41, %v13016_v60  ;;  %v3738_v8 = vpop.f32.mrb[7].mxu0  ;;  %v13030_v9 = vld [vmem:[#allocation2 + $0x19] sm:$0xff] }
 0x306   : > { %4031 = vst.msk [vmem:[#allocation2 + $0x49] sm:$0xff] %vm3970_vm2, %v3942_v40  ;;  %v3912_v10 = vadd.f32 %v13016_v60, %v3738_v8  ;;  %10564 = vmatprep.mubr.msk.f32.mxu1 %vm3970_vm2, %v13030_v9 }
 0x307   : > { %v3945_v12 = vmax.f32 %v3913_v7, 0.0  ;;  %10565 = vmatmul.mubr.msk.f32.gmra.mrb[2].mxu1 %vm3970_vm2, %v13036_v11 }
 0x308   : > { %v3944_v13 = vmax.f32 %v3912_v10, 0.0  ;;  %v10523_v14 = vpop.f32.mrb[8].mxu0  ;;  %v13048_v19 = vld [vmem:[#allocation2 + $0x39] sm:$0xff] }
 0x309   : > { %4034 = vst.msk [vmem:[#allocation2 + $0x69] sm:$0xff] %vm3970_vm2, %v3945_v12  ;;  %v3915_v15 = vadd.f32 %v10523_v14, %v13016_v60  ;;  %v3748_v16 = vpop.f32.mrb[9].mxu0  ;;  %v13042_v17 = vld [vmem:[#allocation2 + $0x31] sm:$0xff] }
 0x30a   : > { %4033 = vst.msk [vmem:[#allocation2 + $0x61] sm:$0xff] %vm3970_vm2, %v3944_v13  ;;  %v3914_v18 = vadd.f32 %v13016_v60, %v3748_v16  ;;  %10567 = vmatprep.mubr.msk.f32.mxu1 %vm3970_vm2, %v13042_v17 }
 0x30b   : > { %v3947_v20 = vmax.f32 %v3915_v15, 0.0  ;;  %10568 = vmatmul.mubr.msk.f32.gmra.mrb[4].mxu1 %vm3970_vm2, %v13048_v19 }
 0x30c   : > { %v3946_v21 = vmax.f32 %v3914_v18, 0.0  ;;  %v10526_v22 = vpop.f32.mrb[10].mxu0  ;;  %v13060_v42 = vld [vmem:[#allocation2 + $0x51] sm:$0xff] }
 0x30d   : > { %4036 = vst.msk [vmem:[#allocation2 + $0x81] sm:$0xff] %vm3970_vm2, %v3947_v20  ;;  %v3917_v23 = vadd.f32 %v10526_v22, %v13016_v60  ;;  %v3758_v24 = vpop.f32.mrb[11].mxu0  ;;  %v13054_v25 = vld [vmem:[#allocation2 + $0x49] sm:$0xff] }
 0x30e   : > { %4035 = vst.msk [vmem:[#allocation2 + $0x79] sm:$0xff] %vm3970_vm2, %v3946_v21  ;;  %v3916_v26 = vadd.f32 %v13016_v60, %v3758_v24  ;;  %10570 = vmatprep.mubr.msk.f32.mxu1 %vm3970_vm2, %v13054_v25 }
 0x30f   : > { %v3949_v43 = vmax.f32 %v3917_v23, 0.0  ;;  %10571 = vmatmul.mubr.msk.f32.gmra.mrb[6].mxu1 %vm3970_vm2, %v13060_v42 }
 0x310   : > { %v3948_v44 = vmax.f32 %v3916_v26, 0.0  ;;  %v10529_v45 = vpop.f32.mrb[12].mxu0  ;;  %v13072_v28 = vld [vmem:[#allocation2 + $0x69] sm:$0xff] }
 0x311   : > { %4038 = vst.msk [vmem:[#allocation2 + $0x99] sm:$0xff] %vm3970_vm2, %v3949_v43  ;;  %v3919_v46 = vadd.f32 %v10529_v45, %v13016_v60  ;;  %v3768_v47 = vpop.f32.mrb[13].mxu0  ;;  %v13066_v48 = vld [vmem:[#allocation2 + $0x61] sm:$0xff] }
 0x312   : > { %4037 = vst.msk [vmem:[#allocation2 + $0x91] sm:$0xff] %vm3970_vm2, %v3948_v44  ;;  %v3918_v49 = vadd.f32 %v13016_v60, %v3768_v47  ;;  %10573 = vmatprep.mubr.msk.f32.mxu1 %vm3970_vm2, %v13066_v48 }
 0x313   : > { %v3951_v29 = vmax.f32 %v3919_v46, 0.0  ;;  %10574 = vmatmul.mubr.msk.f32.gmra.mrb[8].mxu1 %vm3970_vm2, %v13072_v28 }
 0x314   : > { %v3950_v30 = vmax.f32 %v3918_v49, 0.0  ;;  %v10532_v32 = vpop.f32.mrb[14].mxu0  ;;  %v13084_v52 = vld [vmem:[#allocation2 + $0x81] sm:$0xff] }
 0x315   : > { %4040 = vst.msk [vmem:[#allocation2 + $0xb1] sm:$0xff] %vm3970_vm2, %v3951_v29  ;;  %v3921_v33 = vadd.f32 %v10532_v32, %v13016_v60  ;;  %v3778_v27 = vpop.f32.mrb[15].mxu0  ;;  %v13078_v50 = vld [vmem:[#allocation2 + $0x79] sm:$0xff] }
 0x316   : > { %4039 = vst.msk [vmem:[#allocation2 + $0xa9] sm:$0xff] %vm3970_vm2, %v3950_v30  ;;  %v3920_v51 = vadd.f32 %v13016_v60, %v3778_v27  ;;  %10576 = vmatprep.mubr.msk.f32.mxu1 %vm3970_vm2, %v13078_v50 }
 0x317   : > { %v3953_v53 = vmax.f32 %v3921_v33, 0.0  ;;  %10577 = vmatmul.mubr.msk.f32.gmra.mrb[10].mxu1 %vm3970_vm2, %v13084_v52 }
 0x318   : > { %v3952_v54 = vmax.f32 %v3920_v51, 0.0  ;;  %v10535_v55 = vpop.f32.mrb[16].mxu0  ;;  %v13096_v62 = vld [vmem:[#allocation2 + $0x99] sm:$0xff] }
 0x319   : > { %4042 = vst.msk [vmem:[#allocation2 + $0xc9] sm:$0xff] %vm3970_vm2, %v3953_v53  ;;  %v3923_v56 = vadd.f32 %v10535_v55, %v13016_v60  ;;  %v3788_v57 = vpop.f32.mrb[17].mxu0  ;;  %v13090_v58 = vld [vmem:[#allocation2 + $0x91] sm:$0xff] }
 0x31a   : > { %4041 = vst.msk [vmem:[#allocation2 + $0xc1] sm:$0xff] %vm3970_vm2, %v3952_v54  ;;  %v3922_v61 = vadd.f32 %v13016_v60, %v3788_v57  ;;  %10579 = vmatprep.mubr.msk.f32.mxu1 %vm3970_vm2, %v13090_v58 }
 0x31b   : > { %v3955_v63 = vmax.f32 %v3923_v56, 0.0  ;;  %10580 = vmatmul.mubr.msk.f32.gmra.mrb[12].mxu1 %vm3970_vm2, %v13096_v62 }
 0x31c   : > { %v3954_v0 = vmax.f32 %v3922_v61, 0.0  ;;  %v10538_v1 = vpop.f32.mrb[18].mxu0  ;;  %v13108_v38 = vld [vmem:[#allocation2 + $0xb1] sm:$0xff] }
 0x31d   : > { %4044 = vst.msk [vmem:[#allocation2 + $0xe1] sm:$0xff] %vm3970_vm2, %v3955_v63  ;;  %v3925_v2 = vadd.f32 %v10538_v1, %v13016_v60  ;;  %v3798_v3 = vpop.f32.mrb[19].mxu0  ;;  %v13102_v36 = vld [vmem:[#allocation2 + $0xa9] sm:$0xff] }
 0x31e   : > { %4043 = vst.msk [vmem:[#allocation2 + $0xd9] sm:$0xff] %vm3970_vm2, %v3954_v0  ;;  %v3924_v35 = vadd.f32 %v13016_v60, %v3798_v3  ;;  %10582 = vmatprep.mubr.msk.f32.mxu1 %vm3970_vm2, %v13102_v36 }
 0x31f   : > { %v3957_v34 = vmax.f32 %v3925_v2, 0.0  ;;  %10583 = vmatmul.mubr.msk.f32.gmra.mrb[14].mxu1 %vm3970_vm2, %v13108_v38 }
 0x320   : > { %v3956_v37 = vmax.f32 %v3924_v35, 0.0  ;;  %v10541_v6 = vpop.f32.mrb[20].mxu0  ;;  %v13120_v40 = vld [vmem:[#allocation2 + $0xc9] sm:$0xff] }
 0x321   : > { %4046 = vst.msk [vmem:[#allocation2 + $0xf9] sm:$0xff] %vm3970_vm2, %v3957_v34  ;;  %v3927_v5 = vadd.f32 %v10541_v6, %v13016_v60  ;;  %v3808_v31 = vpop.f32.mrb[21].mxu0  ;;  %v13114_v4 = vld [vmem:[#allocation2 + $0xc1] sm:$0xff] }
 0x322   : > { %4045 = vst.msk [vmem:[#allocation2 + $0xf1] sm:$0xff] %vm3970_vm2, %v3956_v37  ;;  %v3926_v39 = vadd.f32 %v13016_v60, %v3808_v31  ;;  %10585 = vmatprep.mubr.msk.f32.mxu1 %vm3970_vm2, %v13114_v4  ;;  %v4059_v31 = vld [vmem:[#allocation2] sm:$0xff] }
 0x323   : > { %v3959_v41 = vmax.f32 %v3927_v5, 0.0  ;;  %10586 = vmatmul.mubr.msk.f32.gmra.mrb[16].mxu1 %vm3970_vm2, %v13120_v40 }
 0x324   : > { %v3958_v7 = vmax.f32 %v3926_v39, 0.0  ;;  %v10544_v8 = vpop.f32.mrb[22].mxu0  ;;  %v13132_v15 = vld [vmem:[#allocation2 + $0xe1] sm:$0xff] }
 0x325   : > { %4048 = vst.msk [vmem:[#allocation2 + $0x111] sm:$0xff] %vm3970_vm2, %v3959_v41  ;;  %v3929_v10 = vadd.f32 %v10544_v8, %v13016_v60  ;;  %v3818_v12 = vpop.f32.mrb[23].mxu0  ;;  %v13126_v13 = vld [vmem:[#allocation2 + $0xd9] sm:$0xff]  ;;  %v4060_v8 = vld [vmem:[#allocation2 + $0x8] sm:$0xff] }
 0x326   : > { %4047 = vst.msk [vmem:[#allocation2 + $0x109] sm:$0xff] %vm3970_vm2, %v3958_v7  ;;  %v3928_v14 = vadd.f32 %v13016_v60, %v3818_v12  ;;  %10588 = vmatprep.mubr.msk.f32.mxu1 %vm3970_vm2, %v13126_v13  ;;  %v9122_v41 = vld [vmem:[%s14288_s3 + $0x30] sm:$0xff]  ;;  %v9123_v7 = vld [vmem:[%s14288_s3 + $0x38] sm:$0xff]  ;;  %v13212_v12 = vld [vmem:[#allocation2 + $0x18] sm:$0xff] }
 0x327   : > { %v3961_v16 = vmax.f32 %v3929_v10, 0.0  ;;  %10589 = vmatmul.mubr.msk.f32.gmra.mrb[18].mxu1 %vm3970_vm2, %v13132_v15  ;;  %v13209_v10 = vpack.c.bf16 %v9123_v7, %v9122_v41  ;;  %v9156_v7 = vld [vmem:[%s14288_s3 + $0x40] sm:$0xff] }
 0x328   : > { %v3960_v18 = vmax.f32 %v3928_v14, 0.0  ;;  %v10547_v20 = vpop.f32.mrb[24].mxu0  ;;  %v13144_v26 = vld [vmem:[#allocation2 + $0xf9] sm:$0xff] }
 0x329   : > { %4050 = vst.msk [vmem:[#allocation2 + $0x129] sm:$0xff] %vm3970_vm2, %v3961_v16  ;;  %v3931_v21 = vadd.f32 %v10547_v20, %v13016_v60  ;;  %v3828_v22 = vpop.f32.mrb[25].mxu0  ;;  %v13138_v23 = vld [vmem:[#allocation2 + $0xf1] sm:$0xff]  ;;  %v13218_v14 = vld [vmem:[#allocation2 + $0x20] sm:$0xff]  ;;  %v13230_v20 = vld [vmem:[#allocation2 + $0x48] sm:$0xff] }
 0x32a   : > { %4049 = vst.msk [vmem:[#allocation2 + $0x121] sm:$0xff] %vm3970_vm2, %v3960_v18  ;;  %v3930_v24 = vadd.f32 %v13016_v60, %v3828_v22  ;;  %10591 = vmatprep.mubr.msk.f32.mxu1 %vm3970_vm2, %v13138_v23  ;;  %v13222_v16 = vld [vmem:[#allocation2 + $0x30] sm:$0xff]  ;;  %v13226_v18 = vld [vmem:[#allocation2 + $0x38] sm:$0xff]  ;;  %v13242_v22 = vld [vmem:[#allocation2 + $0x68] sm:$0xff] }
 0x32b   : > { %v3963_v43 = vmax.f32 %v3931_v21, 0.0  ;;  %10592 = vmatmul.mubr.msk.f32.gmra.mrb[20].mxu1 %vm3970_vm2, %v13144_v26  ;;  %v13238_v21 = vld [vmem:[#allocation2 + $0x60] sm:$0xff] }
 0x32c   : > { %v3962_v44 = vmax.f32 %v3930_v24, 0.0  ;;  %v10550_v45 = vpop.f32.mrb[26].mxu0  ;;  %v13156_v30 = vld [vmem:[#allocation2 + $0x111] sm:$0xff] }
 0x32d   : > { %4052 = vst.msk [vmem:[#allocation2 + $0x141] sm:$0xff] %vm3970_vm2, %v3963_v43  ;;  %v3933_v46 = vadd.f32 %v10550_v45, %v13016_v60  ;;  %v3838_v47 = vpop.f32.mrb[27].mxu0  ;;  %v13150_v49 = vld [vmem:[#allocation2 + $0x109] sm:$0xff]  ;;  %v13246_v24 = vld [vmem:[#allocation2 + $0x78] sm:$0xff]  ;;  %v13250_v43 = vld [vmem:[#allocation2 + $0x80] sm:$0xff] }
 0x32e   : > { %4051 = vst.msk [vmem:[#allocation2 + $0x139] sm:$0xff] %vm3970_vm2, %v3962_v44  ;;  %v3932_v29 = vadd.f32 %v13016_v60, %v3838_v47  ;;  %10594 = vmatprep.mubr.msk.f32.mxu1 %vm3970_vm2, %v13150_v49  ;;  %v13254_v44 = vld [vmem:[#allocation2 + $0x90] sm:$0xff]  ;;  %v13258_v45 = vld [vmem:[#allocation2 + $0x98] sm:$0xff] }
 0x32f   : > { %v3965_v32 = vmax.f32 %v3933_v46, 0.0  ;;  %10595 = vmatmul.mubr.msk.f32.gmra.mrb[22].mxu1 %vm3970_vm2, %v13156_v30  ;;  %v13262_v46 = vld [vmem:[#allocation2 + $0xa8] sm:$0xff]  ;;  %v13266_v47 = vld [vmem:[#allocation2 + $0xb0] sm:$0xff] }
 0x330   : > { %v3964_v33 = vmax.f32 %v3932_v29, 0.0  ;;  %v10553_v27 = vpop.f32.mrb[28].mxu0  ;;  %v13168_v56 = vld [vmem:[#allocation2 + $0x129] sm:$0xff]  ;;  %v13270_v29 = vld [vmem:[#allocation2 + $0xc0] sm:$0xff] }
 0x331   : > { %4054 = vst.msk [vmem:[#allocation2 + $0x159] sm:$0xff] %vm3970_vm2, %v3965_v32  ;;  %v3935_v51 = vadd.f32 %v10553_v27, %v13016_v60  ;;  %v3848_v53 = vpop.f32.mrb[29].mxu0  ;;  %v13162_v54 = vld [vmem:[#allocation2 + $0x121] sm:$0xff] }
 0x332   : > { %4053 = vst.msk [vmem:[#allocation2 + $0x151] sm:$0xff] %vm3970_vm2, %v3964_v33  ;;  %v3934_v55 = vadd.f32 %v13016_v60, %v3848_v53  ;;  %10597 = vmatprep.mubr.msk.f32.mxu1 %vm3970_vm2, %v13162_v54  ;;  %v13274_v32 = vld [vmem:[#allocation2 + $0xc8] sm:$0xff]  ;;  %v13278_v33 = vld [vmem:[#allocation2 + $0xd8] sm:$0xff]  ;;  %v13282_v27 = vld [vmem:[#allocation2 + $0xe0] sm:$0xff] }
 0x333   : > { %v3967_v57 = vmax.f32 %v3935_v51, 0.0  ;;  %10598 = vmatmul.mubr.msk.f32.gmra.mrb[24].mxu1 %vm3970_vm2, %v13168_v56  ;;  %v13286_v51 = vld [vmem:[#allocation2 + $0xf0] sm:$0xff]  ;;  %v13290_v53 = vld [vmem:[#allocation2 + $0xf8] sm:$0xff] }
 0x334   : > { %v3966_v61 = vmax.f32 %v3934_v55, 0.0  ;;  %v10556_v63 = vpop.f32.mrb[30].mxu0  ;;  %v13180_v35 = vld [vmem:[#allocation2 + $0x141] sm:$0xff] }
 0x335   : > { %4056 = vst.msk [vmem:[#allocation2 + $0x171] sm:$0xff] %vm3970_vm2, %v3967_v57  ;;  %v3937_v0 = vadd.f32 %v10556_v63, %v13016_v60  ;;  %v3858_v1 = vpop.f32.mrb[31].mxu0  ;;  %v13174_v2 = vld [vmem:[#allocation2 + $0x139] sm:$0xff]  ;;  %v13294_v55 = vld [vmem:[#allocation2 + $0x108] sm:$0xff]  ;;  %v13298_v57 = vld [vmem:[#allocation2 + $0x110] sm:$0xff] }
 0x336   : > { %4055 = vst.msk [vmem:[#allocation2 + $0x169] sm:$0xff] %vm3970_vm2, %v3966_v61  ;;  %v3936_v3 = vadd.f32 %v13016_v60, %v3858_v1  ;;  %10600 = vmatprep.mubr.msk.f32.mxu1 %vm3970_vm2, %v13174_v2  ;;  %v13302_v61 = vld [vmem:[#allocation2 + $0x120] sm:$0xff]  ;;  %v13306_v63 = vld [vmem:[#allocation2 + $0x128] sm:$0xff] }
 0x337   : > { %v3969_v34 = vmax.f32 %v3937_v0, 0.0  ;;  %10601 = vmatmul.mubr.msk.f32.gmra.mrb[26].mxu1 %vm3970_vm2, %v13180_v35  ;;  %v13310_v0 = vld [vmem:[#allocation2 + $0x138] sm:$0xff]  ;;  %v13314_v1 = vld [vmem:[#allocation2 + $0x140] sm:$0xff] }
 0x338   : > { %v3968_v37 = vmax.f32 %v3936_v3, 0.0  ;;  %v13190_v60 = vld [vmem:[#allocation2 + $0x159] sm:$0xff] }
 0x339   : > { %4058 = vst.msk [vmem:[#allocation2 + $0x189] sm:$0xff] %vm3970_vm2, %v3969_v34  ;;  %v13185_v6 = vld [vmem:[#allocation2 + $0x151] sm:$0xff]  ;;  %14525 = vst [vmem:[#allocation18_spill] sm:$0xff] %v13190_v60 }
 0x33a   : > { %14524 = vst [vmem:[#allocation17_spill] sm:$0xff] %v13185_v6  ;;  %4057 = vst.msk [vmem:[#allocation2 + $0x181] sm:$0xff] %vm3970_vm2, %v3968_v37  ;;  %10603 = vmatprep.mubr.msk.f32.mxu1 %vm3970_vm2, %v13185_v6  ;;  %v13318_v3 = vld [vmem:[#allocation2 + $0x150] sm:$0xff]  ;;  %v13322_v34 = vld [vmem:[#allocation2 + $0x158] sm:$0xff] }
 0x33b   : > { %10604 = vmatmul.mubr.msk.f32.gmra.mrb[28].mxu1 %vm3970_vm2, %v13190_v60  ;;  %v13344_v60 = vld [vmem:[#allocation2 + $0x1a] sm:$0xff]  ;;  %v13350_v6 = vld [vmem:[#allocation2 + $0x22] sm:$0xff] }
 0x33c   : > { %v13198_v39 = vld [vmem:[#allocation2 + $0x171] sm:$0xff] }
 0x33d   : > { %v13194_v5 = vld [vmem:[#allocation2 + $0x169] sm:$0xff]  ;;  %14527 = vst [vmem:[#allocation34_spill] sm:$0xff] %v13198_v39 }
 0x33e   : > { %14526 = vst [vmem:[#allocation24_spill] sm:$0xff] %v13194_v5  ;;  %10606 = vmatprep.mubr.msk.f32.mxu1 %vm3970_vm2, %v13194_v5  ;;  %v13326_v37 = vld [vmem:[#allocation2 + $0x168] sm:$0xff]  ;;  %v13330_v41 = vld [vmem:[#allocation2 + $0x170] sm:$0xff] }
 0x33f   : > { %10607 = vmatmul.mubr.msk.f32.gmra.mrb[30].mxu1 %vm3970_vm2, %v13198_v39  ;;  %v4771_v39 = vld [vmem:[#allocation2 + $0xa] sm:$0xff] }
 0x340   : > { %10613 = vmatprep.mubr.msk.f32.mxu1 %vm3970_vm2, %v4059_v31  ;;  %v4770_v31 = vld [vmem:[#allocation2 + $0x2] sm:$0xff] }
 0x343   : > { %10614 = vmatmul.mubr.msk.f32.vlgmr.msra.gmra.mrb[0].mxu1 %vm3970_vm2, %v4060_v8  ;;  %v9157_v8 = vld [vmem:[%s14288_s3 + $0x48] sm:$0xff] }
 0x344   : > { %10616 = vmatprep.mubr.msk.f32.mxu1 %vm3970_vm2, %v13212_v12  ;;  %11132 = vmatpush3.bf16.msra.mxu1 %v13010_v59  ;;  %v13234_v59 = vld [vmem:[#allocation2 + $0x50] sm:$0xff]  ;;  %v13341_v5 = vpack.c.bf16 %v9157_v8, %v9156_v7  ;;  %v13370_v8 = vld [vmem:[#allocation2 + $0x62] sm:$0xff] }
 0x345   : > { %11134 = vmatprep.subr.bf16.mxu1 %v13209_v10  ;;  %v13362_v7 = vld [vmem:[#allocation2 + $0x4a] sm:$0xff]  ;;  %14532 = vst [vmem:[#allocation9_spill] sm:$0xff] %v13370_v8 }
 0x346   : > { %14530 = vst [vmem:[#allocation39_spill] sm:$0xff] %v13362_v7 }
 0x347   : > { %10617 = vmatmul.mubr.msk.f32.gmra.mrb[2].mxu1 %vm3970_vm2, %v13218_v14 }
 0x348   : > { %10619 = vmatprep.mubr.msk.f32.mxu1 %vm3970_vm2, %v13222_v16 }
 0x34b   : > { %10620 = vmatmul.mubr.msk.f32.gmra.mrb[4].mxu1 %vm3970_vm2, %v13226_v18 }
 0x34c   : > { %10622 = vmatprep.mubr.msk.f32.mxu1 %vm3970_vm2, %v13230_v20 }
 0x34f   : > { %10623 = vmatmul.mubr.msk.f32.gmra.mrb[6].mxu1 %vm3970_vm2, %v13234_v59 }
 0x350   : > { %10625 = vmatprep.mubr.msk.f32.mxu1 %vm3970_vm2, %v13238_v21 }
 0x353   : > { %10626 = vmatmul.mubr.msk.f32.gmra.mrb[8].mxu1 %vm3970_vm2, %v13242_v22 }
 0x354   : > { %10628 = vmatprep.mubr.msk.f32.mxu1 %vm3970_vm2, %v13246_v24 }
 0x357   : > { %10629 = vmatmul.mubr.msk.f32.gmra.mrb[10].mxu1 %vm3970_vm2, %v13250_v43 }
 0x358   : > { %10631 = vmatprep.mubr.msk.f32.mxu1 %vm3970_vm2, %v13254_v44 }
 0x35b   : > { %10632 = vmatmul.mubr.msk.f32.gmra.mrb[12].mxu1 %vm3970_vm2, %v13258_v45 }
 0x35c   : > { %10634 = vmatprep.mubr.msk.f32.mxu1 %vm3970_vm2, %v13262_v46 }
 0x35f   : > { %10635 = vmatmul.mubr.msk.f32.gmra.mrb[14].mxu1 %vm3970_vm2, %v13266_v47 }
 0x360   : > { %10637 = vmatprep.mubr.msk.f32.mxu1 %vm3970_vm2, %v13270_v29 }
 0x363   : > { %10638 = vmatmul.mubr.msk.f32.gmra.mrb[16].mxu1 %vm3970_vm2, %v13274_v32 }
 0x364   : > { %10640 = vmatprep.mubr.msk.f32.mxu1 %vm3970_vm2, %v13278_v33 }
 0x367   : > { %10641 = vmatmul.mubr.msk.f32.gmra.mrb[18].mxu1 %vm3970_vm2, %v13282_v27 }
 0x368   : > { %10643 = vmatprep.mubr.msk.f32.mxu1 %vm3970_vm2, %v13286_v51 }
 0x36b   : > { %10644 = vmatmul.mubr.msk.f32.gmra.mrb[20].mxu1 %vm3970_vm2, %v13290_v53 }
 0x36c   : > { %10646 = vmatprep.mubr.msk.f32.mxu1 %vm3970_vm2, %v13294_v55 }
 0x36f   : > { %10647 = vmatmul.mubr.msk.f32.gmra.mrb[22].mxu1 %vm3970_vm2, %v13298_v57 }
 0x370   : > { %10649 = vmatprep.mubr.msk.f32.mxu1 %vm3970_vm2, %v13302_v61 }
 0x373   : > { %10650 = vmatmul.mubr.msk.f32.gmra.mrb[24].mxu1 %vm3970_vm2, %v13306_v63 }
 0x374   : > { %10652 = vmatprep.mubr.msk.f32.mxu1 %vm3970_vm2, %v13310_v0 }
 0x377   : > { %10653 = vmatmul.mubr.msk.f32.gmra.mrb[26].mxu1 %vm3970_vm2, %v13314_v1 }
 0x378   : > { %10655 = vmatprep.mubr.msk.f32.mxu1 %vm3970_vm2, %v13318_v3 }
 0x37b   : > { %10656 = vmatmul.mubr.msk.f32.gmra.mrb[28].mxu1 %vm3970_vm2, %v13322_v34 }
 0x37c   : > { %10658 = vmatprep.mubr.msk.f32.mxu1 %vm3970_vm2, %v13326_v37 }
 0x37f   : > { %10659 = vmatmul.mubr.msk.f32.gmra.mrb[30].mxu1 %vm3970_vm2, %v13330_v41 }
 0x380   : > { %10665 = vmatprep.mubr.msk.f32.mxu1 %vm3970_vm2, %v4770_v31  ;;  %v13354_v31 = vld [vmem:[#allocation2 + $0x32] sm:$0xff] }
 0x381   : > { %14528 = vst [vmem:[#allocation36_spill] sm:$0xff] %v13354_v31 }
 0x383   : > { %10666 = vmatmul.mubr.msk.f32.vlgmr.msra.gmra.mrb[0].mxu1 %vm3970_vm2, %v4771_v39  ;;  %v13358_v39 = vld [vmem:[#allocation2 + $0x3a] sm:$0xff] }
 0x384   : > { %10668 = vmatprep.mubr.msk.f32.mxu1 %vm3970_vm2, %v13344_v60  ;;  %11136 = vmatpush3.bf16.msra.mxu1 %v13209_v10  ;;  %14529 = vst [vmem:[#allocation37_spill] sm:$0xff] %v13358_v39  ;;  %v13366_v10 = vld [vmem:[#allocation2 + $0x52] sm:$0xff] }
 0x385   : > { %11138 = vmatprep.subr.bf16.mxu1 %v13341_v5  ;;  %14531 = vst [vmem:[#allocation41_spill] sm:$0xff] %v13366_v10 }
 0x387   : > { %10669 = vmatmul.mubr.msk.f32.gmra.mrb[2].mxu1 %vm3970_vm2, %v13350_v6 }
 0x388   : > { %10671 = vmatprep.mubr.msk.f32.mxu1 %vm3970_vm2, %v13354_v31  ;;  %v13374_v31 = vld [vmem:[#allocation2 + $0x6a] sm:$0xff] }
 0x389   : > { %14533 = vst [vmem:[#allocation10_spill] sm:$0xff] %v13374_v31 }
 0x38b   : > { %10672 = vmatmul.mubr.msk.f32.gmra.mrb[4].mxu1 %vm3970_vm2, %v13358_v39  ;;  %v13378_v39 = vld [vmem:[#allocation2 + $0x7a] sm:$0xff] }
 0x38c   : > { %10674 = vmatprep.mubr.msk.f32.mxu1 %vm3970_vm2, %v13362_v7  ;;  %14534 = vst [vmem:[#allocation11_spill] sm:$0xff] %v13378_v39  ;;  %v13382_v7 = vld [vmem:[#allocation2 + $0x82] sm:$0xff] }
 0x38d   : > { %14535 = vst [vmem:[#allocation12_spill] sm:$0xff] %v13382_v7 }
 0x38f   : > { %10675 = vmatmul.mubr.msk.f32.gmra.mrb[6].mxu1 %vm3970_vm2, %v13366_v10  ;;  %v13386_v10 = vld [vmem:[#allocation2 + $0x92] sm:$0xff] }
 0x390   : > { %10677 = vmatprep.mubr.msk.f32.mxu1 %vm3970_vm2, %v13370_v8  ;;  %14536 = vst [vmem:[#allocation13_spill] sm:$0xff] %v13386_v10  ;;  %v13390_v8 = vld [vmem:[#allocation2 + $0x9a] sm:$0xff] }
 0x391   : > { %14537 = vst [vmem:[#allocation14_spill] sm:$0xff] %v13390_v8 }
 0x393   : > { %10678 = vmatmul.mubr.msk.f32.gmra.mrb[8].mxu1 %vm3970_vm2, %v13374_v31  ;;  %v13394_v31 = vld [vmem:[#allocation2 + $0xaa] sm:$0xff] }
 0x394   : > { %10680 = vmatprep.mubr.msk.f32.mxu1 %vm3970_vm2, %v13378_v39  ;;  %14538 = vst [vmem:[#allocation15_spill] sm:$0xff] %v13394_v31  ;;  %v13398_v39 = vld [vmem:[#allocation2 + $0xb2] sm:$0xff] }
 0x395   : > { %14539 = vst [vmem:[#allocation16_spill] sm:$0xff] %v13398_v39 }
 0x397   : > { %10681 = vmatmul.mubr.msk.f32.gmra.mrb[10].mxu1 %vm3970_vm2, %v13382_v7  ;;  %v13402_v7 = vld [vmem:[#allocation2 + $0xc2] sm:$0xff] }
 0x398   : > { %10683 = vmatprep.mubr.msk.f32.mxu1 %vm3970_vm2, %v13386_v10  ;;  %14540 = vst [vmem:[#allocation43_spill] sm:$0xff] %v13402_v7  ;;  %v13406_v10 = vld [vmem:[#allocation2 + $0xca] sm:$0xff] }
 0x399   : > { %14541 = vst [vmem:[#allocation44_spill] sm:$0xff] %v13406_v10 }
 0x39b   : > { %10684 = vmatmul.mubr.msk.f32.gmra.mrb[12].mxu1 %vm3970_vm2, %v13390_v8  ;;  %v13410_v8 = vld [vmem:[#allocation2 + $0xda] sm:$0xff] }
 0x39c   : > { %10686 = vmatprep.mubr.msk.f32.mxu1 %vm3970_vm2, %v13394_v31  ;;  %14542 = vst [vmem:[#allocation19_spill] sm:$0xff] %v13410_v8  ;;  %v13414_v31 = vld [vmem:[#allocation2 + $0xe2] sm:$0xff] }
 0x39d   : > { %14543 = vst [vmem:[#allocation20_spill] sm:$0xff] %v13414_v31 }
 0x39f   : > { %10687 = vmatmul.mubr.msk.f32.gmra.mrb[14].mxu1 %vm3970_vm2, %v13398_v39  ;;  %v13418_v39 = vld [vmem:[#allocation2 + $0xf2] sm:$0xff] }
 0x3a0   : > { %10689 = vmatprep.mubr.msk.f32.mxu1 %vm3970_vm2, %v13402_v7  ;;  %14544 = vst [vmem:[#allocation21_spill] sm:$0xff] %v13418_v39  ;;  %v13422_v7 = vld [vmem:[#allocation2 + $0xfa] sm:$0xff] }
 0x3a1   : > { %14545 = vst [vmem:[#allocation22_spill] sm:$0xff] %v13422_v7 }
 0x3a3   : > { %10690 = vmatmul.mubr.msk.f32.gmra.mrb[16].mxu1 %vm3970_vm2, %v13406_v10  ;;  %v13426_v10 = vld [vmem:[#allocation2 + $0x10a] sm:$0xff] }
 0x3a4   : > { %10692 = vmatprep.mubr.msk.f32.mxu1 %vm3970_vm2, %v13410_v8  ;;  %14546 = vst [vmem:[#allocation23_spill] sm:$0xff] %v13426_v10  ;;  %v13430_v8 = vld [vmem:[#allocation2 + $0x112] sm:$0xff] }
 0x3a5   : > { %14547 = vst [vmem:[#allocation25_spill] sm:$0xff] %v13430_v8 }
 0x3a7   : > { %10693 = vmatmul.mubr.msk.f32.gmra.mrb[18].mxu1 %vm3970_vm2, %v13414_v31  ;;  %v13434_v31 = vld [vmem:[#allocation2 + $0x122] sm:$0xff] }
 0x3a8   : > { %10695 = vmatprep.mubr.msk.f32.mxu1 %vm3970_vm2, %v13418_v39  ;;  %14548 = vst [vmem:[#allocation26_spill] sm:$0xff] %v13434_v31  ;;  %v13438_v39 = vld [vmem:[#allocation2 + $0x12a] sm:$0xff] }
 0x3a9   : > { %14549 = vst [vmem:[#allocation27_spill] sm:$0xff] %v13438_v39 }
 0x3ab   : > { %10696 = vmatmul.mubr.msk.f32.gmra.mrb[20].mxu1 %vm3970_vm2, %v13422_v7  ;;  %v13442_v7 = vld [vmem:[#allocation2 + $0x13a] sm:$0xff] }
 0x3ac   : > { %10698 = vmatprep.mubr.msk.f32.mxu1 %vm3970_vm2, %v13426_v10  ;;  %14550 = vst [vmem:[#allocation28_spill] sm:$0xff] %v13442_v7  ;;  %v13446_v10 = vld [vmem:[#allocation2 + $0x142] sm:$0xff] }
 0x3ad   : > { %14551 = vst [vmem:[#allocation29_spill] sm:$0xff] %v13446_v10 }
 0x3af   : > { %10699 = vmatmul.mubr.msk.f32.gmra.mrb[22].mxu1 %vm3970_vm2, %v13430_v8  ;;  %v13450_v8 = vld [vmem:[#allocation2 + $0x152] sm:$0xff] }
 0x3b0   : > { %10701 = vmatprep.mubr.msk.f32.mxu1 %vm3970_vm2, %v13434_v31  ;;  %14552 = vst [vmem:[#allocation30_spill] sm:$0xff] %v13450_v8  ;;  %v13454_v31 = vld [vmem:[#allocation2 + $0x15a] sm:$0xff] }
 0x3b1   : > { %14553 = vst [vmem:[#allocation31_spill] sm:$0xff] %v13454_v31 }
 0x3b3   : > { %10702 = vmatmul.mubr.msk.f32.gmra.mrb[24].mxu1 %vm3970_vm2, %v13438_v39  ;;  %v13458_v39 = vld [vmem:[#allocation2 + $0x16a] sm:$0xff] }
 0x3b4   : > { %10704 = vmatprep.mubr.msk.f32.mxu1 %vm3970_vm2, %v13442_v7  ;;  %v13462_v7 = vld [vmem:[#allocation2 + $0x172] sm:$0xff] }
 0x3b5   : > { %14554 = vst [vmem:[#allocation32_spill] sm:$0xff] %v13462_v7 }
 0x3b7   : > { %10705 = vmatmul.mubr.msk.f32.gmra.mrb[26].mxu1 %vm3970_vm2, %v13446_v10  ;;  %v9190_v10 = vld [vmem:[%s14288_s3 + $0x50] sm:$0xff] }
 0x3b8   : > { %10707 = vmatprep.mubr.msk.f32.mxu1 %vm3970_vm2, %v13450_v8  ;;  %v9191_v8 = vld [vmem:[%s14288_s3 + $0x58] sm:$0xff] }
 0x3bb   : > { %10708 = vmatmul.mubr.msk.f32.gmra.mrb[28].mxu1 %vm3970_vm2, %v13454_v31  ;;  %v11141_v31 = vpack.c.bf16 %v9191_v8, %v9190_v10  ;;  %v9225_v10 = vld [vmem:[%s14288_s3 + $0x68] sm:$0xff] }
 0x3bc   : > { %10710 = vmatprep.mubr.msk.f32.mxu1 %vm3970_vm2, %v13458_v39 }
 0x3bf   : > { %10711 = vmatmul.mubr.msk.f32.gmra.mrb[30].mxu1 %vm3970_vm2, %v13462_v7 }
 0x3c0   : > { %10717 = vmatprep.mubr.msk.f32.mxu1 %vm3970_vm2, %v13212_v12  ;;  %v13537_v12 = vld [vmem:[#allocation2 + $0x188] sm:$0xff] }
 0x3c3   : > { %10718 = vmatmul.mubr.msk.f32.vlgmr.msra.gmra.mrb[0].mxu1 %vm3970_vm2, %v13218_v14  ;;  %v9224_v14 = vld [vmem:[%s14288_s3 + $0x60] sm:$0xff] }
 0x3c4   : > { %10720 = vmatprep.mubr.msk.f32.mxu1 %vm3970_vm2, %v13222_v16  ;;  %11140 = vmatpush3.bf16.msra.mxu1 %v13341_v5  ;;  %v13533_v5 = vld [vmem:[#allocation2 + $0x180] sm:$0xff]  ;;  %v11145_v8 = vpack.c.bf16 %v9225_v10, %v9224_v14  ;;  %v14570_v10 = vld [vmem:[#allocation16_spill] sm:$0xff] }
 0x3c5   : > { %11142 = vmatprep.subr.bf16.mxu1 %v11141_v31  ;;  %v14569_v14 = vld [vmem:[#allocation15_spill] sm:$0xff] }
 0x3c7   : > { %10721 = vmatmul.mubr.msk.f32.gmra.mrb[2].mxu1 %vm3970_vm2, %v13226_v18 }
 0x3c8   : > { %10723 = vmatprep.mubr.msk.f32.mxu1 %vm3970_vm2, %v13230_v20 }
 0x3cb   : > { %10724 = vmatmul.mubr.msk.f32.gmra.mrb[4].mxu1 %vm3970_vm2, %v13234_v59 }
 0x3cc   : > { %10726 = vmatprep.mubr.msk.f32.mxu1 %vm3970_vm2, %v13238_v21 }
 0x3cf   : > { %10727 = vmatmul.mubr.msk.f32.gmra.mrb[6].mxu1 %vm3970_vm2, %v13242_v22 }
 0x3d0   : > { %10729 = vmatprep.mubr.msk.f32.mxu1 %vm3970_vm2, %v13246_v24 }
 0x3d3   : > { %10730 = vmatmul.mubr.msk.f32.gmra.mrb[8].mxu1 %vm3970_vm2, %v13250_v43 }
 0x3d4   : > { %10732 = vmatprep.mubr.msk.f32.mxu1 %vm3970_vm2, %v13254_v44 }
 0x3d7   : > { %10733 = vmatmul.mubr.msk.f32.gmra.mrb[10].mxu1 %vm3970_vm2, %v13258_v45 }
 0x3d8   : > { %10735 = vmatprep.mubr.msk.f32.mxu1 %vm3970_vm2, %v13262_v46 }
 0x3db   : > { %10736 = vmatmul.mubr.msk.f32.gmra.mrb[12].mxu1 %vm3970_vm2, %v13266_v47 }
 0x3dc   : > { %10738 = vmatprep.mubr.msk.f32.mxu1 %vm3970_vm2, %v13270_v29 }
 0x3df   : > { %10739 = vmatmul.mubr.msk.f32.gmra.mrb[14].mxu1 %vm3970_vm2, %v13274_v32 }
 0x3e0   : > { %10741 = vmatprep.mubr.msk.f32.mxu1 %vm3970_vm2, %v13278_v33 }
 0x3e3   : > { %10742 = vmatmul.mubr.msk.f32.gmra.mrb[16].mxu1 %vm3970_vm2, %v13282_v27 }
 0x3e4   : > { %10744 = vmatprep.mubr.msk.f32.mxu1 %vm3970_vm2, %v13286_v51 }
 0x3e7   : > { %10745 = vmatmul.mubr.msk.f32.gmra.mrb[18].mxu1 %vm3970_vm2, %v13290_v53 }
 0x3e8   : > { %10747 = vmatprep.mubr.msk.f32.mxu1 %vm3970_vm2, %v13294_v55 }
 0x3eb   : > { %10748 = vmatmul.mubr.msk.f32.gmra.mrb[20].mxu1 %vm3970_vm2, %v13298_v57 }
 0x3ec   : > { %10750 = vmatprep.mubr.msk.f32.mxu1 %vm3970_vm2, %v13302_v61 }
 0x3ef   : > { %10751 = vmatmul.mubr.msk.f32.gmra.mrb[22].mxu1 %vm3970_vm2, %v13306_v63 }
 0x3f0   : > { %10753 = vmatprep.mubr.msk.f32.mxu1 %vm3970_vm2, %v13310_v0 }
 0x3f3   : > { %10754 = vmatmul.mubr.msk.f32.gmra.mrb[24].mxu1 %vm3970_vm2, %v13314_v1 }
 0x3f4   : > { %10756 = vmatprep.mubr.msk.f32.mxu1 %vm3970_vm2, %v13318_v3 }
 0x3f7   : > { %10757 = vmatmul.mubr.msk.f32.gmra.mrb[26].mxu1 %vm3970_vm2, %v13322_v34 }
 0x3f8   : > { %10759 = vmatprep.mubr.msk.f32.mxu1 %vm3970_vm2, %v13326_v37 }
 0x3fb   : > { %10760 = vmatmul.mubr.msk.f32.gmra.mrb[28].mxu1 %vm3970_vm2, %v13330_v41 }
 0x3fc   : > { %10762 = vmatprep.mubr.msk.f32.mxu1 %vm3970_vm2, %v13533_v5 }
 0x3ff   : > { %10763 = vmatmul.mubr.msk.f32.gmra.mrb[30].mxu1 %vm3970_vm2, %v13537_v12 }
 0x400   : > { %10769 = vmatprep.mubr.msk.f32.mxu1 %vm3970_vm2, %v13030_v9  ;;  %v14555_v9 = vld [vmem:[#allocation17_spill] sm:$0xff] }
 0x403   : > { %10770 = vmatmul.mubr.msk.f32.vlgmr.msra.gmra.mrb[0].mxu1 %vm3970_vm2, %v13036_v11  ;;  %v14556_v11 = vld [vmem:[#allocation18_spill] sm:$0xff] }
 0x404   : > { %10772 = vmatprep.mubr.msk.f32.mxu1 %vm3970_vm2, %v13042_v17  ;;  %11144 = vmatpush3.bf16.msra.mxu1 %v11141_v31  ;;  %v14557_v17 = vld [vmem:[#allocation24_spill] sm:$0xff]  ;;  %v14568_v31 = vld [vmem:[#allocation14_spill] sm:$0xff] }
 0x405   : > { %11146 = vmatprep.subr.bf16.mxu1 %v11145_v8 }
 0x407   : > { %10773 = vmatmul.mubr.msk.f32.gmra.mrb[2].mxu1 %vm3970_vm2, %v13048_v19  ;;  %v14558_v19 = vld [vmem:[#allocation34_spill] sm:$0xff] }
 0x408   : > { %10775 = vmatprep.mubr.msk.f32.mxu1 %vm3970_vm2, %v13054_v25  ;;  %v13607_v25 = vld [vmem:[#allocation2 + $0x181] sm:$0xff] }
 0x40b   : > { %10776 = vmatmul.mubr.msk.f32.gmra.mrb[4].mxu1 %vm3970_vm2, %v13060_v42  ;;  %v13611_v42 = vld [vmem:[#allocation2 + $0x189] sm:$0xff] }
 0x40c   : > { %10778 = vmatprep.mubr.msk.f32.mxu1 %vm3970_vm2, %v13066_v48  ;;  %v9258_v48 = vld [vmem:[%s14288_s3 + $0x70] sm:$0xff] }
 0x40f   : > { %10779 = vmatmul.mubr.msk.f32.gmra.mrb[6].mxu1 %vm3970_vm2, %v13072_v28  ;;  %v9259_v28 = vld [vmem:[%s14288_s3 + $0x78] sm:$0xff] }
 0x410   : > { %10781 = vmatprep.mubr.msk.f32.mxu1 %vm3970_vm2, %v13078_v50  ;;  %v11149_v50 = vpack.c.bf16 %v9259_v28, %v9258_v48  ;;  %v14572_v48 = vld [vmem:[#allocation44_spill] sm:$0xff]  ;;  %v14573_v28 = vld [vmem:[#allocation19_spill] sm:$0xff] }
 0x413   : > { %10782 = vmatmul.mubr.msk.f32.gmra.mrb[8].mxu1 %vm3970_vm2, %v13084_v52  ;;  %v14559_v52 = vld [vmem:[#allocation36_spill] sm:$0xff] }
 0x414   : > { %10784 = vmatprep.mubr.msk.f32.mxu1 %vm3970_vm2, %v13090_v58  ;;  %v14560_v58 = vld [vmem:[#allocation37_spill] sm:$0xff] }
 0x417   : > { %10785 = vmatmul.mubr.msk.f32.gmra.mrb[10].mxu1 %vm3970_vm2, %v13096_v62  ;;  %v14561_v62 = vld [vmem:[#allocation39_spill] sm:$0xff] }
 0x418   : > { %10787 = vmatprep.mubr.msk.f32.mxu1 %vm3970_vm2, %v13102_v36  ;;  %v14562_v36 = vld [vmem:[#allocation41_spill] sm:$0xff] }
 0x41b   : > { %10788 = vmatmul.mubr.msk.f32.gmra.mrb[12].mxu1 %vm3970_vm2, %v13108_v38  ;;  %v14563_v38 = vld [vmem:[#allocation9_spill] sm:$0xff] }
 0x41c   : > { %10790 = vmatprep.mubr.msk.f32.mxu1 %vm3970_vm2, %v13114_v4  ;;  %v14564_v4 = vld [vmem:[#allocation10_spill] sm:$0xff] }
 0x41f   : > { %10791 = vmatmul.mubr.msk.f32.gmra.mrb[14].mxu1 %vm3970_vm2, %v13120_v40  ;;  %v14565_v40 = vld [vmem:[#allocation11_spill] sm:$0xff] }
 0x420   : > { %10793 = vmatprep.mubr.msk.f32.mxu1 %vm3970_vm2, %v13126_v13 }
 0x423   : > { %10794 = vmatmul.mubr.msk.f32.gmra.mrb[16].mxu1 %vm3970_vm2, %v13132_v15 }
 0x424   : > { %10796 = vmatprep.mubr.msk.f32.mxu1 %vm3970_vm2, %v13138_v23 }
 0x427   : > { %10797 = vmatmul.mubr.msk.f32.gmra.mrb[18].mxu1 %vm3970_vm2, %v13144_v26 }
 0x428   : > { %10799 = vmatprep.mubr.msk.f32.mxu1 %vm3970_vm2, %v13150_v49 }
 0x42b   : > { %10800 = vmatmul.mubr.msk.f32.gmra.mrb[20].mxu1 %vm3970_vm2, %v13156_v30 }
 0x42c   : > { %10802 = vmatprep.mubr.msk.f32.mxu1 %vm3970_vm2, %v13162_v54 }
 0x42f   : > { %10803 = vmatmul.mubr.msk.f32.gmra.mrb[22].mxu1 %vm3970_vm2, %v13168_v56 }
 0x430   : > { %10805 = vmatprep.mubr.msk.f32.mxu1 %vm3970_vm2, %v13174_v2 }
 0x433   : > { %10806 = vmatmul.mubr.msk.f32.gmra.mrb[24].mxu1 %vm3970_vm2, %v13180_v35 }
 0x434   : > { %10808 = vmatprep.mubr.msk.f32.mxu1 %vm3970_vm2, %v14555_v9 }
 0x437   : > { %10809 = vmatmul.mubr.msk.f32.gmra.mrb[26].mxu1 %vm3970_vm2, %v14556_v11 }
 0x438   : > { %10811 = vmatprep.mubr.msk.f32.mxu1 %vm3970_vm2, %v14557_v17 }
 0x43b   : > { %10812 = vmatmul.mubr.msk.f32.gmra.mrb[28].mxu1 %vm3970_vm2, %v14558_v19 }
 0x43c   : > { %10814 = vmatprep.mubr.msk.f32.mxu1 %vm3970_vm2, %v13607_v25 }
 0x43f   : > { %10815 = vmatmul.mubr.msk.f32.gmra.mrb[30].mxu1 %vm3970_vm2, %v13611_v42 }
 0x440   : > { %10821 = vmatprep.mubr.msk.f32.mxu1 %vm3970_vm2, %v13344_v60  ;;  %v14567_v60 = vld [vmem:[#allocation13_spill] sm:$0xff] }
 0x443   : > { %10822 = vmatmul.mubr.msk.f32.vlgmr.msra.gmra.mrb[0].mxu1 %vm3970_vm2, %v13350_v6  ;;  %v14566_v6 = vld [vmem:[#allocation12_spill] sm:$0xff] }
 0x444   : > { %10824 = vmatprep.mubr.msk.f32.mxu1 %vm3970_vm2, %v14559_v52  ;;  %11148 = vmatpush3.bf16.msra.mxu1 %v11145_v8  ;;  %v14571_v8 = vld [vmem:[#allocation43_spill] sm:$0xff] }
 0x445   : > { %11150 = vmatprep.subr.bf16.mxu1 %v11149_v50 }
 0x447   : > { %10825 = vmatmul.mubr.msk.f32.gmra.mrb[2].mxu1 %vm3970_vm2, %v14560_v58 }
 0x448   : > { %10827 = vmatprep.mubr.msk.f32.mxu1 %vm3970_vm2, %v14561_v62 }
 0x44b   : > { %10828 = vmatmul.mubr.msk.f32.gmra.mrb[4].mxu1 %vm3970_vm2, %v14562_v36 }
 0x44c   : > { %10830 = vmatprep.mubr.msk.f32.mxu1 %vm3970_vm2, %v14563_v38 }
 0x44f   : > { %10831 = vmatmul.mubr.msk.f32.gmra.mrb[6].mxu1 %vm3970_vm2, %v14564_v4 }
 0x450   : > { %10833 = vmatprep.mubr.msk.f32.mxu1 %vm3970_vm2, %v14565_v40 }
 0x453   : > { %10834 = vmatmul.mubr.msk.f32.gmra.mrb[8].mxu1 %vm3970_vm2, %v14566_v6  ;;  %v14574_v6 = vld [vmem:[#allocation20_spill] sm:$0xff] }
 0x454   : > { %10836 = vmatprep.mubr.msk.f32.mxu1 %vm3970_vm2, %v14567_v60  ;;  %v14575_v60 = vld [vmem:[#allocation21_spill] sm:$0xff] }
 0x457   : > { %10837 = vmatmul.mubr.msk.f32.gmra.mrb[10].mxu1 %vm3970_vm2, %v14568_v31  ;;  %v14576_v31 = vld [vmem:[#allocation22_spill] sm:$0xff] }
 0x458   : > { %10839 = vmatprep.mubr.msk.f32.mxu1 %vm3970_vm2, %v14569_v14  ;;  %v14577_v14 = vld [vmem:[#allocation23_spill] sm:$0xff] }
 0x45b   : > { %10840 = vmatmul.mubr.msk.f32.gmra.mrb[12].mxu1 %vm3970_vm2, %v14570_v10  ;;  %v14578_v10 = vld [vmem:[#allocation25_spill] sm:$0xff] }
 0x45c   : > { %10842 = vmatprep.mubr.msk.f32.mxu1 %vm3970_vm2, %v14571_v8  ;;  %v14579_v8 = vld [vmem:[#allocation26_spill] sm:$0xff] }
 0x45f   : > { %10843 = vmatmul.mubr.msk.f32.gmra.mrb[14].mxu1 %vm3970_vm2, %v14572_v48  ;;  %v14580_v48 = vld [vmem:[#allocation27_spill] sm:$0xff] }
 0x460   : > { %10845 = vmatprep.mubr.msk.f32.mxu1 %vm3970_vm2, %v14573_v28  ;;  %v14581_v28 = vld [vmem:[#allocation28_spill] sm:$0xff] }
 0x463   : > { %10846 = vmatmul.mubr.msk.f32.gmra.mrb[16].mxu1 %vm3970_vm2, %v14574_v6  ;;  %v14582_v6 = vld [vmem:[#allocation29_spill] sm:$0xff] }
 0x464   : > { %10848 = vmatprep.mubr.msk.f32.mxu1 %vm3970_vm2, %v14575_v60  ;;  %v14583_v60 = vld [vmem:[#allocation30_spill] sm:$0xff] }
 0x467   : > { %10849 = vmatmul.mubr.msk.f32.gmra.mrb[18].mxu1 %vm3970_vm2, %v14576_v31  ;;  %v14584_v31 = vld [vmem:[#allocation31_spill] sm:$0xff] }
 0x468   : > { %10851 = vmatprep.mubr.msk.f32.mxu1 %vm3970_vm2, %v14577_v14 }
 0x46b   : > { %10852 = vmatmul.mubr.msk.f32.gmra.mrb[20].mxu1 %vm3970_vm2, %v14578_v10 }
 0x46c   : > { %10854 = vmatprep.mubr.msk.f32.mxu1 %vm3970_vm2, %v14579_v8  ;;  %v13681_v8 = vld [vmem:[#allocation2 + $0x182] sm:$0xff] }
 0x46f   : > { %10855 = vmatmul.mubr.msk.f32.gmra.mrb[22].mxu1 %vm3970_vm2, %v14580_v48 }
 0x470   : > { %10857 = vmatprep.mubr.msk.f32.mxu1 %vm3970_vm2, %v14581_v28  ;;  %v13685_v28 = vld [vmem:[#allocation2 + $0x18a] sm:$0xff] }
 0x473   : > { %10858 = vmatmul.mubr.msk.f32.gmra.mrb[24].mxu1 %vm3970_vm2, %v14582_v6 }
 0x474   : > { %10860 = vmatprep.mubr.msk.f32.mxu1 %vm3970_vm2, %v14583_v60  ;;  %v9292_v60 = vld [vmem:[%s14288_s3 + $0x80] sm:$0xff] }
 0x477   : > { %10861 = vmatmul.mubr.msk.f32.gmra.mrb[26].mxu1 %vm3970_vm2, %v14584_v31  ;;  %v9293_v31 = vld [vmem:[%s14288_s3 + $0x88] sm:$0xff] }
 0x478   : > { %10863 = vmatprep.mubr.msk.f32.mxu1 %vm3970_vm2, %v13458_v39 }
 0x47b   : > { %10864 = vmatmul.mubr.msk.f32.gmra.mrb[28].mxu1 %vm3970_vm2, %v13462_v7  ;;  %v11153_v7 = vpack.c.bf16 %v9293_v31, %v9292_v60 }
 0x47c   : > { %10866 = vmatprep.mubr.msk.f32.mxu1 %vm3970_vm2, %v13681_v8 }
 0x47f   : > { %10867 = vmatmul.mubr.msk.f32.gmra.mrb[30].mxu1 %vm3970_vm2, %v13685_v28 }
 0x480   : > { %10873 = vmatprep.mubr.msk.f32.mxu1 %vm3970_vm2, %v13222_v16  ;;  %v6353_v16 = vld [vmem:[#allocation2 + $0x198] sm:$0xff] }
 0x483   : > { %10874 = vmatmul.mubr.msk.f32.vlgmr.msra.gmra.mrb[0].mxu1 %vm3970_vm2, %v13226_v18  ;;  %v6354_v18 = vld [vmem:[#allocation2 + $0x1a0] sm:$0xff] }
 0x484   : > { %10876 = vmatprep.mubr.msk.f32.mxu1 %vm3970_vm2, %v13230_v20  ;;  %11152 = vmatpush3.bf16.msra.mxu1 %v11149_v50  ;;  %v6711_v20 = vld [vmem:[#allocation2 + $0x31] sm:$0xff] }
 0x485   : > { %11154 = vmatprep.subr.bf16.mxu1 %v11153_v7 }
 0x487   : > { %10877 = vmatmul.mubr.msk.f32.gmra.mrb[2].mxu1 %vm3970_vm2, %v13234_v59  ;;  %v7558_v59 = vld [vmem:[%s14290_s5] sm:$0xff] }
 0x488   : > { %10879 = vmatprep.mubr.msk.f32.mxu1 %vm3970_vm2, %v13238_v21  ;;  %v7559_v21 = vld [vmem:[%s14290_s5 + $0x8] sm:$0xff] }
 0x48b   : > { %10880 = vmatmul.mubr.msk.f32.gmra.mrb[4].mxu1 %vm3970_vm2, %v13242_v22  ;;  %v11157_v22 = vpack.c.bf16 %v7559_v21, %v7558_v59 }
 0x48c   : > { %10882 = vmatprep.mubr.msk.f32.mxu1 %vm3970_vm2, %v13246_v24  ;;  %v6712_v24 = vld [vmem:[#allocation2 + $0x39] sm:$0xff] }
 0x48d   : > { %11158 = vmatprep.subr.bf16.mxu0 %v11157_v22 }
 0x48e   : > { %11160 = vmatpush3.bf16.msra.mxu0 %v11157_v22 }
 0x48f   : > { %10883 = vmatmul.mubr.msk.f32.gmra.mrb[6].mxu1 %vm3970_vm2, %v13250_v43  ;;  %v6713_v43 = vld [vmem:[#allocation2 + $0x49] sm:$0xff] }
 0x490   : > { %10885 = vmatprep.mubr.msk.f32.mxu1 %vm3970_vm2, %v13254_v44  ;;  %v6714_v44 = vld [vmem:[#allocation2 + $0x51] sm:$0xff] }
 0x493   : > { %10886 = vmatmul.mubr.msk.f32.gmra.mrb[8].mxu1 %vm3970_vm2, %v13258_v45  ;;  %v6715_v45 = vld [vmem:[#allocation2 + $0x61] sm:$0xff] }
 0x494   : > { %10888 = vmatprep.mubr.msk.f32.mxu1 %vm3970_vm2, %v13262_v46  ;;  %v6716_v46 = vld [vmem:[#allocation2 + $0x69] sm:$0xff] }
 0x497   : > { %10889 = vmatmul.mubr.msk.f32.gmra.mrb[10].mxu1 %vm3970_vm2, %v13266_v47  ;;  %v6717_v47 = vld [vmem:[#allocation2 + $0x79] sm:$0xff] }
 0x498   : > { %10891 = vmatprep.mubr.msk.f32.mxu1 %vm3970_vm2, %v13270_v29  ;;  %v6718_v29 = vld [vmem:[#allocation2 + $0x81] sm:$0xff] }
 0x49b   : > { %10892 = vmatmul.mubr.msk.f32.gmra.mrb[12].mxu1 %vm3970_vm2, %v13274_v32  ;;  %v6719_v32 = vld [vmem:[#allocation2 + $0x91] sm:$0xff] }
 0x49c   : > { %10894 = vmatprep.mubr.msk.f32.mxu1 %vm3970_vm2, %v13278_v33  ;;  %v6720_v33 = vld [vmem:[#allocation2 + $0x99] sm:$0xff] }
 0x49f   : > { %10895 = vmatmul.mubr.msk.f32.gmra.mrb[14].mxu1 %vm3970_vm2, %v13282_v27  ;;  %v6721_v27 = vld [vmem:[#allocation2 + $0xa9] sm:$0xff] }
 0x4a0   : > { %10897 = vmatprep.mubr.msk.f32.mxu1 %vm3970_vm2, %v13286_v51  ;;  %v6722_v51 = vld [vmem:[#allocation2 + $0xb1] sm:$0xff] }
 0x4a3   : > { %10898 = vmatmul.mubr.msk.f32.gmra.mrb[16].mxu1 %vm3970_vm2, %v13290_v53  ;;  %v6723_v53 = vld [vmem:[#allocation2 + $0xc1] sm:$0xff] }
 0x4a4   : > { %10900 = vmatprep.mubr.msk.f32.mxu1 %vm3970_vm2, %v13294_v55  ;;  %v6724_v55 = vld [vmem:[#allocation2 + $0xc9] sm:$0xff] }
 0x4a7   : > { %10901 = vmatmul.mubr.msk.f32.gmra.mrb[18].mxu1 %vm3970_vm2, %v13298_v57  ;;  %v14593_v57 = vld [vmem:[#allocation20_spill] sm:$0xff] }
 0x4a8   : > { %10903 = vmatprep.mubr.msk.f32.mxu1 %vm3970_vm2, %v13302_v61  ;;  %v14594_v61 = vld [vmem:[#allocation21_spill] sm:$0xff] }
 0x4ab   : > { %10904 = vmatmul.mubr.msk.f32.gmra.mrb[20].mxu1 %vm3970_vm2, %v13306_v63  ;;  %v14595_v63 = vld [vmem:[#allocation22_spill] sm:$0xff] }
 0x4ac   : > { %10906 = vmatprep.mubr.msk.f32.mxu1 %vm3970_vm2, %v13310_v0  ;;  %v14596_v0 = vld [vmem:[#allocation26_spill] sm:$0xff] }
 0x4af   : > { %10907 = vmatmul.mubr.msk.f32.gmra.mrb[22].mxu1 %vm3970_vm2, %v13314_v1  ;;  %v14597_v1 = vld [vmem:[#allocation28_spill] sm:$0xff] }
 0x4b0   : > { %10909 = vmatprep.mubr.msk.f32.mxu1 %vm3970_vm2, %v13318_v3  ;;  %v14598_v3 = vld [vmem:[#allocation30_spill] sm:$0xff] }
 0x4b3   : > { %10910 = vmatmul.mubr.msk.f32.gmra.mrb[24].mxu1 %vm3970_vm2, %v13322_v34  ;;  %v14599_v34 = vld [vmem:[#allocation31_spill] sm:$0xff] }
 0x4b4   : > { %10912 = vmatprep.mubr.msk.f32.mxu1 %vm3970_vm2, %v13326_v37  ;;  %v14600_v37 = vld [vmem:[#allocation32_spill] sm:$0xff] }
 0x4b7   : > { %10913 = vmatmul.mubr.msk.f32.gmra.mrb[26].mxu1 %vm3970_vm2, %v13330_v41  ;;  %v7129_v41 = vld [vmem:[#allocation2 + $0x19a] sm:$0xff] }
 0x4b8   : > { %10915 = vmatprep.mubr.msk.f32.mxu1 %vm3970_vm2, %v13533_v5  ;;  %v7560_v5 = vld [vmem:[%s14290_s5 + $0x10] sm:$0xff] }
 0x4bb   : > { %10916 = vmatmul.mubr.msk.f32.gmra.mrb[28].mxu1 %vm3970_vm2, %v13537_v12 }
 0x4bc   : > { %10918 = vmatprep.mubr.msk.f32.mxu1 %vm3970_vm2, %v6353_v16 }
 0x4bf   : > { %10919 = vmatmul.mubr.msk.f32.gmra.mrb[30].mxu1 %vm3970_vm2, %v6354_v18 }
 0x4c0   : > { %10925 = vmatprep.mubr.msk.f32.mxu1 %vm3970_vm2, %v6711_v20 }
 0x4c3   : > { %10926 = vmatmul.mubr.msk.f32.vlgmr.msra.gmra.mrb[0].mxu1 %vm3970_vm2, %v6712_v24 }
 0x4c4   : > { %10928 = vmatprep.mubr.msk.f32.mxu1 %vm3970_vm2, %v6713_v43  ;;  %11156 = vmatpush3.bf16.msra.mxu1 %v11153_v7  ;;  %v7130_v7 = vld [vmem:[#allocation2 + $0x1a2] sm:$0xff] }
 0x4c7   : > { %10929 = vmatmul.mubr.msk.f32.gmra.mrb[2].mxu1 %vm3970_vm2, %v6714_v44 }
 0x4c8   : > { %10931 = vmatprep.mubr.msk.f32.mxu1 %vm3970_vm2, %v6715_v45 }
 0x4cb   : > { %10932 = vmatmul.mubr.msk.f32.gmra.mrb[4].mxu1 %vm3970_vm2, %v6716_v46 }
 0x4cc   : > { %10934 = vmatprep.mubr.msk.f32.mxu1 %vm3970_vm2, %v6717_v47 }
 0x4cf   : > { %10935 = vmatmul.mubr.msk.f32.gmra.mrb[6].mxu1 %vm3970_vm2, %v6718_v29 }
 0x4d0   : > { %10937 = vmatprep.mubr.msk.f32.mxu1 %vm3970_vm2, %v6719_v32 }
 0x4d3   : > { %10938 = vmatmul.mubr.msk.f32.gmra.mrb[8].mxu1 %vm3970_vm2, %v6720_v33 }
 0x4d4   : > { %10940 = vmatprep.mubr.msk.f32.mxu1 %vm3970_vm2, %v6721_v27 }
 0x4d7   : > { %10941 = vmatmul.mubr.msk.f32.gmra.mrb[10].mxu1 %vm3970_vm2, %v6722_v51 }
 0x4d8   : > { %10943 = vmatprep.mubr.msk.f32.mxu1 %vm3970_vm2, %v6723_v53 }
 0x4db   : > { %10944 = vmatmul.mubr.msk.f32.gmra.mrb[12].mxu1 %vm3970_vm2, %v6724_v55 }
 0x4dc   : > { %10946 = vmatprep.mubr.msk.f32.mxu1 %vm3970_vm2, %v13126_v13  ;;  %v6741_v13 = vld [vmem:[#allocation2 + $0x199] sm:$0xff] }
 0x4df   : > { %10947 = vmatmul.mubr.msk.f32.gmra.mrb[14].mxu1 %vm3970_vm2, %v13132_v15  ;;  %v6742_v15 = vld [vmem:[#allocation2 + $0x1a1] sm:$0xff] }
 0x4e0   : > { %10949 = vmatprep.mubr.msk.f32.mxu1 %vm3970_vm2, %v13138_v23  ;;  %v14585_v23 = vld [vmem:[#allocation12_spill] sm:$0xff] }
 0x4e3   : > { %10950 = vmatmul.mubr.msk.f32.gmra.mrb[16].mxu1 %vm3970_vm2, %v13144_v26  ;;  %v14586_v26 = vld [vmem:[#allocation13_spill] sm:$0xff] }
 0x4e4   : > { %10952 = vmatprep.mubr.msk.f32.mxu1 %vm3970_vm2, %v13150_v49  ;;  %v14587_v49 = vld [vmem:[#allocation14_spill] sm:$0xff] }
 0x4e7   : > { %10953 = vmatmul.mubr.msk.f32.gmra.mrb[18].mxu1 %vm3970_vm2, %v13156_v30  ;;  %v14588_v30 = vld [vmem:[#allocation15_spill] sm:$0xff] }
 0x4e8   : > { %10955 = vmatprep.mubr.msk.f32.mxu1 %vm3970_vm2, %v13162_v54  ;;  %v14589_v54 = vld [vmem:[#allocation16_spill] sm:$0xff] }
 0x4eb   : > { %10956 = vmatmul.mubr.msk.f32.gmra.mrb[20].mxu1 %vm3970_vm2, %v13168_v56  ;;  %v14590_v56 = vld [vmem:[#allocation43_spill] sm:$0xff] }
 0x4ec   : > { %10958 = vmatprep.mubr.msk.f32.mxu1 %vm3970_vm2, %v13174_v2  ;;  %v14591_v2 = vld [vmem:[#allocation44_spill] sm:$0xff] }
 0x4ef   : > { %10959 = vmatmul.mubr.msk.f32.gmra.mrb[22].mxu1 %vm3970_vm2, %v13180_v35  ;;  %v14592_v35 = vld [vmem:[#allocation19_spill] sm:$0xff] }
 0x4f0   : > { %10961 = vmatprep.mubr.msk.f32.mxu1 %vm3970_vm2, %v14555_v9  ;;  %v7924_v9 = vld [vmem:[%s14292_s7 + $0x8] sm:$0xff] }
 0x4f3   : > { %10962 = vmatmul.mubr.msk.f32.gmra.mrb[24].mxu1 %vm3970_vm2, %v14556_v11  ;;  %v13885_v11 = vld [vmem:[%s14289_s4] ss:$0 sm:$0xff] }
 0x4f4   : > { %10964 = vmatprep.mubr.msk.f32.mxu1 %vm3970_vm2, %v14557_v17 }
 0x4f7   : > { %10965 = vmatmul.mubr.msk.f32.gmra.mrb[26].mxu1 %vm3970_vm2, %v14558_v19 }
 0x4f8   : > { %10967 = vmatprep.mubr.msk.f32.mxu1 %vm3970_vm2, %v13607_v25 }
 0x4fb   : > { %10968 = vmatmul.mubr.msk.f32.gmra.mrb[28].mxu1 %vm3970_vm2, %v13611_v42 }
 0x4fc   : > { %10970 = vmatprep.mubr.msk.f32.mxu1 %vm3970_vm2, %v6741_v13 }
 0x4ff   : > { %10971 = vmatmul.mubr.msk.f32.gmra.mrb[30].mxu1 %vm3970_vm2, %v6742_v15 }
 0x500   : > { %10977 = vmatprep.mubr.msk.f32.mxu1 %vm3970_vm2, %v14559_v52 }
 0x503   : > { %10978 = vmatmul.mubr.msk.f32.vlgmr.msra.gmra.mrb[0].mxu1 %vm3970_vm2, %v14560_v58 }
 0x504   : > { %10980 = vmatprep.mubr.msk.f32.mxu1 %vm3970_vm2, %v14561_v62 }
 0x507   : > { %10981 = vmatmul.mubr.msk.f32.gmra.mrb[2].mxu1 %vm3970_vm2, %v14562_v36 }
 0x508   : > { %10983 = vmatprep.mubr.msk.f32.mxu1 %vm3970_vm2, %v14563_v38 }
 0x50b   : > { %10984 = vmatmul.mubr.msk.f32.gmra.mrb[4].mxu1 %vm3970_vm2, %v14564_v4 }
 0x50c   : > { %10986 = vmatprep.mubr.msk.f32.mxu1 %vm3970_vm2, %v14565_v40 }
 0x50f   : > { %10987 = vmatmul.mubr.msk.f32.gmra.mrb[6].mxu1 %vm3970_vm2, %v14585_v23 }
 0x510   : > { %10989 = vmatprep.mubr.msk.f32.mxu1 %vm3970_vm2, %v14586_v26 }
 0x513   : > { %10990 = vmatmul.mubr.msk.f32.gmra.mrb[8].mxu1 %vm3970_vm2, %v14587_v49 }
 0x514   : > { %10992 = vmatprep.mubr.msk.f32.mxu1 %vm3970_vm2, %v14588_v30 }
 0x517   : > { %10993 = vmatmul.mubr.msk.f32.gmra.mrb[10].mxu1 %vm3970_vm2, %v14589_v54 }
 0x518   : > { %10995 = vmatprep.mubr.msk.f32.mxu1 %vm3970_vm2, %v14590_v56 }
 0x51b   : > { %10996 = vmatmul.mubr.msk.f32.gmra.mrb[12].mxu1 %vm3970_vm2, %v14591_v2 }
 0x51c   : > { %10998 = vmatprep.mubr.msk.f32.mxu1 %vm3970_vm2, %v14592_v35 }
 0x51f   : > { %10999 = vmatmul.mubr.msk.f32.gmra.mrb[14].mxu1 %vm3970_vm2, %v14593_v57 }
 0x520   : > { %11001 = vmatprep.mubr.msk.f32.mxu1 %vm3970_vm2, %v14594_v61 }
 0x523   : > { %11002 = vmatmul.mubr.msk.f32.gmra.mrb[16].mxu1 %vm3970_vm2, %v14595_v63 }
 0x524   : > { %11004 = vmatprep.mubr.msk.f32.mxu1 %vm3970_vm2, %v14577_v14 }
 0x527   : > { %11005 = vmatmul.mubr.msk.f32.gmra.mrb[18].mxu1 %vm3970_vm2, %v14578_v10 }
 0x528   : > { %11007 = vmatprep.mubr.msk.f32.mxu1 %vm3970_vm2, %v14596_v0 }
 0x52b   : > { %11008 = vmatmul.mubr.msk.f32.gmra.mrb[20].mxu1 %vm3970_vm2, %v14580_v48 }
 0x52c   : > { %11010 = vmatprep.mubr.msk.f32.mxu1 %vm3970_vm2, %v14597_v1 }
 0x52f   : > { %11011 = vmatmul.mubr.msk.f32.gmra.mrb[22].mxu1 %vm3970_vm2, %v14582_v6 }
 0x530   : > { %11013 = vmatprep.mubr.msk.f32.mxu1 %vm3970_vm2, %v14598_v3 }
 0x533   : > { %11014 = vmatmul.mubr.msk.f32.gmra.mrb[24].mxu1 %vm3970_vm2, %v14599_v34 }
 0x534   : > { %11016 = vmatprep.mubr.msk.f32.mxu1 %vm3970_vm2, %v13458_v39  ;;  %v7561_v39 = vld [vmem:[%s14290_s5 + $0x18] sm:$0xff] }
 0x535   : > { %v11161_v12 = vpack.c.bf16 %v7561_v39, %v7560_v5 }
 0x537   : > { %11017 = vmatmul.mubr.msk.f32.gmra.mrb[26].mxu1 %vm3970_vm2, %v14600_v37  ;;  %11162 = vmatprep.subr.bf16.mxu0 %v11161_v12 }
 0x538   : > { %11019 = vmatprep.mubr.msk.f32.mxu1 %vm3970_vm2, %v13681_v8  ;;  %11164 = vmatpush3.bf16.msra.mxu0 %v11161_v12 }
 0x53b   : > { %11020 = vmatmul.mubr.msk.f32.gmra.mrb[28].mxu1 %vm3970_vm2, %v13685_v28 }
 0x53c   : > { %11022 = vmatprep.mubr.msk.f32.mxu1 %vm3970_vm2, %v7129_v41 }
 0x53f   : > { %11023 = vmatmul.mubr.msk.f32.gmra.mrb[30].mxu1 %vm3970_vm2, %v7130_v7 }
 0x540   : > { %8003 = vmatprep.mubr.f32.mxu1 %v7924_v9 }
 0x5d6   : > { %v10979_v17 = vpop.f32.mrb[0].mxu1 }
 0x5d7   : > { %v7495_v19 = vadd.f32 %v10979_v17, %v13885_v11  ;;  %v7296_v25 = vpop.f32.mrb[1].mxu1 }
 0x5d8   : > { %v7494_v42 = vadd.f32 %v13885_v11, %v7296_v25 }
 0x5d9   : > { %v7527_v50 = vmax.f32 %v7495_v19, 0.0 }
 0x5da   : > { %v7526_v52 = vmax.f32 %v7494_v42, 0.0  ;;  %v10982_v58 = vpop.f32.mrb[2].mxu1 }
 0x5db   : > { %v7497_v62 = vadd.f32 %v10982_v58, %v13885_v11  ;;  %v7306_v36 = vpop.f32.mrb[3].mxu1 }
 0x5dc   : > { %v13890_v38 = vpack.c.bf16 %v7527_v50, %v7526_v52  ;;  %v7496_v4 = vadd.f32 %v13885_v11, %v7306_v36  ;;  %11033 = vmatprep.mubr.msk.f32.mxu0 %vm7569_vm4, %v7526_v52 }
 0x5dd   : > { %v7529_v40 = vmax.f32 %v7497_v62, 0.0  ;;  %11034 = vmatmul.mubr.msk.f32.vlgmr.msra.gmra.mrb[32].mxu0 %vm7569_vm4, %v7527_v50 }
 0x5de   : > { %v7528_v6 = vmax.f32 %v7496_v4, 0.0  ;;  %v10985_v60 = vpop.f32.mrb[4].mxu1 }
 0x5df   : > { %v7499_v31 = vadd.f32 %v10985_v60, %v13885_v11  ;;  %v7316_v14 = vpop.f32.mrb[5].mxu1 }
 0x5e0   : > { %v13896_v10 = vpack.c.bf16 %v7529_v40, %v7528_v6  ;;  %v7498_v8 = vadd.f32 %v13885_v11, %v7316_v14  ;;  %11036 = vmatprep.mubr.msk.f32.mxu0 %vm7569_vm4, %v7528_v6 }
 0x5e1   : > { %v7531_v48 = vmax.f32 %v7499_v31, 0.0  ;;  %11037 = vmatmul.mubr.msk.f32.gmra.mrb[34].mxu0 %vm7569_vm4, %v7529_v40 }
 0x5e2   : > { %v7530_v28 = vmax.f32 %v7498_v8, 0.0  ;;  %v10988_v16 = vpop.f32.mrb[6].mxu1 }
 0x5e3   : > { %v7501_v18 = vadd.f32 %v10988_v16, %v13885_v11  ;;  %v7326_v20 = vpop.f32.mrb[7].mxu1 }
 0x5e4   : > { %v13902_v59 = vpack.c.bf16 %v7531_v48, %v7530_v28  ;;  %v7500_v21 = vadd.f32 %v13885_v11, %v7326_v20  ;;  %11039 = vmatprep.mubr.msk.f32.mxu0 %vm7569_vm4, %v7530_v28 }
 0x5e5   : > { %v7533_v22 = vmax.f32 %v7501_v18, 0.0  ;;  %11040 = vmatmul.mubr.msk.f32.gmra.mrb[36].mxu0 %vm7569_vm4, %v7531_v48 }
 0x5e6   : > { %v7532_v24 = vmax.f32 %v7500_v21, 0.0  ;;  %v10991_v43 = vpop.f32.mrb[8].mxu1 }
 0x5e7   : > { %v7503_v44 = vadd.f32 %v10991_v43, %v13885_v11  ;;  %v7336_v45 = vpop.f32.mrb[9].mxu1 }
 0x5e8   : > { %v13908_v46 = vpack.c.bf16 %v7533_v22, %v7532_v24  ;;  %v7502_v47 = vadd.f32 %v13885_v11, %v7336_v45  ;;  %11042 = vmatprep.mubr.msk.f32.mxu0 %vm7569_vm4, %v7532_v24 }
 0x5e9   : > { %v7535_v29 = vmax.f32 %v7503_v44, 0.0  ;;  %11043 = vmatmul.mubr.msk.f32.gmra.mrb[38].mxu0 %vm7569_vm4, %v7533_v22 }
 0x5ea   : > { %v7534_v32 = vmax.f32 %v7502_v47, 0.0  ;;  %v10994_v33 = vpop.f32.mrb[10].mxu1 }
 0x5eb   : > { %v7505_v27 = vadd.f32 %v10994_v33, %v13885_v11  ;;  %v7346_v51 = vpop.f32.mrb[11].mxu1 }
 0x5ec   : > { %v13914_v53 = vpack.c.bf16 %v7535_v29, %v7534_v32  ;;  %v7504_v55 = vadd.f32 %v13885_v11, %v7346_v51  ;;  %11045 = vmatprep.mubr.msk.f32.mxu0 %vm7569_vm4, %v7534_v32 }
 0x5ed   : > { %v7537_v13 = vmax.f32 %v7505_v27, 0.0  ;;  %11046 = vmatmul.mubr.msk.f32.gmra.mrb[40].mxu0 %vm7569_vm4, %v7535_v29 }
 0x5ee   : > { %v7536_v15 = vmax.f32 %v7504_v55, 0.0  ;;  %v10997_v23 = vpop.f32.mrb[12].mxu1 }
 0x5ef   : > { %v7507_v26 = vadd.f32 %v10997_v23, %v13885_v11  ;;  %v7356_v49 = vpop.f32.mrb[13].mxu1 }
 0x5f0   : > { %v13920_v30 = vpack.c.bf16 %v7537_v13, %v7536_v15  ;;  %v7506_v54 = vadd.f32 %v13885_v11, %v7356_v49  ;;  %11048 = vmatprep.mubr.msk.f32.mxu0 %vm7569_vm4, %v7536_v15 }
 0x5f1   : > { %v7539_v56 = vmax.f32 %v7507_v26, 0.0  ;;  %11049 = vmatmul.mubr.msk.f32.gmra.mrb[42].mxu0 %vm7569_vm4, %v7537_v13 }
 0x5f2   : > { %v7538_v2 = vmax.f32 %v7506_v54, 0.0  ;;  %v11000_v35 = vpop.f32.mrb[14].mxu1 }
 0x5f3   : > { %v7509_v57 = vadd.f32 %v11000_v35, %v13885_v11  ;;  %v7366_v61 = vpop.f32.mrb[15].mxu1 }
 0x5f4   : > { %v13926_v63 = vpack.c.bf16 %v7539_v56, %v7538_v2  ;;  %v7508_v0 = vadd.f32 %v13885_v11, %v7366_v61  ;;  %11051 = vmatprep.mubr.msk.f32.mxu0 %vm7569_vm4, %v7538_v2  ;;  %v7925_v61 = vld [vmem:[%s14292_s7 + $0x10] sm:$0xff] }
 0x5f5   : > { %v7541_v1 = vmax.f32 %v7509_v57, 0.0  ;;  %11052 = vmatmul.mubr.msk.f32.gmra.mrb[44].mxu0 %vm7569_vm4, %v7539_v56 }
 0x5f6   : > { %v7540_v3 = vmax.f32 %v7508_v0, 0.0  ;;  %v11003_v34 = vpop.f32.mrb[16].mxu1  ;;  %v7927_v0 = vld [vmem:[%s14292_s7 + $0x20] sm:$0xff] }
 0x5f7   : > { %v7511_v37 = vadd.f32 %v11003_v34, %v13885_v11  ;;  %v7376_v41 = vpop.f32.mrb[17].mxu1  ;;  %v7932_v34 = vld [vmem:[%s14292_s7 + $0x48] sm:$0xff] }
 0x5f8   : > { %v13932_v7 = vpack.c.bf16 %v7541_v1, %v7540_v3  ;;  %v7510_v5 = vadd.f32 %v13885_v11, %v7376_v41  ;;  %11054 = vmatprep.mubr.msk.f32.mxu0 %vm7569_vm4, %v7540_v3  ;;  %v7929_v3 = vld [vmem:[%s14292_s7 + $0x30] sm:$0xff]  ;;  %v7934_v41 = vld [vmem:[%s14292_s7 + $0x58] sm:$0xff] }
 0x5f9   : > { %v7543_v39 = vmax.f32 %v7511_v37, 0.0  ;;  %11055 = vmatmul.mubr.msk.f32.gmra.mrb[46].mxu0 %vm7569_vm4, %v7541_v1  ;;  %v7930_v1 = vld [vmem:[%s14292_s7 + $0x38] sm:$0xff]  ;;  %v7931_v37 = vld [vmem:[%s14292_s7 + $0x40] sm:$0xff] }
 0x5fa   : > { %v7542_v12 = vmax.f32 %v7510_v5, 0.0  ;;  %v11006_v9 = vpop.f32.mrb[18].mxu1  ;;  %v7936_v5 = vld [vmem:[%s14292_s7 + $0x68] sm:$0xff] }
 0x5fb   : > { %v7513_v17 = vadd.f32 %v11006_v9, %v13885_v11  ;;  %v7386_v19 = vpop.f32.mrb[19].mxu1  ;;  %v7937_v9 = vld [vmem:[%s14292_s7 + $0x70] sm:$0xff] }
 0x5fc   : > { %v11165_v25 = vpack.c.bf16 %v7543_v39, %v7542_v12  ;;  %v7512_v42 = vadd.f32 %v13885_v11, %v7386_v19  ;;  %11057 = vmatprep.mubr.msk.f32.mxu0 %vm7569_vm4, %v7542_v12  ;;  %v7938_v12 = vld [vmem:[%s14292_s7 + $0x78] sm:$0xff]  ;;  %v8045_v19 = vld [vmem:[%s14293_s8 + $0x8] sm:$0xff] }
 0x5fd   : > { %v7545_v50 = vmax.f32 %v7513_v17, 0.0  ;;  %11058 = vmatmul.mubr.msk.f32.gmra.mrb[48].mxu0 %vm7569_vm4, %v7543_v39  ;;  %v7935_v39 = vld [vmem:[%s14292_s7 + $0x60] sm:$0xff] }
 0x5fe   : > { %v7544_v52 = vmax.f32 %v7512_v42, 0.0  ;;  %v11009_v58 = vpop.f32.mrb[20].mxu1  ;;  %11166 = vmatprep.subr.bf16.mxu1 %v11165_v25  ;;  %v8044_v17 = vld [vmem:[%s14293_s8] sm:$0xff]  ;;  %v8046_v42 = vld [vmem:[%s14293_s8 + $0x10] sm:$0xff] }
 0x5ff   : > { %v7515_v62 = vadd.f32 %v11009_v58, %v13885_v11  ;;  %v7396_v36 = vpop.f32.mrb[21].mxu1  ;;  %11168 = vmatpush3.bf16.msra.mxu1 %v13890_v38  ;;  %v11197_v25 = vpack.c.bf16 %v8045_v19, %v8044_v17  ;;  %v8192_v58 = vld [vmem:[%s14295_s10] sm:$0xff] }
 0x600   : > { %v11169_v4 = vpack.c.bf16 %v7545_v50, %v7544_v52  ;;  %v7514_v40 = vadd.f32 %v13885_v11, %v7396_v36  ;;  %11060 = vmatprep.mubr.msk.f32.mxu0 %vm7569_vm4, %v7544_v52 }
 0x601   : > { %v7547_v6 = vmax.f32 %v7515_v62, 0.0  ;;  %11061 = vmatmul.mubr.msk.f32.gmra.mrb[50].mxu0 %vm7569_vm4, %v7545_v50  ;;  %v8047_v50 = vld [vmem:[%s14293_s8 + $0x18] sm:$0xff]  ;;  %v8193_v62 = vld [vmem:[%s14295_s10 + $0x8] sm:$0xff] }
 0x602   : > { %v7546_v60 = vmax.f32 %v7514_v40, 0.0  ;;  %v11012_v31 = vpop.f32.mrb[22].mxu1  ;;  %11170 = vmatprep.subr.bf16.mxu1 %v11169_v4  ;;  %v11201_v52 = vpack.c.bf16 %v8047_v50, %v8046_v42  ;;  %v14038_v36 = vpack.c.bf16 %v8193_v62, %v8192_v58  ;;  %v14048_v4 = vld [vmem:[%s14291_s6] ss:$0 sm:$0xff] }
 0x603   : > { %v7517_v14 = vadd.f32 %v11012_v31, %v13885_v11  ;;  %v7406_v8 = vpop.f32.mrb[23].mxu1  ;;  %11172 = vmatpush3.bf16.msra.mxu1 %v13896_v10 }
 0x604   : > { %v11173_v48 = vpack.c.bf16 %v7547_v6, %v7546_v60  ;;  %v7516_v28 = vadd.f32 %v13885_v11, %v7406_v8  ;;  %11063 = vmatprep.mubr.msk.f32.mxu0 %vm7569_vm4, %v7546_v60 }
 0x605   : > { %v7549_v38 = vmax.f32 %v7517_v14, 0.0  ;;  %11064 = vmatmul.mubr.msk.f32.gmra.mrb[52].mxu0 %vm7569_vm4, %v7547_v6 }
 0x606   : > { %v7548_v16 = vmax.f32 %v7516_v28, 0.0  ;;  %v11015_v18 = vpop.f32.mrb[24].mxu1  ;;  %11174 = vmatprep.subr.bf16.mxu1 %v11173_v48 }
 0x607   : > { %v7519_v20 = vadd.f32 %v11015_v18, %v13885_v11  ;;  %v7416_v21 = vpop.f32.mrb[25].mxu1  ;;  %11176 = vmatpush3.bf16.msra.mxu1 %v13902_v59 }
 0x608   : > { %v11177_v22 = vpack.c.bf16 %v7549_v38, %v7548_v16  ;;  %v7518_v24 = vadd.f32 %v13885_v11, %v7416_v21  ;;  %11066 = vmatprep.mubr.msk.f32.mxu0 %vm7569_vm4, %v7548_v16 }
 0x609   : > { %v7551_v10 = vmax.f32 %v7519_v20, 0.0  ;;  %11067 = vmatmul.mubr.msk.f32.gmra.mrb[54].mxu0 %vm7569_vm4, %v7549_v38 }
 0x60a   : > { %v7550_v43 = vmax.f32 %v7518_v24, 0.0  ;;  %v11018_v44 = vpop.f32.mrb[26].mxu1  ;;  %11178 = vmatprep.subr.bf16.mxu1 %v11177_v22 }
 0x60b   : > { %v7521_v45 = vadd.f32 %v11018_v44, %v13885_v11  ;;  %v7426_v47 = vpop.f32.mrb[27].mxu1  ;;  %11180 = vmatpush3.bf16.msra.mxu1 %v13908_v46 }
 0x60c   : > { %v11181_v29 = vpack.c.bf16 %v7551_v10, %v7550_v43  ;;  %v7520_v32 = vadd.f32 %v13885_v11, %v7426_v47  ;;  %11069 = vmatprep.mubr.msk.f32.mxu0 %vm7569_vm4, %v7550_v43 }
 0x60d   : > { %v7553_v59 = vmax.f32 %v7521_v45, 0.0  ;;  %11070 = vmatmul.mubr.msk.f32.gmra.mrb[56].mxu0 %vm7569_vm4, %v7551_v10 }
 0x60e   : > { %v7552_v33 = vmax.f32 %v7520_v32, 0.0  ;;  %v11021_v27 = vpop.f32.mrb[28].mxu1  ;;  %11182 = vmatprep.subr.bf16.mxu1 %v11181_v29 }
 0x60f   : > { %v7523_v51 = vadd.f32 %v11021_v27, %v13885_v11  ;;  %v7436_v55 = vpop.f32.mrb[29].mxu1  ;;  %11184 = vmatpush3.bf16.msra.mxu1 %v13914_v53 }
 0x610   : > { %v11185_v13 = vpack.c.bf16 %v7553_v59, %v7552_v33  ;;  %v7522_v15 = vadd.f32 %v13885_v11, %v7436_v55  ;;  %11072 = vmatprep.mubr.msk.f32.mxu0 %vm7569_vm4, %v7552_v33 }
 0x611   : > { %v7555_v46 = vmax.f32 %v7523_v51, 0.0  ;;  %11073 = vmatmul.mubr.msk.f32.gmra.mrb[58].mxu0 %vm7569_vm4, %v7553_v59 }
 0x612   : > { %v7554_v23 = vmax.f32 %v7522_v15, 0.0  ;;  %v11024_v26 = vpop.f32.mrb[30].mxu1  ;;  %11186 = vmatprep.subr.bf16.mxu1 %v11185_v13 }
 0x613   : > { %v7525_v49 = vadd.f32 %v11024_v26, %v13885_v11  ;;  %v7446_v54 = vpop.f32.mrb[31].mxu1  ;;  %11188 = vmatpush3.bf16.msra.mxu1 %v13920_v30  ;;  %v7926_v30 = vld [vmem:[%s14292_s7 + $0x18] sm:$0xff] }
 0x614   : > { %v11189_v56 = vpack.c.bf16 %v7555_v46, %v7554_v23  ;;  %v7524_v2 = vadd.f32 %v13885_v11, %v7446_v54  ;;  %11075 = vmatprep.mubr.msk.f32.mxu0 %vm7569_vm4, %v7554_v23  ;;  %v7923_v11 = vld [vmem:[%s14292_s7] sm:$0xff] }
 0x615   : > { %v7557_v53 = vmax.f32 %v7525_v49, 0.0  ;;  %11076 = vmatmul.mubr.msk.f32.gmra.mrb[60].mxu0 %vm7569_vm4, %v7555_v46 }
 0x616   : > { %v7556_v35 = vmax.f32 %v7524_v2, 0.0  ;;  %11190 = vmatprep.subr.bf16.mxu1 %v11189_v56 }
 0x617   : > { %11192 = vmatpush3.bf16.msra.mxu1 %v13926_v63  ;;  %v7928_v63 = vld [vmem:[%s14292_s7 + $0x28] sm:$0xff] }
 0x618   : > { %v11193_v57 = vpack.c.bf16 %v7557_v53, %v7556_v35  ;;  %11078 = vmatprep.mubr.msk.f32.mxu0 %vm7569_vm4, %v7556_v35 }
 0x619   : > { %11079 = vmatmul.mubr.msk.f32.gmra.mrb[62].mxu0 %vm7569_vm4, %v7557_v53 }
 0x61a   : > { %11194 = vmatprep.subr.bf16.mxu1 %v11193_v57 }
 0x61b   : > { %11196 = vmatpush3.bf16.msra.mxu1 %v13932_v7  ;;  %v7933_v7 = vld [vmem:[%s14292_s7 + $0x50] sm:$0xff] }
 0x61c   : > { %11198 = vmatprep.subr.bf16.mxu1 %v11197_v25 }
 0x61e   : > { %8004 = vmatmul.mubr.f32.vlgmr.msra.gmra.mrb[32].mxu1 %v7923_v11 }
 0x61f   : > { %8008 = vmatprep.mubr.f32.mxu1 %v7926_v30  ;;  %11200 = vmatpush3.bf16.msra.mxu1 %v11197_v25 }
 0x620   : > { %11202 = vmatprep.subr.bf16.mxu1 %v11201_v52 }
 0x622   : > { %8009 = vmatmul.mubr.f32.gmra.mrb[34].mxu1 %v7925_v61 }
 0x623   : > { %8013 = vmatprep.mubr.f32.mxu1 %v7928_v63  ;;  %11204 = vmatpush3.bf16.msra.mxu1 %v11201_v52 }
 0x624   : > { %11206 = vmatprep.subr.bf16.mxu1 %v14038_v36 }
 0x626   : > { %8014 = vmatmul.mubr.f32.gmra.mrb[36].mxu1 %v7927_v0 }
 0x627   : > { %8018 = vmatprep.mubr.f32.mxu1 %v7930_v1 }
 0x62a   : > { %8019 = vmatmul.mubr.f32.gmra.mrb[38].mxu1 %v7929_v3 }
 0x62b   : > { %8023 = vmatprep.mubr.f32.mxu1 %v7932_v34 }
 0x62e   : > { %8024 = vmatmul.mubr.f32.gmra.mrb[40].mxu1 %v7931_v37 }
 0x62f   : > { %8028 = vmatprep.mubr.f32.mxu1 %v7934_v41 }
 0x632   : > { %8029 = vmatmul.mubr.f32.gmra.mrb[42].mxu1 %v7933_v7 }
 0x633   : > { %8033 = vmatprep.mubr.f32.mxu1 %v7936_v5 }
 0x636   : > { %8034 = vmatmul.mubr.f32.gmra.mrb[44].mxu1 %v7935_v39 }
 0x637   : > { %8038 = vmatprep.mubr.f32.mxu1 %v7938_v12 }
 0x63a   : > { %8039 = vmatmul.mubr.f32.gmra.mrb[46].mxu1 %v7937_v9 }
 0x6b0   : > { %v11035_v40 = vpop.f32.mrb[32].mxu0 }
 0x6b1   : > { %v7738_v6 = vadd.f32 %v11035_v40, %v14048_v4  ;;  %v7732_v60 = vpop.f32.mrb[33].mxu0 }
 0x6b2   : > { %v7733_v31 = vadd.f32 %v14048_v4, %v7732_v60 }
 0x6b3   : > { %7892 = vst [vmem:[%s14052_s20 + $0x8] sm:$0xff] %v7738_v6 }
 0x6b4   : > { %7891 = vst [vmem:[%s14052_s20] sm:$0xff] %v7733_v31  ;;  %v11038_v14 = vpop.f32.mrb[34].mxu0 }
 0x6b5   : > { %v7748_v8 = vadd.f32 %v11038_v14, %v14048_v4  ;;  %v7742_v48 = vpop.f32.mrb[35].mxu0 }
 0x6b6   : > { %v7743_v28 = vadd.f32 %v14048_v4, %v7742_v48 }
 0x6b7   : > { %7894 = vst [vmem:[%s14052_s20 + $0x18] sm:$0xff] %v7748_v8 }
 0x6b8   : > { %7893 = vst [vmem:[%s14052_s20 + $0x10] sm:$0xff] %v7743_v28  ;;  %v11041_v38 = vpop.f32.mrb[36].mxu0 }
 0x6b9   : > { %v7758_v16 = vadd.f32 %v11041_v38, %v14048_v4  ;;  %v7752_v18 = vpop.f32.mrb[37].mxu0 }
 0x6ba   : > { %v7753_v20 = vadd.f32 %v14048_v4, %v7752_v18 }
 0x6bb   : > { %7896 = vst [vmem:[%s14052_s20 + $0x28] sm:$0xff] %v7758_v16 }
 0x6bc   : > { %7895 = vst [vmem:[%s14052_s20 + $0x20] sm:$0xff] %v7753_v20  ;;  %v11044_v21 = vpop.f32.mrb[38].mxu0 }
 0x6bd   : > { %v7768_v22 = vadd.f32 %v11044_v21, %v14048_v4  ;;  %v7762_v24 = vpop.f32.mrb[39].mxu0 }
 0x6be   : > { %v7763_v10 = vadd.f32 %v14048_v4, %v7762_v24 }
 0x6bf   : > { %7898 = vst [vmem:[%s14052_s20 + $0x38] sm:$0xff] %v7768_v22 }
 0x6c0   : > { %7897 = vst [vmem:[%s14052_s20 + $0x30] sm:$0xff] %v7763_v10  ;;  %v11047_v43 = vpop.f32.mrb[40].mxu0 }
 0x6c1   : > { %v7778_v44 = vadd.f32 %v11047_v43, %v14048_v4  ;;  %v7772_v45 = vpop.f32.mrb[41].mxu0 }
 0x6c2   : > { %v7773_v47 = vadd.f32 %v14048_v4, %v7772_v45 }
 0x6c3   : > { %7900 = vst [vmem:[%s14052_s20 + $0x48] sm:$0xff] %v7778_v44 }
 0x6c4   : > { %7899 = vst [vmem:[%s14052_s20 + $0x40] sm:$0xff] %v7773_v47  ;;  %v11050_v29 = vpop.f32.mrb[42].mxu0 }
 0x6c5   : > { %v7788_v32 = vadd.f32 %v11050_v29, %v14048_v4  ;;  %v7782_v59 = vpop.f32.mrb[43].mxu0 }
 0x6c6   : > { %v7783_v33 = vadd.f32 %v14048_v4, %v7782_v59 }
 0x6c7   : > { %7902 = vst [vmem:[%s14052_s20 + $0x58] sm:$0xff] %v7788_v32 }
 0x6c8   : > { %7901 = vst [vmem:[%s14052_s20 + $0x50] sm:$0xff] %v7783_v33  ;;  %v11053_v27 = vpop.f32.mrb[44].mxu0 }
 0x6c9   : > { %v7798_v51 = vadd.f32 %v11053_v27, %v14048_v4  ;;  %v7792_v55 = vpop.f32.mrb[45].mxu0  ;;  %v8194_v27 = vld [vmem:[%s14295_s10 + $0x10] sm:$0xff] }
 0x6ca   : > { %v7793_v13 = vadd.f32 %v14048_v4, %v7792_v55 }
 0x6cb   : > { %7904 = vst [vmem:[%s14052_s20 + $0x68] sm:$0xff] %v7798_v51  ;;  %v8195_v51 = vld [vmem:[%s14295_s10 + $0x18] sm:$0xff] }
 0x6cc   : > { %7903 = vst [vmem:[%s14052_s20 + $0x60] sm:$0xff] %v7793_v13  ;;  %v11056_v15 = vpop.f32.mrb[46].mxu0  ;;  %v11209_v55 = vpack.c.bf16 %v8195_v51, %v8194_v27  ;;  %v9360_v13 = vld [vmem:[%s14294_s9] ss:$0 sm:$0xff] }
 0x6cd   : > { %v7808_v46 = vadd.f32 %v11056_v15, %v14048_v4  ;;  %v7802_v23 = vpop.f32.mrb[47].mxu0 }
 0x6ce   : > { %v7803_v26 = vadd.f32 %v14048_v4, %v7802_v23 }
 0x6cf   : > { %7906 = vst [vmem:[%s14052_s20 + $0x78] sm:$0xff] %v7808_v46 }
 0x6d0   : > { %7905 = vst [vmem:[%s14052_s20 + $0x70] sm:$0xff] %v7803_v26  ;;  %v11059_v49 = vpop.f32.mrb[48].mxu0 }
 0x6d1   : > { %v7818_v54 = vadd.f32 %v11059_v49, %v14048_v4  ;;  %v7812_v56 = vpop.f32.mrb[49].mxu0 }
 0x6d2   : > { %v7813_v2 = vadd.f32 %v14048_v4, %v7812_v56 }
 0x6d3   : > { %7908 = vst [vmem:[%s14052_s20 + $0x88] sm:$0xff] %v7818_v54 }
 0x6d4   : > { %7907 = vst [vmem:[%s14052_s20 + $0x80] sm:$0xff] %v7813_v2  ;;  %v11062_v53 = vpop.f32.mrb[50].mxu0 }
 0x6d5   : > { %v7828_v35 = vadd.f32 %v11062_v53, %v14048_v4  ;;  %v7822_v57 = vpop.f32.mrb[51].mxu0 }
 0x6d6   : > { %v7823_v11 = vadd.f32 %v14048_v4, %v7822_v57 }
 0x6d7   : > { %7910 = vst [vmem:[%s14052_s20 + $0x98] sm:$0xff] %v7828_v35 }
 0x6d8   : > { %7909 = vst [vmem:[%s14052_s20 + $0x90] sm:$0xff] %v7823_v11  ;;  %v11065_v30 = vpop.f32.mrb[52].mxu0 }
 0x6d9   : > { %v7838_v61 = vadd.f32 %v11065_v30, %v14048_v4  ;;  %v7832_v63 = vpop.f32.mrb[53].mxu0 }
 0x6da   : > { %v7833_v0 = vadd.f32 %v14048_v4, %v7832_v63 }
 0x6db   : > { %7912 = vst [vmem:[%s14052_s20 + $0xa8] sm:$0xff] %v7838_v61 }
 0x6dc   : > { %7911 = vst [vmem:[%s14052_s20 + $0xa0] sm:$0xff] %v7833_v0  ;;  %v11068_v1 = vpop.f32.mrb[54].mxu0 }
 0x6dd   : > { %v7848_v3 = vadd.f32 %v11068_v1, %v14048_v4  ;;  %v7842_v34 = vpop.f32.mrb[55].mxu0 }
 0x6de   : > { %v7843_v37 = vadd.f32 %v14048_v4, %v7842_v34 }
 0x6df   : > { %7914 = vst [vmem:[%s14052_s20 + $0xb8] sm:$0xff] %v7848_v3 }
 0x6e0   : > { %7913 = vst [vmem:[%s14052_s20 + $0xb0] sm:$0xff] %v7843_v37  ;;  %v11071_v41 = vpop.f32.mrb[56].mxu0 }
 0x6e1   : > { %v7858_v7 = vadd.f32 %v11071_v41, %v14048_v4  ;;  %v7852_v5 = vpop.f32.mrb[57].mxu0 }
 0x6e2   : > { %v7853_v39 = vadd.f32 %v14048_v4, %v7852_v5 }
 0x6e3   : > { %7916 = vst [vmem:[%s14052_s20 + $0xc8] sm:$0xff] %v7858_v7 }
 0x6e4   : > { %7915 = vst [vmem:[%s14052_s20 + $0xc0] sm:$0xff] %v7853_v39  ;;  %v11074_v12 = vpop.f32.mrb[58].mxu0 }
 0x6e5   : > { %v7868_v9 = vadd.f32 %v11074_v12, %v14048_v4  ;;  %v7862_v17 = vpop.f32.mrb[59].mxu0  ;;  %v9369_v12 = vld [vmem:[%s14296_s11] ss:$0 sm:$0xff] }
 0x6e6   : > { %v7863_v19 = vadd.f32 %v14048_v4, %v7862_v17 }
 0x6e7   : > { %7918 = vst [vmem:[%s14052_s20 + $0xd8] sm:$0xff] %v7868_v9 }
 0x6e8   : > { %7917 = vst [vmem:[%s14052_s20 + $0xd0] sm:$0xff] %v7863_v19  ;;  %v11077_v25 = vpop.f32.mrb[60].mxu0 }
 0x6e9   : > { %v7878_v42 = vadd.f32 %v11077_v25, %v14048_v4  ;;  %v7872_v50 = vpop.f32.mrb[61].mxu0 }
 0x6ea   : > { %v7873_v52 = vadd.f32 %v14048_v4, %v7872_v50 }
 0x6eb   : > { %7920 = vst [vmem:[%s14052_s20 + $0xe8] sm:$0xff] %v7878_v42 }
 0x6ec   : > { %7919 = vst [vmem:[%s14052_s20 + $0xe0] sm:$0xff] %v7873_v52  ;;  %v11080_v58 = vpop.f32.mrb[62].mxu0 }
 0x6ed   : > { %v7888_v62 = vadd.f32 %v11080_v58, %v14048_v4  ;;  %v7882_v40 = vpop.f32.mrb[63].mxu0 }
 0x6ee   : > { %v7883_v6 = vadd.f32 %v14048_v4, %v7882_v40 }
 0x6ef   : > { %7922 = vst [vmem:[%s14052_s20 + $0xf8] sm:$0xff] %v7888_v62 }
 0x6f0   : > { %7921 = vst [vmem:[%s14052_s20 + $0xf0] sm:$0xff] %v7883_v6  ;;  %s11795_s20 = scalar_lea.vmem %s11794_s2, 8192 }
 0x6f1   : > { %v10059_v60 = vpop.f32.mrb[32].mxu1  ;;  %p11797_p1 = scmp.lt.s32.totalorder %s11795_s20, %s11789_s15 }
 0x6f2   : > { %v10060_v31 = vpop.f32.mrb[33].mxu1 }
 0x6f3   : > { %v10061_v14 = vadd.f32 %v10060_v31, %v10059_v60  ;;  %p11798_p2 = por %p11797_p1, %p11796_p0 }
 0x6f5   : > { %v10062_v8 = vpop.f32.mrb[34].mxu1  ;;  %11089 = vmatprep.mubr.msk.f32.mxu1 %vm7569_vm4, %v10061_v14  ;;  %p11799_p3 = pnand %p11798_p2, %p11792_p13 }
 0x6f6   : > { %v10063_v48 = vpop.f32.mrb[35].mxu1 }
 0x6f7   : > { %v10064_v28 = vadd.f32 %v10063_v48, %v10062_v8 }
 0x6f9   : > { %11090 = vmatmul.mubr.msk.f32.vlgmr.msra.gmra.mrb[48].mxu1 %vm7569_vm4, %v10064_v28  ;;  %v10065_v38 = vpop.f32.mrb[36].mxu1 }
 0x6fa   : > { %v10066_v16 = vpop.f32.mrb[37].mxu1  ;;  %11208 = vmatpush3.bf16.msra.mxu1 %v14038_v36 }
 0x6fb   : > { %v10067_v18 = vadd.f32 %v10066_v16, %v10065_v38  ;;  %11210 = vmatprep.subr.bf16.mxu1 %v11209_v55 }
 0x6fd   : > { %v10068_v20 = vpop.f32.mrb[38].mxu1  ;;  %11092 = vmatprep.mubr.msk.f32.mxu1 %vm7569_vm4, %v10067_v18 }
 0x6fe   : > { %v10069_v4 = vpop.f32.mrb[39].mxu1  ;;  %11212 = vmatpush3.bf16.msra.mxu1 %v11209_v55 }
 0x6ff   : > { %v10070_v21 = vadd.f32 %v10069_v4, %v10068_v20 }
 0x701   : > { %11093 = vmatmul.mubr.msk.f32.gmra.mrb[50].mxu1 %vm7569_vm4, %v10070_v21  ;;  %v10071_v22 = vpop.f32.mrb[40].mxu1 }
 0x702   : > { %v10072_v24 = vpop.f32.mrb[41].mxu1 }
 0x703   : > { %v10073_v10 = vadd.f32 %v10072_v24, %v10071_v22 }
 0x705   : > { %v10074_v43 = vpop.f32.mrb[42].mxu1  ;;  %11095 = vmatprep.mubr.msk.f32.mxu1 %vm7569_vm4, %v10073_v10 }
 0x706   : > { %v10075_v44 = vpop.f32.mrb[43].mxu1 }
 0x707   : > { %v10076_v45 = vadd.f32 %v10075_v44, %v10074_v43 }
 0x709   : > { %11096 = vmatmul.mubr.msk.f32.gmra.mrb[52].mxu1 %vm7569_vm4, %v10076_v45  ;;  %v10077_v47 = vpop.f32.mrb[44].mxu1 }
 0x70a   : > { %v10078_v36 = vpop.f32.mrb[45].mxu1 }
 0x70b   : > { %v10079_v29 = vadd.f32 %v10078_v36, %v10077_v47 }
 0x70d   : > { %v10080_v32 = vpop.f32.mrb[46].mxu1  ;;  %11098 = vmatprep.mubr.msk.f32.mxu1 %vm7569_vm4, %v10079_v29 }
 0x70e   : > { %v10081_v59 = vpop.f32.mrb[47].mxu1 }
 0x70f   : > { %v10082_v33 = vadd.f32 %v10081_v59, %v10080_v32 }
 0x711   : > { %11099 = vmatmul.mubr.msk.f32.gmra.mrb[54].mxu1 %vm7569_vm4, %v10082_v33 }
 0x7cc   : > { %v11091_v15 = vpop.f32.mrb[48].mxu1 }
 0x7cd   : > { %v8151_v46 = vadd.f32 %v11091_v15, %v9360_v13  ;;  %v8145_v23 = vpop.f32.mrb[49].mxu1 }
 0x7ce   : > { %v8146_v26 = vadd.f32 %v9360_v13, %v8145_v23 }
 0x7cf   : > { %v8185_v54 = vmax.f32 %v8151_v46, 0.0 }
 0x7d0   : > { %v8184_v49 = vmax.f32 %v8146_v26, 0.0 }
 0x7d2   : > { %11109 = vmatprep.mubr.msk.f32.mxu1 %vm7569_vm4, %v8184_v49 }
 0x7d3   : > { %11110 = vmatmul.mubr.msk.f32.vlgmr.msra.gmra.mrb[56].mxu1 %vm7569_vm4, %v8185_v54 }
 0x7d4   : > { %v11094_v56 = vpop.f32.mrb[50].mxu1 }
 0x7d5   : > { %v8161_v2 = vadd.f32 %v11094_v56, %v9360_v13  ;;  %v8155_v53 = vpop.f32.mrb[51].mxu1 }
 0x7d6   : > { %v8156_v35 = vadd.f32 %v9360_v13, %v8155_v53 }
 0x7d7   : > { %v8187_v11 = vmax.f32 %v8161_v2, 0.0 }
 0x7d8   : > { %v8186_v57 = vmax.f32 %v8156_v35, 0.0 }
 0x7da   : > { %11112 = vmatprep.mubr.msk.f32.mxu1 %vm7569_vm4, %v8186_v57 }
 0x7db   : > { %11113 = vmatmul.mubr.msk.f32.gmra.mrb[58].mxu1 %vm7569_vm4, %v8187_v11 }
 0x7dc   : > { %v11097_v30 = vpop.f32.mrb[52].mxu1 }
 0x7dd   : > { %v8171_v61 = vadd.f32 %v11097_v30, %v9360_v13  ;;  %v8165_v63 = vpop.f32.mrb[53].mxu1 }
 0x7de   : > { %v8166_v0 = vadd.f32 %v9360_v13, %v8165_v63 }
 0x7df   : > { %v8189_v3 = vmax.f32 %v8171_v61, 0.0 }
 0x7e0   : > { %v8188_v1 = vmax.f32 %v8166_v0, 0.0 }
 0x7e2   : > { %11115 = vmatprep.mubr.msk.f32.mxu1 %vm7569_vm4, %v8188_v1 }
 0x7e3   : > { %11116 = vmatmul.mubr.msk.f32.gmra.mrb[60].mxu1 %vm7569_vm4, %v8189_v3 }
 0x7e4   : > { %v11100_v34 = vpop.f32.mrb[54].mxu1 }
 0x7e5   : > { %v8181_v37 = vadd.f32 %v11100_v34, %v9360_v13  ;;  %v8175_v41 = vpop.f32.mrb[55].mxu1 }
 0x7e6   : > { %v8176_v7 = vadd.f32 %v9360_v13, %v8175_v41 }
 0x7e7   : > { %v8191_v39 = vmax.f32 %v8181_v37, 0.0 }
 0x7e8   : > { %v8190_v5 = vmax.f32 %v8176_v7, 0.0 }
 0x7ea   : > { %11118 = vmatprep.mubr.msk.f32.mxu1 %vm7569_vm4, %v8190_v5 }
 0x7eb   : > { %11119 = vmatmul.mubr.msk.f32.gmra.mrb[62].mxu1 %vm7569_vm4, %v8191_v39 }
 0x8a6   : > { %v11111_v9 = vpop.f32.mrb[56].mxu1 }
 0x8a7   : > { %v14145_v17 = vadd.f32 %v11111_v9, %v9369_v12  ;;  %v8293_v19 = vpop.f32.mrb[57].mxu1 }
 0x8a8   : > { %v14147_v25 = vadd.f32 %v9369_v12, %v8293_v19 }
 0x8a9   : > { %v8333_v42 = vmul.f32 %v14145_v17, %v14145_v17 }
 0x8aa   : > { %v8332_v50 = vmul.f32 %v14147_v25, %v14147_v25 }
 0x8ab   : > { %8342 = vadd.xlane.f32.xlu0 %v8333_v42 }
 0x8ae   : > { %v11114_v52 = vpop.f32.mrb[58].mxu1 }
 0x8af   : > { %v14153_v58 = vadd.f32 %v11114_v52, %v9369_v12  ;;  %8340 = vadd.xlane.f32.xlu0 %v8332_v50  ;;  %v8303_v62 = vpop.f32.mrb[59].mxu1 }
 0x8b0   : > { %v14155_v40 = vadd.f32 %v9369_v12, %v8303_v62 }
 0x8b1   : > { %v8335_v6 = vmul.f32 %v14153_v58, %v14153_v58 }
 0x8b2   : > { %v8334_v60 = vmul.f32 %v14155_v40, %v14155_v40 }
 0x8b3   : > { %8346 = vadd.xlane.f32.xlu1 %v8335_v6 }
 0x8b6   : > { %v11117_v31 = vpop.f32.mrb[60].mxu1 }
 0x8b7   : > { %v14161_v14 = vadd.f32 %v11117_v31, %v9369_v12  ;;  %v8313_v8 = vpop.f32.mrb[61].mxu1  ;;  %8344 = vadd.xlane.f32.xlu1 %v8334_v60 }
 0x8b8   : > { %v14163_v48 = vadd.f32 %v9369_v12, %v8313_v8 }
 0x8b9   : > { %v8337_v28 = vmul.f32 %v14161_v14, %v14161_v14 }
 0x8ba   : > { %v8336_v38 = vmul.f32 %v14163_v48, %v14163_v48 }
 0x8bb   : > { %8350 = vadd.xlane.f32.xlu1 %v8337_v28 }
 0x8bc   : > { %8348 = vadd.xlane.f32.xlu0 %v8336_v38 }
 0x8be   : > { %v11120_v16 = vpop.f32.mrb[62].mxu1 }
 0x8bf   : > { %v14169_v18 = vadd.f32 %v11120_v16, %v9369_v12  ;;  %v8323_v20 = vpop.f32.mrb[63].mxu1 }
 0x8c0   : > { %v14171_v4 = vadd.f32 %v9369_v12, %v8323_v20 }
 0x8c1   : > { %v8339_v21 = vmul.f32 %v14169_v18, %v14169_v18 }
 0x8c2   : > { %v8338_v22 = vmul.f32 %v14171_v4, %v14171_v4 }
 0x8c3   : > { %8354 = vadd.xlane.f32.xlu1 %v8339_v21 }
 0x8c4   : > { %8352 = vadd.xlane.f32.xlu0 %v8338_v22 }
 0x8c5   : > { %11802 = shalt.err (!%p11799_p3)
}
 0x8c6   : > { %s11803_s21 = scalar_lea.hbm %s14182_s23, 4096  ;;  %s11807_s16 = scalar_lea.hbm %s14297_s12, 8192 }
 0x8c7   : > { %p11804_p4 = scmp.ne.s32.totalorder %s14182_s23, %s11803_s21  ;;  %p11808_p9 = scmp.lt.u32.totalorder %s14182_s23, %s14297_s12 }
 0x8c8   : > { %p11809_p10 = scmp.lt.u32.totalorder %s11807_s16, %s11803_s21  ;;  %p11811_p12 = scmp.lt.u32.totalorder %s11803_s21, %s14182_s23 }
 0x8c9   : > { %p11805_p7 = pnand %p11804_p4, %p11998_p5 }
 0x8ca   : > { %p11810_p11 = por %p11809_p10, %p11808_p9 }
 0x8cb   : > { %p11806_p8 = pneg %p11805_p7 }
 0x8cc   : > { %p11812_p13 = por %p11811_p12, %p11810_p11 }
 0x8ce   : > { %p11813_p0 = pnand %p11812_p13, %p11806_p8 }
 0x8d0   : > { %11816 = shalt.err (!%p11813_p0)
}
 0x8d1   : > { %s14422_s15 = smov 128   ;;  %s14423_s20 = smov 8  }
 0x8d2   : > { %s14601_s1 = scalar_lea.sflag [#allocation4], %s14042_s24  ;;  %s8522_s30 = sshll.u32 %s14042_s24, 6 }
 0x8d3   : > { %11726 = dma.vmem_to_hbm [thread:$0]  (%p11998_p5), %s14184_s0, 4096, %s14182_s23, %s14601_s1, %s14422_s15, %s14422_s15, %s14423_s20  }
 0x8d4   : > { %s14215_s21 = scalar_lea.vmem [#allocation5], %s8522_s30  ;;  %s9387_s0 = sshll.u32 %s11981_s29, 10 }
 0x8d5   : > { %s8423_s23 = sshll.u32 %s14215_s21, 4  ;;  %s14235_s2 = scalar_lea.hbm %s14298_s13, %s9387_s0  ;;  %s14237_s23 = int_to_ptr.vmem [resolvable:$true] %s8423_s23 }
 0x8d6   : > { %s8394_s29 = scalar_lea.sflag [#allocation6], %s14042_s24  ;;  %s11817_s1 = scalar_lea.vmem %s14237_s23, 1024 }
 0x8d7   : > { %p11818_p1 = scmp.ne.s32.totalorder %s14237_s23, %s11817_s1  ;;  %s11889_s30 = smov [#allocation5]  }
 0x8d8   : > { %s11821_s15 = sshll.u32 %s11889_s30, 4  ;;  %s11822_s15 = int_to_ptr.vmem [resolvable:$false] %s11821_s15 }
 0x8d9   : > { %p11819_p2 = pnand %p11818_p1, %p11998_p5  ;;  %s11823_s20 = scalar_lea.vmem %s11822_s15, 2048 }
 0x8da   : > { %p11824_p4 = scmp.lt.s32.totalorder %s14237_s23, %s11822_s15  ;;  %p11825_p7 = scmp.lt.s32.totalorder %s11823_s20, %s11817_s1 }
 0x8db   : > { %p11820_p3 = pneg %p11819_p2 }
 0x8dc   : > { %p11826_p8 = por %p11825_p7, %p11824_p4 }
 0x8de   : > { %p11827_p9 = pnand %p11826_p8, %p11820_p3 }
 0x938   : > { %v8343_v24 = vpop.xlane.xlu0 %8342 }
 0x939   : > { %v8357_v10 = vmax.f32 %v8343_v24, 1e-24 }
 0x93b   : > { %11773 = vrsqrt.f32 %v8357_v10 }
 0x93c   : > { %v8341_v43 = vpop.xlane.xlu0 %8340 }
 0x93d   : > { %v8356_v44 = vmax.f32 %v8341_v43, 1e-24 }
 0x93f   : > { %11775 = vrsqrt.f32 %v8356_v44 }
 0x940   : > { %v8347_v45 = vpop.xlane.xlu1 %8346 }
 0x941   : > { %v8359_v47 = vmax.f32 %v8347_v45, 1e-24 }
 0x943   : > { %11777 = vrsqrt.f32 %v8359_v47 }
 0x944   : > { %v8345_v36 = vpop.xlane.xlu1 %8344 }
 0x945   : > { %v11774_v29 = vpop.eup %11773  ;;  %v8358_v32 = vmax.f32 %v8345_v36, 1e-24 }
 0x946   : > { %v8373_v59 = vmul.f32 %v11774_v29, %v14145_v17 }
 0x947   : > { %11779 = vrsqrt.f32 %v8358_v32 }
 0x948   : > { %8381 = vst [vmem:[%s14215_s21 + $0x8] sm:$0xff] %v8373_v59  ;;  %v8351_v33 = vpop.xlane.xlu1 %8350 }
 0x949   : > { %v11776_v27 = vpop.eup %11775  ;;  %v8361_v51 = vmax.f32 %v8351_v33, 1e-24  ;;  %v8349_v55 = vpop.xlane.xlu0 %8348 }
 0x94a   : > { %v8372_v13 = vmul.f32 %v11776_v27, %v14147_v25  ;;  %v8360_v15 = vmax.f32 %v8349_v55, 1e-24 }
 0x94b   : > { %11781 = vrsqrt.f32 %v8361_v51 }
 0x94c   : > { %8380 = vst [vmem:[%s14215_s21] sm:$0xff] %v8372_v13  ;;  %11783 = vrsqrt.f32 %v8360_v15 }
 0x94d   : > { %v11778_v46 = vpop.eup %11777 }
 0x94e   : > { %v8375_v23 = vmul.f32 %v11778_v46, %v14153_v58 }
 0x950   : > { %8383 = vst [vmem:[%s14215_s21 + $0x18] sm:$0xff] %v8375_v23  ;;  %v8355_v26 = vpop.xlane.xlu1 %8354 }
 0x951   : > { %v11780_v49 = vpop.eup %11779  ;;  %v8363_v54 = vmax.f32 %v8355_v26, 1e-24  ;;  %v8353_v56 = vpop.xlane.xlu0 %8352 }
 0x952   : > { %v8374_v2 = vmul.f32 %v11780_v49, %v14155_v40  ;;  %v8362_v53 = vmax.f32 %v8353_v56, 1e-24 }
 0x953   : > { %11785 = vrsqrt.f32 %v8363_v54 }
 0x954   : > { %8382 = vst [vmem:[%s14215_s21 + $0x10] sm:$0xff] %v8374_v2  ;;  %11787 = vrsqrt.f32 %v8362_v53 }
 0x955   : > { %v11782_v35 = vpop.eup %11781 }
 0x956   : > { %v11784_v57 = vpop.eup %11783  ;;  %v8377_v11 = vmul.f32 %v11782_v35, %v14161_v14 }
 0x957   : > { %v8376_v30 = vmul.f32 %v11784_v57, %v14163_v48 }
 0x958   : > { %8385 = vst [vmem:[%s14215_s21 + $0x28] sm:$0xff] %v8377_v11 }
 0x959   : > { %8384 = vst [vmem:[%s14215_s21 + $0x20] sm:$0xff] %v8376_v30 }
 0x95d   : > { %v11786_v61 = vpop.eup %11785 }
 0x95e   : > { %v11788_v63 = vpop.eup %11787  ;;  %v8379_v0 = vmul.f32 %v11786_v61, %v14169_v18 }
 0x95f   : > { %v8378_v1 = vmul.f32 %v11788_v63, %v14171_v4 }
 0x960   : > { %8387 = vst [vmem:[%s14215_s21 + $0x38] sm:$0xff] %v8379_v0 }
 0x961   : > { %8386 = vst [vmem:[%s14215_s21 + $0x30] sm:$0xff] %v8378_v1 }
 0x962   : > { %11830 = shalt.err (!%p11827_p9)
}
 0x963   : > { %s11831_s21 = scalar_lea.hbm %s14235_s2, 1024  ;;  %s11835_s16 = scalar_lea.hbm %s14298_s13, 2048 }
 0x964   : > { %p11832_p10 = scmp.ne.s32.totalorder %s14235_s2, %s11831_s21  ;;  %p11836_p13 = scmp.lt.u32.totalorder %s14235_s2, %s14298_s13 }
 0x965   : > { %p11837_p0 = scmp.lt.u32.totalorder %s11835_s16, %s11831_s21  ;;  %p11839_p2 = scmp.lt.u32.totalorder %s11831_s21, %s14235_s2 }
 0x966   : > { %p11833_p11 = pnand %p11832_p10, %p11998_p5 }
 0x967   : > { %p11838_p1 = por %p11837_p0, %p11836_p13 }
 0x968   : > { %p11834_p12 = pneg %p11833_p11 }
 0x969   : > { %p11840_p3 = por %p11839_p2, %p11838_p1 }
 0x96b   : > { %p11841_p4 = pnand %p11840_p3, %p11834_p12 }
 0x96d   : > { %11844 = shalt.err (!%p11841_p4)
}
 0x96e   : > { %s14602_s20 = smov 8   ;;  %s14603_s1 = smov 128  }
 0x96f   : > { %11727 = dma.vmem_to_hbm [thread:$0]  (%p11998_p5), %s14237_s23, 1024, %s14235_s2, %s8394_s29, %s14603_s1, %s14603_s1, %s14602_s20  }
 0x970 PF: > { %p11737_p7 = scmp.ge.s32.totalorder %s11883_s28, 2  ;;  %s8438_s0 = sand.u32 1, %s11871_s25  }
 0x971   : > { %s8439_s21 = scalar_lea.sflag [#allocation4], %s8438_s0 }
 0x972   : > { %p11731_p8 = pnand %p11737_p7, %p12002_p6 }
 0x974   : > { %11862 = dma.done.wait (!%p11731_p8), %s8439_s21, 4096  }
 0x975   : > { %11864 = vsyncadd (!%p11731_p8), %s8439_s21, 4294963200  ;;  %s8448_s18 = scalar_lea.sflag [#allocation6], %s8438_s0 }
 0x976   : > { %11866 = dma.done.wait (!%p11731_p8), %s8448_s18, 1024  }
 0x977   : > { %11868 = vsyncadd (!%p11731_p8), %s8448_s18, 4294966272  ;;  %p27_p5 = scmp.ge.s32.totalorder %s11985_s14, 4   ;;  %s14604_s25 = smov %s11875_s26 }
 0x978   : > { %s14605_s26 = smov %s11879_s27  ;;  %s14606_s27 = smov %s11996_s17 }
 0x979   : > { %s14607_s28 = smov %s11985_s14  ;;  %29 = sbr.rel (!%p27_p5) target bundleno = 9 (0x9), region = 140 }
 0x980   :  { %8453 = vsyncpa [#allocation4], 1 }
 0x981   :  { %8455 = vsyncpa [#allocation4 + $0x1], 1 }
 0x982   :  { %8456 = vsyncpa [#allocation6], 1 }
 0x983   :  { %8458 = vsyncpa [#allocation6 + $0x1], 1 }

</bundles_post_ra>
